<compile_context>
chip_gen: v5e
topology: v5e:2x2
jax: 0.10.0
libtpu: 0.0.40
codegen_flags: <defaults>
</compile_context>

<pallas_src>
import jax
import jax.numpy as jnp
from jax import lax
from jax.experimental import pallas as pl
from jax.experimental.pallas import tpu as pltpu

H = 64                       # nhid (fixed to 64 in the module)
PW = 256                     # parameter-slab lane width (multiple of 128)
YW = 128                     # lane-padded width of the yield output block
UNROLL_T = 16                # static unroll threshold for the time loop
MATMUL_BF16 = True           # bf16 operands for the hoisted input projection
VMEM_LIMIT = 32 * 1024 * 1024
VMEM_BUDGET = 18 * 1024 * 1024


def _round_up(n, m):
    return ((n + m - 1) // m) * m


def _offsets(np_in):
    """Row offsets of every parameter block inside the packed slab."""
    off = {}
    r = 0
    off["wih0"] = r; r += np_in          # (np_in, 3H)
    off["whh0"] = r; r += H              # (H, 3H)
    off["wih1"] = r; r += H              # (H, 3H)
    off["whh1"] = r; r += H              # (H, 3H)
    for k, rows in (("aw1", H), ("aw2", 64), ("aw3", 64), ("aw4", 32),
                    ("dw1", H), ("dw2", 64), ("dw3", 64), ("dw4", 32)):
        off[k] = r; r += rows
    off["bias"] = r; r += 16             # 12 bias rows, padded to 16
    return off, r


def pack_params(params, ninp, np_in):
    """Pack all parameter tensors into one (rows, PW) f32 slab (single DMA)."""
    off, total = _offsets(np_in)
    slab = jnp.zeros((total, PW), jnp.float32)

    def put(s, row, w):
        r, c = w.shape
        return s.at[row:row + r, 0:c].set(w)

    wih0 = jnp.pad(params["wih0"], ((0, np_in - ninp), (0, 0)))
    slab = put(slab, off["wih0"], wih0)
    slab = put(slab, off["whh0"], params["whh0"])
    slab = put(slab, off["wih1"], params["wih1"])
    slab = put(slab, off["whh1"], params["whh1"])
    for k in ("aw1", "aw2", "aw3", "aw4", "dw1", "dw2", "dw3", "dw4"):
        slab = put(slab, off[k], params[k])

    zH = jnp.zeros((H,), jnp.float32)
    # Fold the r/z halves of the hidden biases into the input biases (exact):
    #   rz = sigmoid(Wx + b_i + Wh + b_h)  ->  (b_i_rz + b_h_rz) goes with gx.
    # The n-gate hidden bias stays separate because it is scaled by r.
    b0x = params["bih0"] + jnp.concatenate([params["bhh0"][:2 * H], zH])
    b1x = params["bih1"] + jnp.concatenate([params["bhh1"][:2 * H], zH])
    bias_rows = [
        b0x,                                     # 0: folded into gx0
        params["bhh0"][2 * H:3 * H],             # 1: layer-0 hh n-gate bias
        b1x,                                     # 2: folded into gx1
        params["bhh1"][2 * H:3 * H],             # 3: layer-1 hh n-gate bias
        params["ab1"], params["ab2"], params["ab3"], params["ab4"],  # 4..7
        params["db1"], params["db2"], params["db3"], params["db4"],  # 8..11
    ]
    b0 = off["bias"]
    for i, b in enumerate(bias_rows):
        slab = put(slab, b0 + i, b.reshape(1, -1))
    return slab, off, total


def _pick_tile_b(batch, seq_len, np_in):
    """Largest batch tile (multiple of 16, <=256) whose per-tile working set
    (double-buffered x tile + gx0/seq scratch) fits the VMEM budget."""
    x_bytes = 2 if MATMUL_BF16 else 4
    per_row = seq_len * (2 * x_bytes * np_in   # x tile, double buffered
                         + 4 * 3 * H           # gx0 scratch (f32)
                         + 4 * H)              # seq scratch (f32)
    cap = max(16, (VMEM_BUDGET // max(per_row, 1)) // 16 * 16)
    tile = min(_round_up(max(batch, 16), 16), 256, cap)
    return max(16, (tile // 16) * 16)


def _make_kernel(tb, seq_len, np_in, off):
    b0 = off["bias"]
    T = seq_len

    def mlp4(p_ref, v, wk, brow, out_cols):
        """Linear->ReLU x3 then Linear; weights/biases sliced from the slab."""
        w1 = p_ref[off[wk + "1"]:off[wk + "1"] + H, 0:64]
        w2 = p_ref[off[wk + "2"]:off[wk + "2"] + 64, 0:64]
        w3 = p_ref[off[wk + "3"]:off[wk + "3"] + 64, 0:32]
        w4 = p_ref[off[wk + "4"]:off[wk + "4"] + 32, 0:out_cols]
        b1 = p_ref[b0 + brow + 0:b0 + brow + 1, 0:64]
        b2 = p_ref[b0 + brow + 1:b0 + brow + 2, 0:64]
        b3 = p_ref[b0 + brow + 2:b0 + brow + 3, 0:32]
        b4 = p_ref[b0 + brow + 3:b0 + brow + 4, 0:out_cols]
        v = jax.nn.relu(jnp.dot(v, w1, preferred_element_type=jnp.float32) + b1)
        v = jax.nn.relu(jnp.dot(v, w2, preferred_element_type=jnp.float32) + b2)
        v = jax.nn.relu(jnp.dot(v, w3, preferred_element_type=jnp.float32) + b3)
        return jnp.dot(v, w4, preferred_element_type=jnp.float32) + b4

    def kernel(x_ref, h0_ref, p_ref, y_ref, hout_ref, gx0_ref, seq_ref):
        # ---- static parameter slices out of the packed slab ----
        wdt = jnp.bfloat16 if MATMUL_BF16 else jnp.float32
        wih0 = p_ref[off["wih0"]:off["wih0"] + np_in, 0:3 * H].astype(wdt)
        whh0 = p_ref[off["whh0"]:off["whh0"] + H, 0:3 * H]
        wih1 = p_ref[off["wih1"]:off["wih1"] + H, 0:3 * H]
        whh1 = p_ref[off["whh1"]:off["whh1"] + H, 0:3 * H]
        b0x = p_ref[b0 + 0:b0 + 1, 0:3 * H]
        b0hn = p_ref[b0 + 1:b0 + 2, 0:H]
        b1x = p_ref[b0 + 2:b0 + 3, 0:3 * H]
        b1hn = p_ref[b0 + 3:b0 + 4, 0:H]

        # Hoist the (1,N)->(tb,N) bias broadcasts out of the recurrence loop
        # (JAX does not CSE broadcast_in_dim).
        b0hn_b = jnp.broadcast_to(b0hn, (tb, H))
        b1x_b = jnp.broadcast_to(b1x, (tb, 3 * H))
        b1hn_b = jnp.broadcast_to(b1hn, (tb, H))

        h1 = h0_ref[0, :, :]                       # (tb, H) layer-0 hidden
        h2 = h0_ref[1, :, :]                       # (tb, H) layer-1 hidden

        # Hoisted layer-0 input projection: one (T*tb, np_in) matmul (bf16
        # operands, f32 accumulate) with the folded biases, into VMEM scratch.
        x = x_ref[...].reshape(T * tb, np_in)
        gx0_ref[...] = (jnp.dot(x, wih0, preferred_element_type=jnp.float32)
                        + b0x)

        def cell(gx0, h1, h2):
            # gh0/gh1 depend only on the previous hiddens -> can overlap.
            gh0 = jnp.dot(h1, whh0, preferred_element_type=jnp.float32)
            gh1 = jnp.dot(h2, whh1, preferred_element_type=jnp.float32)
            # ---- GRU layer 0 (hidden recurrence only)
            rz0 = jax.nn.sigmoid(gx0[:, 0:2 * H] + gh0[:, 0:2 * H])
            n0 = jnp.tanh(gx0[:, 2 * H:3 * H]
                          + rz0[:, 0:H] * (gh0[:, 2 * H:3 * H] + b0hn_b))
            h1n = (1.0 - rz0[:, H:2 * H]) * n0 + rz0[:, H:2 * H] * h1
            # ---- GRU layer 1: two K=64 dots, no concat relayout
            gx1 = jnp.dot(h1n, wih1, preferred_element_type=jnp.float32) + b1x_b
            rz1 = jax.nn.sigmoid(gx1[:, 0:2 * H] + gh1[:, 0:2 * H])
            n1 = jnp.tanh(gx1[:, 2 * H:3 * H]
                          + rz1[:, 0:H] * (gh1[:, 2 * H:3 * H] + b1hn_b))
            h2n = (1.0 - rz1[:, H:2 * H]) * n1 + rz1[:, H:2 * H] * h2
            return h1n, h2n

        if T <= UNROLL_T:
            # short sequences: static unroll (max LLO scheduler visibility)
            for t in range(T):
                gx0 = gx0_ref[t * tb:(t + 1) * tb, :]
                h1, h2 = cell(gx0, h1, h2)
                seq_ref[t * tb:(t + 1) * tb, :] = h2
        else:
            # long sequences: fori_loop bounds live ranges / compile time
            def body(t, carry):
                h1c, h2c = carry
                row = pl.multiple_of(t * tb, 8)
                gx0 = gx0_ref[pl.ds(row, tb), :]
                h1c, h2c = cell(gx0, h1c, h2c)
                seq_ref[pl.ds(row, tb), :] = h2c
                return (h1c, h2c)
            h1, h2 = lax.fori_loop(0, T, body, (h1, h2))

        hout_ref[0, :, :] = h1
        hout_ref[1, :, :] = h2

        seq = seq_ref[...]                                     # (T*tb, H)

        # ---- attention MLP over all timesteps as one batched matmul chain
        scores = jnp.tanh(mlp4(p_ref, seq, "aw", 4, 1))        # (T*tb, 1)

        # ---- softmax over time, vectorized: scores are tanh-bounded in
        # [-1, 1], so exp() without the max-shift is numerically safe and
        # algebraically identical to softmax. One exp pass + tree adds.
        e = jnp.exp(scores)                                    # (T*tb, 1)

        def time_tree_sum(mat):
            parts = [mat[t * tb:(t + 1) * tb, :] for t in range(T)]
            while len(parts) > 1:
                nxt = [parts[a] + parts[a + 1]
                       for a in range(0, len(parts) - 1, 2)]
                if len(parts) % 2:
                    nxt.append(parts[-1])
                parts = nxt
            return parts[0]

        num = time_tree_sum(e * seq)                           # (tb, H)
        den = time_tree_sum(e)                                 # (tb, 1)
        ctx = num / den                                        # (tb, H)

        # ---- yield head, lane-padded to 128 cols (unmasked vst); col 0 real.
        y_ref[...] = mlp4(p_ref, ctx, "dw", 8, YW)

    return kernel


def yield_model_forward(x, h0, params):
    """x: (B, T, ninp) f32, h0: (2, B, 64) f32 -> ((B,1,1) yield, (2,B,64) hidden)."""
    B, T, ninp = x.shape
    np_in = _round_up(ninp, 8)
    tile_b = _pick_tile_b(B, T, np_in)
    bp = _round_up(max(B, tile_b), tile_b)
    grid = (bp // tile_b,)

    slab, off, rows = pack_params(params, ninp, np_in)

    # time-major x (T, bp, np_in); batch is tiled by the grid, not flattened.
    x_p = jnp.pad(x, ((0, bp - B), (0, 0), (0, np_in - ninp)))
    x_tm = jnp.transpose(x_p, (1, 0, 2))
    if MATMUL_BF16:
        x_tm = x_tm.astype(jnp.bfloat16)
    h0_p = jnp.pad(h0, ((0, 0), (0, bp - B), (0, 0)))

    kernel = _make_kernel(tile_b, T, np_in, off)

    mlp_flops = 2 * (H * 64 + 64 * 64 + 64 * 32 + 32 * 1)
    cost = pl.CostEstimate(
        flops=int(2 * T * bp * np_in * 3 * H            # hoisted input proj
                  + T * bp * 3 * 2 * H * 3 * H          # 3 recurrence matmuls
                  + T * bp * mlp_flops                  # attention MLP
                  + bp * 2 * (H * 64 + 64 * 64 + 64 * 32 + 32 * YW)),
        transcendentals=int(T * bp * (6 * H + 2)),
        bytes_accessed=int(x_tm.size * x_tm.dtype.itemsize + slab.size * 4
                           + h0_p.size * 4 + bp * (YW + 2 * H) * 4))

    y_p, h_out = pl.pallas_call(
        kernel,
        out_shape=(jax.ShapeDtypeStruct((bp, YW), jnp.float32),
                   jax.ShapeDtypeStruct((2, bp, H), jnp.float32)),
        grid=grid,
        in_specs=[pl.BlockSpec((T, tile_b, np_in), lambda i: (0, i, 0)),
                  pl.BlockSpec((2, tile_b, H), lambda i: (0, i, 0)),
                  pl.BlockSpec((rows, PW), lambda i: (0, 0))],
        out_specs=(pl.BlockSpec((tile_b, YW), lambda i: (i, 0)),
                   pl.BlockSpec((2, tile_b, H), lambda i: (0, i, 0))),
        scratch_shapes=[pltpu.VMEM((T * tile_b, 3 * H), jnp.float32),
                        pltpu.VMEM((T * tile_b, H), jnp.float32)],
        compiler_params=pltpu.CompilerParams(
            dimension_semantics=("parallel",),
            vmem_limit_bytes=VMEM_LIMIT),
        cost_estimate=cost,
    )(x_tm, h0_p, slab)
    return y_p[:B, 0:1].reshape(B, 1, 1), h_out[:, :B, :]


def init_params(key, ninp):
    """Parameter init mirroring the PyTorch module.

    GRU: uniform(-1/sqrt(H), 1/sqrt(H)) (PyTorch default).
    attn / densor_yield: weights uniform(-0.1, 0.1), biases zero (init_weights()).
    Weights are stored pre-transposed (in_features, out_features); biases 1-D.
    """
    keys = jax.random.split(key, 16)
    gb = 1.0 / jnp.sqrt(jnp.float32(H))
    ir = 0.1

    def u(k, shape, bound):
        return jax.random.uniform(k, shape, jnp.float32, -bound, bound)

    return {
        # GRU layer 0
        "wih0": u(keys[0], (ninp, 3 * H), gb),
        "whh0": u(keys[1], (H, 3 * H), gb),
        "bih0": u(keys[2], (3 * H,), gb),
        "bhh0": u(keys[3], (3 * H,), gb),
        # GRU layer 1
        "wih1": u(keys[4], (H, 3 * H), gb),
        "whh1": u(keys[5], (H, 3 * H), gb),
        "bih1": u(keys[6], (3 * H,), gb),
        "bhh1": u(keys[7], (3 * H,), gb),
        # attn MLP: 64->64->64->32->1 (Tanh applied in kernel)
        "aw1": u(keys[8], (H, 64), ir),   "ab1": jnp.zeros((64,), jnp.float32),
        "aw2": u(keys[9], (64, 64), ir),  "ab2": jnp.zeros((64,), jnp.float32),
        "aw3": u(keys[10], (64, 32), ir), "ab3": jnp.zeros((32,), jnp.float32),
        "aw4": u(keys[11], (32, 1), ir),  "ab4": jnp.zeros((1,), jnp.float32),
        # densor_yield MLP: 64->64->64->32->1
        "dw1": u(keys[12], (H, 64), ir),  "db1": jnp.zeros((64,), jnp.float32),
        "dw2": u(keys[13], (64, 64), ir), "db2": jnp.zeros((64,), jnp.float32),
        "dw3": u(keys[14], (64, 32), ir), "db3": jnp.zeros((32,), jnp.float32),
        "dw4": u(keys[15], (32, 1), ir),  "db4": jnp.zeros((1,), jnp.float32),
    }


if __name__ == "__main__":
    B, T, NINP = 4, 8, 16

    key = jax.random.PRNGKey(0)
    k_x, k_p = jax.random.split(key)

    x = jax.random.normal(k_x, (B, T, NINP), jnp.float32)
    h0 = jnp.zeros((2, B, H), jnp.float32)   # == init_hidden(bsz)
    params = init_params(k_p, NINP)

    y, hidden1 = yield_model_forward(x, h0, params)
    y = jax.block_until_ready(y)
    hidden1 = jax.block_until_ready(hidden1)

    assert y.shape == (B, 1, 1) and hidden1.shape == (2, B, H)
    assert bool(jnp.all(jnp.isfinite(y))) and bool(jnp.all(jnp.isfinite(hidden1)))
    print("KERNEL_OK")
</pallas_src>

<mosaic_0001>
module attributes {stable_mosaic.version = 11 : i64} {
  func.func @kernel(%arg0: i32, %arg1: memref<8x16x16xbf16, #tpu.memory_space<vmem>>, %arg2: memref<2x16x64xf32, #tpu.memory_space<vmem>>, %arg3: memref<672x256xf32, #tpu.memory_space<vmem>>, %arg4: memref<16x128xf32, #tpu.memory_space<vmem>>, %arg5: memref<2x16x64xf32, #tpu.memory_space<vmem>>, %arg6: memref<128x192xf32, #tpu.memory_space<vmem>>, %arg7: memref<128x64xf32, #tpu.memory_space<vmem>>) attributes {dimension_semantics = [#tpu.dimension_semantics<parallel>], iteration_bounds = array<i64: 1>, scalar_prefetch = 0 : i64, scratch_operands = 2 : i64, tpu.core_type = #tpu.core_type<tc>, window_params = [{transform_indices = @transform_0, window_bounds = array<i64: 8, 16, 16>}, {transform_indices = @transform_1, window_bounds = array<i64: 2, 16, 64>}, {pipeline_mode = #tpu.pipeline_mode<synchronous>, transform_indices = @transform_2, window_bounds = array<i64: 672, 256>}, {transform_indices = @transform_3, window_bounds = array<i64: 16, 128>}, {transform_indices = @transform_4, window_bounds = array<i64: 2, 16, 64>}]} {
    %c0 = arith.constant 0 : index
    %c0_0 = arith.constant 0 : index
    %0 = vector.load %arg3[%c0, %c0_0] : memref<672x256xf32, #tpu.memory_space<vmem>>, vector<16x192xf32>
    %1 = arith.truncf %0 : vector<16x192xf32> to vector<16x192xbf16>
    %c16 = arith.constant 16 : index
    %c0_1 = arith.constant 0 : index
    %2 = vector.load %arg3[%c16, %c0_1] : memref<672x256xf32, #tpu.memory_space<vmem>>, vector<64x192xf32>
    %c80 = arith.constant 80 : index
    %c0_2 = arith.constant 0 : index
    %3 = vector.load %arg3[%c80, %c0_2] : memref<672x256xf32, #tpu.memory_space<vmem>>, vector<64x192xf32>
    %c144 = arith.constant 144 : index
    %c0_3 = arith.constant 0 : index
    %4 = vector.load %arg3[%c144, %c0_3] : memref<672x256xf32, #tpu.memory_space<vmem>>, vector<64x192xf32>
    %c656 = arith.constant 656 : index
    %c0_4 = arith.constant 0 : index
    %5 = vector.load %arg3[%c656, %c0_4] : memref<672x256xf32, #tpu.memory_space<vmem>>, vector<1x192xf32>
    %c657 = arith.constant 657 : index
    %c0_5 = arith.constant 0 : index
    %6 = vector.load %arg3[%c657, %c0_5] : memref<672x256xf32, #tpu.memory_space<vmem>>, vector<1x64xf32>
    %c658 = arith.constant 658 : index
    %c0_6 = arith.constant 0 : index
    %7 = vector.load %arg3[%c658, %c0_6] : memref<672x256xf32, #tpu.memory_space<vmem>>, vector<1x192xf32>
    %c659 = arith.constant 659 : index
    %c0_7 = arith.constant 0 : index
    %8 = vector.load %arg3[%c659, %c0_7] : memref<672x256xf32, #tpu.memory_space<vmem>>, vector<1x64xf32>
    %9 = vector.shape_cast %6 : vector<1x64xf32> to vector<1x64xf32>
    %10 = vector.broadcast %9 : vector<1x64xf32> to vector<16x64xf32>
    %11 = vector.shape_cast %7 : vector<1x192xf32> to vector<1x192xf32>
    %12 = vector.broadcast %11 : vector<1x192xf32> to vector<16x192xf32>
    %13 = vector.shape_cast %8 : vector<1x64xf32> to vector<1x64xf32>
    %14 = vector.broadcast %13 : vector<1x64xf32> to vector<16x64xf32>
    %c0_8 = arith.constant 0 : index
    %c0_9 = arith.constant 0 : index
    %c0_10 = arith.constant 0 : index
    %15 = vector.load %arg2[%c0_8, %c0_9, %c0_10] : memref<2x16x64xf32, #tpu.memory_space<vmem>>, vector<1x16x64xf32>
    %16 = vector.shape_cast %15 : vector<1x16x64xf32> to vector<16x64xf32>
    %c1 = arith.constant 1 : index
    %c0_11 = arith.constant 0 : index
    %c0_12 = arith.constant 0 : index
    %17 = vector.load %arg2[%c1, %c0_11, %c0_12] : memref<2x16x64xf32, #tpu.memory_space<vmem>>, vector<1x16x64xf32>
    %18 = vector.shape_cast %17 : vector<1x16x64xf32> to vector<16x64xf32>
    %c0_13 = arith.constant 0 : index
    %c0_14 = arith.constant 0 : index
    %c0_15 = arith.constant 0 : index
    %19 = vector.load %arg1[%c0_13, %c0_14, %c0_15] : memref<8x16x16xbf16, #tpu.memory_space<vmem>>, vector<8x16x16xbf16>
    %20 = vector.shape_cast %19 : vector<8x16x16xbf16> to vector<128x16xbf16>
    %cst = arith.constant dense<0.000000e+00> : vector<128x192xf32>
    %21 = tpu.matmul %20, %1, %cst {dimension_numbers = #tpu.dot_dimension_numbers<[1], [0], [0], [1], [0, 0, 1, 1], [], []>} : vector<128x16xbf16>, vector<16x192xbf16>, vector<128x192xf32> -> vector<128x192xf32>
    %22 = vector.broadcast %5 : vector<1x192xf32> to vector<128x192xf32>
    %23 = arith.addf %21, %22 : vector<128x192xf32>
    %c0_16 = arith.constant 0 : index
    %c0_17 = arith.constant 0 : index
    %24 = vector.load %arg6[%c0_16, %c0_17] : memref<128x192xf32, #tpu.memory_space<vmem>>, vector<128x192xf32>
    tpu.vector_store %arg6[%c0_16, %c0_17], %23 {strides = array<i32>} : memref<128x192xf32, #tpu.memory_space<vmem>>, vector<128x192xf32>,
    %c0_18 = arith.constant 0 : index
    %c0_19 = arith.constant 0 : index
    %25 = vector.load %arg6[%c0_18, %c0_19] : memref<128x192xf32, #tpu.memory_space<vmem>>, vector<16x192xf32>
    %cst_20 = arith.constant dense<0.000000e+00> : vector<16x192xf32>
    %26 = tpu.matmul %16, %2, %cst_20 {dimension_numbers = #tpu.dot_dimension_numbers<[1], [0], [0], [1], [0, 0, 1, 1], [], []>} : vector<16x64xf32>, vector<64x192xf32>, vector<16x192xf32> -> vector<16x192xf32>
    %cst_21 = arith.constant dense<0.000000e+00> : vector<16x192xf32>
    %27 = tpu.matmul %18, %4, %cst_21 {dimension_numbers = #tpu.dot_dimension_numbers<[1], [0], [0], [1], [0, 0, 1, 1], [], []>} : vector<16x64xf32>, vector<64x192xf32>, vector<16x192xf32> -> vector<16x192xf32>
    %28 = vector.extract_strided_slice %25 {offsets = [0, 0], sizes = [16, 128], strides = [1, 1]} : vector<16x192xf32> to vector<16x128xf32>
    %29 = vector.extract_strided_slice %26 {offsets = [0, 0], sizes = [16, 128], strides = [1, 1]} : vector<16x192xf32> to vector<16x128xf32>
    %30 = arith.addf %28, %29 : vector<16x128xf32>
    %31 = arith.negf %30 : vector<16x128xf32>
    %32 = math.exp %31 : vector<16x128xf32>
    %cst_22 = arith.constant 1.000000e+00 : f32
    %33 = vector.broadcast %cst_22 : f32 to vector<16x128xf32>
    %34 = arith.addf %33, %32 : vector<16x128xf32>
    %35 = arith.divf %33, %34 : vector<16x128xf32>
    %36 = vector.extract_strided_slice %25 {offsets = [0, 128], sizes = [16, 64], strides = [1, 1]} : vector<16x192xf32> to vector<16x64xf32>
    %37 = vector.extract_strided_slice %35 {offsets = [0, 0], sizes = [16, 64], strides = [1, 1]} : vector<16x128xf32> to vector<16x64xf32>
    %38 = vector.extract_strided_slice %26 {offsets = [0, 128], sizes = [16, 64], strides = [1, 1]} : vector<16x192xf32> to vector<16x64xf32>
    %39 = arith.addf %38, %10 : vector<16x64xf32>
    %40 = arith.mulf %37, %39 : vector<16x64xf32>
    %41 = arith.addf %36, %40 : vector<16x64xf32>
    %42 = math.tanh %41 : vector<16x64xf32>
    %43 = vector.extract_strided_slice %35 {offsets = [0, 64], sizes = [16, 64], strides = [1, 1]} : vector<16x128xf32> to vector<16x64xf32>
    %cst_23 = arith.constant 1.000000e+00 : f32
    %44 = vector.broadcast %cst_23 : f32 to vector<16x64xf32>
    %45 = arith.subf %44, %43 : vector<16x64xf32>
    %46 = arith.mulf %45, %42 : vector<16x64xf32>
    %47 = vector.extract_strided_slice %35 {offsets = [0, 64], sizes = [16, 64], strides = [1, 1]} : vector<16x128xf32> to vector<16x64xf32>
    %48 = arith.mulf %47, %16 : vector<16x64xf32>
    %49 = arith.addf %46, %48 : vector<16x64xf32>
    %cst_24 = arith.constant dense<0.000000e+00> : vector<16x192xf32>
    %50 = tpu.matmul %49, %3, %cst_24 {dimension_numbers = #tpu.dot_dimension_numbers<[1], [0], [0], [1], [0, 0, 1, 1], [], []>} : vector<16x64xf32>, vector<64x192xf32>, vector<16x192xf32> -> vector<16x192xf32>
    %51 = arith.addf %50, %12 : vector<16x192xf32>
    %52 = vector.extract_strided_slice %51 {offsets = [0, 0], sizes = [16, 128], strides = [1, 1]} : vector<16x192xf32> to vector<16x128xf32>
    %53 = vector.extract_strided_slice %27 {offsets = [0, 0], sizes = [16, 128], strides = [1, 1]} : vector<16x192xf32> to vector<16x128xf32>
    %54 = arith.addf %52, %53 : vector<16x128xf32>
    %55 = arith.negf %54 : vector<16x128xf32>
    %56 = math.exp %55 : vector<16x128xf32>
    %cst_25 = arith.constant 1.000000e+00 : f32
    %57 = vector.broadcast %cst_25 : f32 to vector<16x128xf32>
    %58 = arith.addf %57, %56 : vector<16x128xf32>
    %59 = arith.divf %57, %58 : vector<16x128xf32>
    %60 = vector.extract_strided_slice %51 {offsets = [0, 128], sizes = [16, 64], strides = [1, 1]} : vector<16x192xf32> to vector<16x64xf32>
    %61 = vector.extract_strided_slice %59 {offsets = [0, 0], sizes = [16, 64], strides = [1, 1]} : vector<16x128xf32> to vector<16x64xf32>
    %62 = vector.extract_strided_slice %27 {offsets = [0, 128], sizes = [16, 64], strides = [1, 1]} : vector<16x192xf32> to vector<16x64xf32>
    %63 = arith.addf %62, %14 : vector<16x64xf32>
    %64 = arith.mulf %61, %63 : vector<16x64xf32>
    %65 = arith.addf %60, %64 : vector<16x64xf32>
    %66 = math.tanh %65 : vector<16x64xf32>
    %67 = vector.extract_strided_slice %59 {offsets = [0, 64], sizes = [16, 64], strides = [1, 1]} : vector<16x128xf32> to vector<16x64xf32>
    %cst_26 = arith.constant 1.000000e+00 : f32
    %68 = vector.broadcast %cst_26 : f32 to vector<16x64xf32>
    %69 = arith.subf %68, %67 : vector<16x64xf32>
    %70 = arith.mulf %69, %66 : vector<16x64xf32>
    %71 = vector.extract_strided_slice %59 {offsets = [0, 64], sizes = [16, 64], strides = [1, 1]} : vector<16x128xf32> to vector<16x64xf32>
    %72 = arith.mulf %71, %18 : vector<16x64xf32>
    %73 = arith.addf %70, %72 : vector<16x64xf32>
    %c0_27 = arith.constant 0 : index
    %c0_28 = arith.constant 0 : index
    %74 = vector.load %arg7[%c0_27, %c0_28] : memref<128x64xf32, #tpu.memory_space<vmem>>, vector<16x64xf32>
    tpu.vector_store %arg7[%c0_27, %c0_28], %73 {strides = array<i32>} : memref<128x64xf32, #tpu.memory_space<vmem>>, vector<16x64xf32>,
    %c16_29 = arith.constant 16 : index
    %c0_30 = arith.constant 0 : index
    %75 = vector.load %arg6[%c16_29, %c0_30] : memref<128x192xf32, #tpu.memory_space<vmem>>, vector<16x192xf32>
    %cst_31 = arith.constant dense<0.000000e+00> : vector<16x192xf32>
    %76 = tpu.matmul %49, %2, %cst_31 {dimension_numbers = #tpu.dot_dimension_numbers<[1], [0], [0], [1], [0, 0, 1, 1], [], []>} : vector<16x64xf32>, vector<64x192xf32>, vector<16x192xf32> -> vector<16x192xf32>
    %cst_32 = arith.constant dense<0.000000e+00> : vector<16x192xf32>
    %77 = tpu.matmul %73, %4, %cst_32 {dimension_numbers = #tpu.dot_dimension_numbers<[1], [0], [0], [1], [0, 0, 1, 1], [], []>} : vector<16x64xf32>, vector<64x192xf32>, vector<16x192xf32> -> vector<16x192xf32>
    %78 = vector.extract_strided_slice %75 {offsets = [0, 0], sizes = [16, 128], strides = [1, 1]} : vector<16x192xf32> to vector<16x128xf32>
    %79 = vector.extract_strided_slice %76 {offsets = [0, 0], sizes = [16, 128], strides = [1, 1]} : vector<16x192xf32> to vector<16x128xf32>
    %80 = arith.addf %78, %79 : vector<16x128xf32>
    %81 = arith.negf %80 : vector<16x128xf32>
    %82 = math.exp %81 : vector<16x128xf32>
    %cst_33 = arith.constant 1.000000e+00 : f32
    %83 = vector.broadcast %cst_33 : f32 to vector<16x128xf32>
    %84 = arith.addf %83, %82 : vector<16x128xf32>
    %85 = arith.divf %83, %84 : vector<16x128xf32>
    %86 = vector.extract_strided_slice %75 {offsets = [0, 128], sizes = [16, 64], strides = [1, 1]} : vector<16x192xf32> to vector<16x64xf32>
    %87 = vector.extract_strided_slice %85 {offsets = [0, 0], sizes = [16, 64], strides = [1, 1]} : vector<16x128xf32> to vector<16x64xf32>
    %88 = vector.extract_strided_slice %76 {offsets = [0, 128], sizes = [16, 64], strides = [1, 1]} : vector<16x192xf32> to vector<16x64xf32>
    %89 = arith.addf %88, %10 : vector<16x64xf32>
    %90 = arith.mulf %87, %89 : vector<16x64xf32>
    %91 = arith.addf %86, %90 : vector<16x64xf32>
    %92 = math.tanh %91 : vector<16x64xf32>
    %93 = vector.extract_strided_slice %85 {offsets = [0, 64], sizes = [16, 64], strides = [1, 1]} : vector<16x128xf32> to vector<16x64xf32>
    %cst_34 = arith.constant 1.000000e+00 : f32
    %94 = vector.broadcast %cst_34 : f32 to vector<16x64xf32>
    %95 = arith.subf %94, %93 : vector<16x64xf32>
    %96 = arith.mulf %95, %92 : vector<16x64xf32>
    %97 = vector.extract_strided_slice %85 {offsets = [0, 64], sizes = [16, 64], strides = [1, 1]} : vector<16x128xf32> to vector<16x64xf32>
    %98 = arith.mulf %97, %49 : vector<16x64xf32>
    %99 = arith.addf %96, %98 : vector<16x64xf32>
    %cst_35 = arith.constant dense<0.000000e+00> : vector<16x192xf32>
    %100 = tpu.matmul %99, %3, %cst_35 {dimension_numbers = #tpu.dot_dimension_numbers<[1], [0], [0], [1], [0, 0, 1, 1], [], []>} : vector<16x64xf32>, vector<64x192xf32>, vector<16x192xf32> -> vector<16x192xf32>
    %101 = arith.addf %100, %12 : vector<16x192xf32>
    %102 = vector.extract_strided_slice %101 {offsets = [0, 0], sizes = [16, 128], strides = [1, 1]} : vector<16x192xf32> to vector<16x128xf32>
    %103 = vector.extract_strided_slice %77 {offsets = [0, 0], sizes = [16, 128], strides = [1, 1]} : vector<16x192xf32> to vector<16x128xf32>
    %104 = arith.addf %102, %103 : vector<16x128xf32>
    %105 = arith.negf %104 : vector<16x128xf32>
    %106 = math.exp %105 : vector<16x128xf32>
    %cst_36 = arith.constant 1.000000e+00 : f32
    %107 = vector.broadcast %cst_36 : f32 to vector<16x128xf32>
    %108 = arith.addf %107, %106 : vector<16x128xf32>
    %109 = arith.divf %107, %108 : vector<16x128xf32>
    %110 = vector.extract_strided_slice %101 {offsets = [0, 128], sizes = [16, 64], strides = [1, 1]} : vector<16x192xf32> to vector<16x64xf32>
    %111 = vector.extract_strided_slice %109 {offsets = [0, 0], sizes = [16, 64], strides = [1, 1]} : vector<16x128xf32> to vector<16x64xf32>
    %112 = vector.extract_strided_slice %77 {offsets = [0, 128], sizes = [16, 64], strides = [1, 1]} : vector<16x192xf32> to vector<16x64xf32>
    %113 = arith.addf %112, %14 : vector<16x64xf32>
    %114 = arith.mulf %111, %113 : vector<16x64xf32>
    %115 = arith.addf %110, %114 : vector<16x64xf32>
    %116 = math.tanh %115 : vector<16x64xf32>
    %117 = vector.extract_strided_slice %109 {offsets = [0, 64], sizes = [16, 64], strides = [1, 1]} : vector<16x128xf32> to vector<16x64xf32>
    %cst_37 = arith.constant 1.000000e+00 : f32
    %118 = vector.broadcast %cst_37 : f32 to vector<16x64xf32>
    %119 = arith.subf %118, %117 : vector<16x64xf32>
    %120 = arith.mulf %119, %116 : vector<16x64xf32>
    %121 = vector.extract_strided_slice %109 {offsets = [0, 64], sizes = [16, 64], strides = [1, 1]} : vector<16x128xf32> to vector<16x64xf32>
    %122 = arith.mulf %121, %73 : vector<16x64xf32>
    %123 = arith.addf %120, %122 : vector<16x64xf32>
    %c16_38 = arith.constant 16 : index
    %c0_39 = arith.constant 0 : index
    %124 = vector.load %arg7[%c16_38, %c0_39] : memref<128x64xf32, #tpu.memory_space<vmem>>, vector<16x64xf32>
    tpu.vector_store %arg7[%c16_38, %c0_39], %123 {strides = array<i32>} : memref<128x64xf32, #tpu.memory_space<vmem>>, vector<16x64xf32>,
    %c32 = arith.constant 32 : index
    %c0_40 = arith.constant 0 : index
    %125 = vector.load %arg6[%c32, %c0_40] : memref<128x192xf32, #tpu.memory_space<vmem>>, vector<16x192xf32>
    %cst_41 = arith.constant dense<0.000000e+00> : vector<16x192xf32>
    %126 = tpu.matmul %99, %2, %cst_41 {dimension_numbers = #tpu.dot_dimension_numbers<[1], [0], [0], [1], [0, 0, 1, 1], [], []>} : vector<16x64xf32>, vector<64x192xf32>, vector<16x192xf32> -> vector<16x192xf32>
    %cst_42 = arith.constant dense<0.000000e+00> : vector<16x192xf32>
    %127 = tpu.matmul %123, %4, %cst_42 {dimension_numbers = #tpu.dot_dimension_numbers<[1], [0], [0], [1], [0, 0, 1, 1], [], []>} : vector<16x64xf32>, vector<64x192xf32>, vector<16x192xf32> -> vector<16x192xf32>
    %128 = vector.extract_strided_slice %125 {offsets = [0, 0], sizes = [16, 128], strides = [1, 1]} : vector<16x192xf32> to vector<16x128xf32>
    %129 = vector.extract_strided_slice %126 {offsets = [0, 0], sizes = [16, 128], strides = [1, 1]} : vector<16x192xf32> to vector<16x128xf32>
    %130 = arith.addf %128, %129 : vector<16x128xf32>
    %131 = arith.negf %130 : vector<16x128xf32>
    %132 = math.exp %131 : vector<16x128xf32>
    %cst_43 = arith.constant 1.000000e+00 : f32
    %133 = vector.broadcast %cst_43 : f32 to vector<16x128xf32>
    %134 = arith.addf %133, %132 : vector<16x128xf32>
    %135 = arith.divf %133, %134 : vector<16x128xf32>
    %136 = vector.extract_strided_slice %125 {offsets = [0, 128], sizes = [16, 64], strides = [1, 1]} : vector<16x192xf32> to vector<16x64xf32>
    %137 = vector.extract_strided_slice %135 {offsets = [0, 0], sizes = [16, 64], strides = [1, 1]} : vector<16x128xf32> to vector<16x64xf32>
    %138 = vector.extract_strided_slice %126 {offsets = [0, 128], sizes = [16, 64], strides = [1, 1]} : vector<16x192xf32> to vector<16x64xf32>
    %139 = arith.addf %138, %10 : vector<16x64xf32>
    %140 = arith.mulf %137, %139 : vector<16x64xf32>
    %141 = arith.addf %136, %140 : vector<16x64xf32>
    %142 = math.tanh %141 : vector<16x64xf32>
    %143 = vector.extract_strided_slice %135 {offsets = [0, 64], sizes = [16, 64], strides = [1, 1]} : vector<16x128xf32> to vector<16x64xf32>
    %cst_44 = arith.constant 1.000000e+00 : f32
    %144 = vector.broadcast %cst_44 : f32 to vector<16x64xf32>
    %145 = arith.subf %144, %143 : vector<16x64xf32>
    %146 = arith.mulf %145, %142 : vector<16x64xf32>
    %147 = vector.extract_strided_slice %135 {offsets = [0, 64], sizes = [16, 64], strides = [1, 1]} : vector<16x128xf32> to vector<16x64xf32>
    %148 = arith.mulf %147, %99 : vector<16x64xf32>
    %149 = arith.addf %146, %148 : vector<16x64xf32>
    %cst_45 = arith.constant dense<0.000000e+00> : vector<16x192xf32>
    %150 = tpu.matmul %149, %3, %cst_45 {dimension_numbers = #tpu.dot_dimension_numbers<[1], [0], [0], [1], [0, 0, 1, 1], [], []>} : vector<16x64xf32>, vector<64x192xf32>, vector<16x192xf32> -> vector<16x192xf32>
    %151 = arith.addf %150, %12 : vector<16x192xf32>
    %152 = vector.extract_strided_slice %151 {offsets = [0, 0], sizes = [16, 128], strides = [1, 1]} : vector<16x192xf32> to vector<16x128xf32>
    %153 = vector.extract_strided_slice %127 {offsets = [0, 0], sizes = [16, 128], strides = [1, 1]} : vector<16x192xf32> to vector<16x128xf32>
    %154 = arith.addf %152, %153 : vector<16x128xf32>
    %155 = arith.negf %154 : vector<16x128xf32>
    %156 = math.exp %155 : vector<16x128xf32>
    %cst_46 = arith.constant 1.000000e+00 : f32
    %157 = vector.broadcast %cst_46 : f32 to vector<16x128xf32>
    %158 = arith.addf %157, %156 : vector<16x128xf32>
    %159 = arith.divf %157, %158 : vector<16x128xf32>
    %160 = vector.extract_strided_slice %151 {offsets = [0, 128], sizes = [16, 64], strides = [1, 1]} : vector<16x192xf32> to vector<16x64xf32>
    %161 = vector.extract_strided_slice %159 {offsets = [0, 0], sizes = [16, 64], strides = [1, 1]} : vector<16x128xf32> to vector<16x64xf32>
    %162 = vector.extract_strided_slice %127 {offsets = [0, 128], sizes = [16, 64], strides = [1, 1]} : vector<16x192xf32> to vector<16x64xf32>
    %163 = arith.addf %162, %14 : vector<16x64xf32>
    %164 = arith.mulf %161, %163 : vector<16x64xf32>
    %165 = arith.addf %160, %164 : vector<16x64xf32>
    %166 = math.tanh %165 : vector<16x64xf32>
    %167 = vector.extract_strided_slice %159 {offsets = [0, 64], sizes = [16, 64], strides = [1, 1]} : vector<16x128xf32> to vector<16x64xf32>
    %cst_47 = arith.constant 1.000000e+00 : f32
    %168 = vector.broadcast %cst_47 : f32 to vector<16x64xf32>
    %169 = arith.subf %168, %167 : vector<16x64xf32>
    %170 = arith.mulf %169, %166 : vector<16x64xf32>
    %171 = vector.extract_strided_slice %159 {offsets = [0, 64], sizes = [16, 64], strides = [1, 1]} : vector<16x128xf32> to vector<16x64xf32>
    %172 = arith.mulf %171, %123 : vector<16x64xf32>
    %173 = arith.addf %170, %172 : vector<16x64xf32>
    %c32_48 = arith.constant 32 : index
    %c0_49 = arith.constant 0 : index
    %174 = vector.load %arg7[%c32_48, %c0_49] : memref<128x64xf32, #tpu.memory_space<vmem>>, vector<16x64xf32>
    tpu.vector_store %arg7[%c32_48, %c0_49], %173 {strides = array<i32>} : memref<128x64xf32, #tpu.memory_space<vmem>>, vector<16x64xf32>,
    %c48 = arith.constant 48 : index
    %c0_50 = arith.constant 0 : index
    %175 = vector.load %arg6[%c48, %c0_50] : memref<128x192xf32, #tpu.memory_space<vmem>>, vector<16x192xf32>
    %cst_51 = arith.constant dense<0.000000e+00> : vector<16x192xf32>
    %176 = tpu.matmul %149, %2, %cst_51 {dimension_numbers = #tpu.dot_dimension_numbers<[1], [0], [0], [1], [0, 0, 1, 1], [], []>} : vector<16x64xf32>, vector<64x192xf32>, vector<16x192xf32> -> vector<16x192xf32>
    %cst_52 = arith.constant dense<0.000000e+00> : vector<16x192xf32>
    %177 = tpu.matmul %173, %4, %cst_52 {dimension_numbers = #tpu.dot_dimension_numbers<[1], [0], [0], [1], [0, 0, 1, 1], [], []>} : vector<16x64xf32>, vector<64x192xf32>, vector<16x192xf32> -> vector<16x192xf32>
    %178 = vector.extract_strided_slice %175 {offsets = [0, 0], sizes = [16, 128], strides = [1, 1]} : vector<16x192xf32> to vector<16x128xf32>
    %179 = vector.extract_strided_slice %176 {offsets = [0, 0], sizes = [16, 128], strides = [1, 1]} : vector<16x192xf32> to vector<16x128xf32>
    %180 = arith.addf %178, %179 : vector<16x128xf32>
    %181 = arith.negf %180 : vector<16x128xf32>
    %182 = math.exp %181 : vector<16x128xf32>
    %cst_53 = arith.constant 1.000000e+00 : f32
    %183 = vector.broadcast %cst_53 : f32 to vector<16x128xf32>
    %184 = arith.addf %183, %182 : vector<16x128xf32>
    %185 = arith.divf %183, %184 : vector<16x128xf32>
    %186 = vector.extract_strided_slice %175 {offsets = [0, 128], sizes = [16, 64], strides = [1, 1]} : vector<16x192xf32> to vector<16x64xf32>
    %187 = vector.extract_strided_slice %185 {offsets = [0, 0], sizes = [16, 64], strides = [1, 1]} : vector<16x128xf32> to vector<16x64xf32>
    %188 = vector.extract_strided_slice %176 {offsets = [0, 128], sizes = [16, 64], strides = [1, 1]} : vector<16x192xf32> to vector<16x64xf32>
    %189 = arith.addf %188, %10 : vector<16x64xf32>
    %190 = arith.mulf %187, %189 : vector<16x64xf32>
    %191 = arith.addf %186, %190 : vector<16x64xf32>
    %192 = math.tanh %191 : vector<16x64xf32>
    %193 = vector.extract_strided_slice %185 {offsets = [0, 64], sizes = [16, 64], strides = [1, 1]} : vector<16x128xf32> to vector<16x64xf32>
    %cst_54 = arith.constant 1.000000e+00 : f32
    %194 = vector.broadcast %cst_54 : f32 to vector<16x64xf32>
    %195 = arith.subf %194, %193 : vector<16x64xf32>
    %196 = arith.mulf %195, %192 : vector<16x64xf32>
    %197 = vector.extract_strided_slice %185 {offsets = [0, 64], sizes = [16, 64], strides = [1, 1]} : vector<16x128xf32> to vector<16x64xf32>
    %198 = arith.mulf %197, %149 : vector<16x64xf32>
    %199 = arith.addf %196, %198 : vector<16x64xf32>
    %cst_55 = arith.constant dense<0.000000e+00> : vector<16x192xf32>
    %200 = tpu.matmul %199, %3, %cst_55 {dimension_numbers = #tpu.dot_dimension_numbers<[1], [0], [0], [1], [0, 0, 1, 1], [], []>} : vector<16x64xf32>, vector<64x192xf32>, vector<16x192xf32> -> vector<16x192xf32>
    %201 = arith.addf %200, %12 : vector<16x192xf32>
    %202 = vector.extract_strided_slice %201 {offsets = [0, 0], sizes = [16, 128], strides = [1, 1]} : vector<16x192xf32> to vector<16x128xf32>
    %203 = vector.extract_strided_slice %177 {offsets = [0, 0], sizes = [16, 128], strides = [1, 1]} : vector<16x192xf32> to vector<16x128xf32>
    %204 = arith.addf %202, %203 : vector<16x128xf32>
    %205 = arith.negf %204 : vector<16x128xf32>
    %206 = math.exp %205 : vector<16x128xf32>
    %cst_56 = arith.constant 1.000000e+00 : f32
    %207 = vector.broadcast %cst_56 : f32 to vector<16x128xf32>
    %208 = arith.addf %207, %206 : vector<16x128xf32>
    %209 = arith.divf %207, %208 : vector<16x128xf32>
    %210 = vector.extract_strided_slice %201 {offsets = [0, 128], sizes = [16, 64], strides = [1, 1]} : vector<16x192xf32> to vector<16x64xf32>
    %211 = vector.extract_strided_slice %209 {offsets = [0, 0], sizes = [16, 64], strides = [1, 1]} : vector<16x128xf32> to vector<16x64xf32>
    %212 = vector.extract_strided_slice %177 {offsets = [0, 128], sizes = [16, 64], strides = [1, 1]} : vector<16x192xf32> to vector<16x64xf32>
    %213 = arith.addf %212, %14 : vector<16x64xf32>
    %214 = arith.mulf %211, %213 : vector<16x64xf32>
    %215 = arith.addf %210, %214 : vector<16x64xf32>
    %216 = math.tanh %215 : vector<16x64xf32>
    %217 = vector.extract_strided_slice %209 {offsets = [0, 64], sizes = [16, 64], strides = [1, 1]} : vector<16x128xf32> to vector<16x64xf32>
    %cst_57 = arith.constant 1.000000e+00 : f32
    %218 = vector.broadcast %cst_57 : f32 to vector<16x64xf32>
    %219 = arith.subf %218, %217 : vector<16x64xf32>
    %220 = arith.mulf %219, %216 : vector<16x64xf32>
    %221 = vector.extract_strided_slice %209 {offsets = [0, 64], sizes = [16, 64], strides = [1, 1]} : vector<16x128xf32> to vector<16x64xf32>
    %222 = arith.mulf %221, %173 : vector<16x64xf32>
    %223 = arith.addf %220, %222 : vector<16x64xf32>
    %c48_58 = arith.constant 48 : index
    %c0_59 = arith.constant 0 : index
    %224 = vector.load %arg7[%c48_58, %c0_59] : memref<128x64xf32, #tpu.memory_space<vmem>>, vector<16x64xf32>
    tpu.vector_store %arg7[%c48_58, %c0_59], %223 {strides = array<i32>} : memref<128x64xf32, #tpu.memory_space<vmem>>, vector<16x64xf32>,
    %c64 = arith.constant 64 : index
    %c0_60 = arith.constant 0 : index
    %225 = vector.load %arg6[%c64, %c0_60] : memref<128x192xf32, #tpu.memory_space<vmem>>, vector<16x192xf32>
    %cst_61 = arith.constant dense<0.000000e+00> : vector<16x192xf32>
    %226 = tpu.matmul %199, %2, %cst_61 {dimension_numbers = #tpu.dot_dimension_numbers<[1], [0], [0], [1], [0, 0, 1, 1], [], []>} : vector<16x64xf32>, vector<64x192xf32>, vector<16x192xf32> -> vector<16x192xf32>
    %cst_62 = arith.constant dense<0.000000e+00> : vector<16x192xf32>
    %227 = tpu.matmul %223, %4, %cst_62 {dimension_numbers = #tpu.dot_dimension_numbers<[1], [0], [0], [1], [0, 0, 1, 1], [], []>} : vector<16x64xf32>, vector<64x192xf32>, vector<16x192xf32> -> vector<16x192xf32>
    %228 = vector.extract_strided_slice %225 {offsets = [0, 0], sizes = [16, 128], strides = [1, 1]} : vector<16x192xf32> to vector<16x128xf32>
    %229 = vector.extract_strided_slice %226 {offsets = [0, 0], sizes = [16, 128], strides = [1, 1]} : vector<16x192xf32> to vector<16x128xf32>
    %230 = arith.addf %228, %229 : vector<16x128xf32>
    %231 = arith.negf %230 : vector<16x128xf32>
    %232 = math.exp %231 : vector<16x128xf32>
    %cst_63 = arith.constant 1.000000e+00 : f32
    %233 = vector.broadcast %cst_63 : f32 to vector<16x128xf32>
    %234 = arith.addf %233, %232 : vector<16x128xf32>
    %235 = arith.divf %233, %234 : vector<16x128xf32>
    %236 = vector.extract_strided_slice %225 {offsets = [0, 128], sizes = [16, 64], strides = [1, 1]} : vector<16x192xf32> to vector<16x64xf32>
    %237 = vector.extract_strided_slice %235 {offsets = [0, 0], sizes = [16, 64], strides = [1, 1]} : vector<16x128xf32> to vector<16x64xf32>
    %238 = vector.extract_strided_slice %226 {offsets = [0, 128], sizes = [16, 64], strides = [1, 1]} : vector<16x192xf32> to vector<16x64xf32>
    %239 = arith.addf %238, %10 : vector<16x64xf32>
    %240 = arith.mulf %237, %239 : vector<16x64xf32>
    %241 = arith.addf %236, %240 : vector<16x64xf32>
    %242 = math.tanh %241 : vector<16x64xf32>
    %243 = vector.extract_strided_slice %235 {offsets = [0, 64], sizes = [16, 64], strides = [1, 1]} : vector<16x128xf32> to vector<16x64xf32>
    %cst_64 = arith.constant 1.000000e+00 : f32
    %244 = vector.broadcast %cst_64 : f32 to vector<16x64xf32>
    %245 = arith.subf %244, %243 : vector<16x64xf32>
    %246 = arith.mulf %245, %242 : vector<16x64xf32>
    %247 = vector.extract_strided_slice %235 {offsets = [0, 64], sizes = [16, 64], strides = [1, 1]} : vector<16x128xf32> to vector<16x64xf32>
    %248 = arith.mulf %247, %199 : vector<16x64xf32>
    %249 = arith.addf %246, %248 : vector<16x64xf32>
    %cst_65 = arith.constant dense<0.000000e+00> : vector<16x192xf32>
    %250 = tpu.matmul %249, %3, %cst_65 {dimension_numbers = #tpu.dot_dimension_numbers<[1], [0], [0], [1], [0, 0, 1, 1], [], []>} : vector<16x64xf32>, vector<64x192xf32>, vector<16x192xf32> -> vector<16x192xf32>
    %251 = arith.addf %250, %12 : vector<16x192xf32>
    %252 = vector.extract_strided_slice %251 {offsets = [0, 0], sizes = [16, 128], strides = [1, 1]} : vector<16x192xf32> to vector<16x128xf32>
    %253 = vector.extract_strided_slice %227 {offsets = [0, 0], sizes = [16, 128], strides = [1, 1]} : vector<16x192xf32> to vector<16x128xf32>
    %254 = arith.addf %252, %253 : vector<16x128xf32>
    %255 = arith.negf %254 : vector<16x128xf32>
    %256 = math.exp %255 : vector<16x128xf32>
    %cst_66 = arith.constant 1.000000e+00 : f32
    %257 = vector.broadcast %cst_66 : f32 to vector<16x128xf32>
    %258 = arith.addf %257, %256 : vector<16x128xf32>
    %259 = arith.divf %257, %258 : vector<16x128xf32>
    %260 = vector.extract_strided_slice %251 {offsets = [0, 128], sizes = [16, 64], strides = [1, 1]} : vector<16x192xf32> to vector<16x64xf32>
    %261 = vector.extract_strided_slice %259 {offsets = [0, 0], sizes = [16, 64], strides = [1, 1]} : vector<16x128xf32> to vector<16x64xf32>
    %262 = vector.extract_strided_slice %227 {offsets = [0, 128], sizes = [16, 64], strides = [1, 1]} : vector<16x192xf32> to vector<16x64xf32>
    %263 = arith.addf %262, %14 : vector<16x64xf32>
    %264 = arith.mulf %261, %263 : vector<16x64xf32>
    %265 = arith.addf %260, %264 : vector<16x64xf32>
    %266 = math.tanh %265 : vector<16x64xf32>
    %267 = vector.extract_strided_slice %259 {offsets = [0, 64], sizes = [16, 64], strides = [1, 1]} : vector<16x128xf32> to vector<16x64xf32>
    %cst_67 = arith.constant 1.000000e+00 : f32
    %268 = vector.broadcast %cst_67 : f32 to vector<16x64xf32>
    %269 = arith.subf %268, %267 : vector<16x64xf32>
    %270 = arith.mulf %269, %266 : vector<16x64xf32>
    %271 = vector.extract_strided_slice %259 {offsets = [0, 64], sizes = [16, 64], strides = [1, 1]} : vector<16x128xf32> to vector<16x64xf32>
    %272 = arith.mulf %271, %223 : vector<16x64xf32>
    %273 = arith.addf %270, %272 : vector<16x64xf32>
    %c64_68 = arith.constant 64 : index
    %c0_69 = arith.constant 0 : index
    %274 = vector.load %arg7[%c64_68, %c0_69] : memref<128x64xf32, #tpu.memory_space<vmem>>, vector<16x64xf32>
    tpu.vector_store %arg7[%c64_68, %c0_69], %273 {strides = array<i32>} : memref<128x64xf32, #tpu.memory_space<vmem>>, vector<16x64xf32>,
    %c80_70 = arith.constant 80 : index
    %c0_71 = arith.constant 0 : index
    %275 = vector.load %arg6[%c80_70, %c0_71] : memref<128x192xf32, #tpu.memory_space<vmem>>, vector<16x192xf32>
    %cst_72 = arith.constant dense<0.000000e+00> : vector<16x192xf32>
    %276 = tpu.matmul %249, %2, %cst_72 {dimension_numbers = #tpu.dot_dimension_numbers<[1], [0], [0], [1], [0, 0, 1, 1], [], []>} : vector<16x64xf32>, vector<64x192xf32>, vector<16x192xf32> -> vector<16x192xf32>
    %cst_73 = arith.constant dense<0.000000e+00> : vector<16x192xf32>
    %277 = tpu.matmul %273, %4, %cst_73 {dimension_numbers = #tpu.dot_dimension_numbers<[1], [0], [0], [1], [0, 0, 1, 1], [], []>} : vector<16x64xf32>, vector<64x192xf32>, vector<16x192xf32> -> vector<16x192xf32>
    %278 = vector.extract_strided_slice %275 {offsets = [0, 0], sizes = [16, 128], strides = [1, 1]} : vector<16x192xf32> to vector<16x128xf32>
    %279 = vector.extract_strided_slice %276 {offsets = [0, 0], sizes = [16, 128], strides = [1, 1]} : vector<16x192xf32> to vector<16x128xf32>
    %280 = arith.addf %278, %279 : vector<16x128xf32>
    %281 = arith.negf %280 : vector<16x128xf32>
    %282 = math.exp %281 : vector<16x128xf32>
    %cst_74 = arith.constant 1.000000e+00 : f32
    %283 = vector.broadcast %cst_74 : f32 to vector<16x128xf32>
    %284 = arith.addf %283, %282 : vector<16x128xf32>
    %285 = arith.divf %283, %284 : vector<16x128xf32>
    %286 = vector.extract_strided_slice %275 {offsets = [0, 128], sizes = [16, 64], strides = [1, 1]} : vector<16x192xf32> to vector<16x64xf32>
    %287 = vector.extract_strided_slice %285 {offsets = [0, 0], sizes = [16, 64], strides = [1, 1]} : vector<16x128xf32> to vector<16x64xf32>
    %288 = vector.extract_strided_slice %276 {offsets = [0, 128], sizes = [16, 64], strides = [1, 1]} : vector<16x192xf32> to vector<16x64xf32>
    %289 = arith.addf %288, %10 : vector<16x64xf32>
    %290 = arith.mulf %287, %289 : vector<16x64xf32>
    %291 = arith.addf %286, %290 : vector<16x64xf32>
    %292 = math.tanh %291 : vector<16x64xf32>
    %293 = vector.extract_strided_slice %285 {offsets = [0, 64], sizes = [16, 64], strides = [1, 1]} : vector<16x128xf32> to vector<16x64xf32>
    %cst_75 = arith.constant 1.000000e+00 : f32
    %294 = vector.broadcast %cst_75 : f32 to vector<16x64xf32>
    %295 = arith.subf %294, %293 : vector<16x64xf32>
    %296 = arith.mulf %295, %292 : vector<16x64xf32>
    %297 = vector.extract_strided_slice %285 {offsets = [0, 64], sizes = [16, 64], strides = [1, 1]} : vector<16x128xf32> to vector<16x64xf32>
    %298 = arith.mulf %297, %249 : vector<16x64xf32>
    %299 = arith.addf %296, %298 : vector<16x64xf32>
    %cst_76 = arith.constant dense<0.000000e+00> : vector<16x192xf32>
    %300 = tpu.matmul %299, %3, %cst_76 {dimension_numbers = #tpu.dot_dimension_numbers<[1], [0], [0], [1], [0, 0, 1, 1], [], []>} : vector<16x64xf32>, vector<64x192xf32>, vector<16x192xf32> -> vector<16x192xf32>
    %301 = arith.addf %300, %12 : vector<16x192xf32>
    %302 = vector.extract_strided_slice %301 {offsets = [0, 0], sizes = [16, 128], strides = [1, 1]} : vector<16x192xf32> to vector<16x128xf32>
    %303 = vector.extract_strided_slice %277 {offsets = [0, 0], sizes = [16, 128], strides = [1, 1]} : vector<16x192xf32> to vector<16x128xf32>
    %304 = arith.addf %302, %303 : vector<16x128xf32>
    %305 = arith.negf %304 : vector<16x128xf32>
    %306 = math.exp %305 : vector<16x128xf32>
    %cst_77 = arith.constant 1.000000e+00 : f32
    %307 = vector.broadcast %cst_77 : f32 to vector<16x128xf32>
    %308 = arith.addf %307, %306 : vector<16x128xf32>
    %309 = arith.divf %307, %308 : vector<16x128xf32>
    %310 = vector.extract_strided_slice %301 {offsets = [0, 128], sizes = [16, 64], strides = [1, 1]} : vector<16x192xf32> to vector<16x64xf32>
    %311 = vector.extract_strided_slice %309 {offsets = [0, 0], sizes = [16, 64], strides = [1, 1]} : vector<16x128xf32> to vector<16x64xf32>
    %312 = vector.extract_strided_slice %277 {offsets = [0, 128], sizes = [16, 64], strides = [1, 1]} : vector<16x192xf32> to vector<16x64xf32>
    %313 = arith.addf %312, %14 : vector<16x64xf32>
    %314 = arith.mulf %311, %313 : vector<16x64xf32>
    %315 = arith.addf %310, %314 : vector<16x64xf32>
    %316 = math.tanh %315 : vector<16x64xf32>
    %317 = vector.extract_strided_slice %309 {offsets = [0, 64], sizes = [16, 64], strides = [1, 1]} : vector<16x128xf32> to vector<16x64xf32>
    %cst_78 = arith.constant 1.000000e+00 : f32
    %318 = vector.broadcast %cst_78 : f32 to vector<16x64xf32>
    %319 = arith.subf %318, %317 : vector<16x64xf32>
    %320 = arith.mulf %319, %316 : vector<16x64xf32>
    %321 = vector.extract_strided_slice %309 {offsets = [0, 64], sizes = [16, 64], strides = [1, 1]} : vector<16x128xf32> to vector<16x64xf32>
    %322 = arith.mulf %321, %273 : vector<16x64xf32>
    %323 = arith.addf %320, %322 : vector<16x64xf32>
    %c80_79 = arith.constant 80 : index
    %c0_80 = arith.constant 0 : index
    %324 = vector.load %arg7[%c80_79, %c0_80] : memref<128x64xf32, #tpu.memory_space<vmem>>, vector<16x64xf32>
    tpu.vector_store %arg7[%c80_79, %c0_80], %323 {strides = array<i32>} : memref<128x64xf32, #tpu.memory_space<vmem>>, vector<16x64xf32>,
    %c96 = arith.constant 96 : index
    %c0_81 = arith.constant 0 : index
    %325 = vector.load %arg6[%c96, %c0_81] : memref<128x192xf32, #tpu.memory_space<vmem>>, vector<16x192xf32>
    %cst_82 = arith.constant dense<0.000000e+00> : vector<16x192xf32>
    %326 = tpu.matmul %299, %2, %cst_82 {dimension_numbers = #tpu.dot_dimension_numbers<[1], [0], [0], [1], [0, 0, 1, 1], [], []>} : vector<16x64xf32>, vector<64x192xf32>, vector<16x192xf32> -> vector<16x192xf32>
    %cst_83 = arith.constant dense<0.000000e+00> : vector<16x192xf32>
    %327 = tpu.matmul %323, %4, %cst_83 {dimension_numbers = #tpu.dot_dimension_numbers<[1], [0], [0], [1], [0, 0, 1, 1], [], []>} : vector<16x64xf32>, vector<64x192xf32>, vector<16x192xf32> -> vector<16x192xf32>
    %328 = vector.extract_strided_slice %325 {offsets = [0, 0], sizes = [16, 128], strides = [1, 1]} : vector<16x192xf32> to vector<16x128xf32>
    %329 = vector.extract_strided_slice %326 {offsets = [0, 0], sizes = [16, 128], strides = [1, 1]} : vector<16x192xf32> to vector<16x128xf32>
    %330 = arith.addf %328, %329 : vector<16x128xf32>
    %331 = arith.negf %330 : vector<16x128xf32>
    %332 = math.exp %331 : vector<16x128xf32>
    %cst_84 = arith.constant 1.000000e+00 : f32
    %333 = vector.broadcast %cst_84 : f32 to vector<16x128xf32>
    %334 = arith.addf %333, %332 : vector<16x128xf32>
    %335 = arith.divf %333, %334 : vector<16x128xf32>
    %336 = vector.extract_strided_slice %325 {offsets = [0, 128], sizes = [16, 64], strides = [1, 1]} : vector<16x192xf32> to vector<16x64xf32>
    %337 = vector.extract_strided_slice %335 {offsets = [0, 0], sizes = [16, 64], strides = [1, 1]} : vector<16x128xf32> to vector<16x64xf32>
    %338 = vector.extract_strided_slice %326 {offsets = [0, 128], sizes = [16, 64], strides = [1, 1]} : vector<16x192xf32> to vector<16x64xf32>
    %339 = arith.addf %338, %10 : vector<16x64xf32>
    %340 = arith.mulf %337, %339 : vector<16x64xf32>
    %341 = arith.addf %336, %340 : vector<16x64xf32>
    %342 = math.tanh %341 : vector<16x64xf32>
    %343 = vector.extract_strided_slice %335 {offsets = [0, 64], sizes = [16, 64], strides = [1, 1]} : vector<16x128xf32> to vector<16x64xf32>
    %cst_85 = arith.constant 1.000000e+00 : f32
    %344 = vector.broadcast %cst_85 : f32 to vector<16x64xf32>
    %345 = arith.subf %344, %343 : vector<16x64xf32>
    %346 = arith.mulf %345, %342 : vector<16x64xf32>
    %347 = vector.extract_strided_slice %335 {offsets = [0, 64], sizes = [16, 64], strides = [1, 1]} : vector<16x128xf32> to vector<16x64xf32>
    %348 = arith.mulf %347, %299 : vector<16x64xf32>
    %349 = arith.addf %346, %348 : vector<16x64xf32>
    %cst_86 = arith.constant dense<0.000000e+00> : vector<16x192xf32>
    %350 = tpu.matmul %349, %3, %cst_86 {dimension_numbers = #tpu.dot_dimension_numbers<[1], [0], [0], [1], [0, 0, 1, 1], [], []>} : vector<16x64xf32>, vector<64x192xf32>, vector<16x192xf32> -> vector<16x192xf32>
    %351 = arith.addf %350, %12 : vector<16x192xf32>
    %352 = vector.extract_strided_slice %351 {offsets = [0, 0], sizes = [16, 128], strides = [1, 1]} : vector<16x192xf32> to vector<16x128xf32>
    %353 = vector.extract_strided_slice %327 {offsets = [0, 0], sizes = [16, 128], strides = [1, 1]} : vector<16x192xf32> to vector<16x128xf32>
    %354 = arith.addf %352, %353 : vector<16x128xf32>
    %355 = arith.negf %354 : vector<16x128xf32>
    %356 = math.exp %355 : vector<16x128xf32>
    %cst_87 = arith.constant 1.000000e+00 : f32
    %357 = vector.broadcast %cst_87 : f32 to vector<16x128xf32>
    %358 = arith.addf %357, %356 : vector<16x128xf32>
    %359 = arith.divf %357, %358 : vector<16x128xf32>
    %360 = vector.extract_strided_slice %351 {offsets = [0, 128], sizes = [16, 64], strides = [1, 1]} : vector<16x192xf32> to vector<16x64xf32>
    %361 = vector.extract_strided_slice %359 {offsets = [0, 0], sizes = [16, 64], strides = [1, 1]} : vector<16x128xf32> to vector<16x64xf32>
    %362 = vector.extract_strided_slice %327 {offsets = [0, 128], sizes = [16, 64], strides = [1, 1]} : vector<16x192xf32> to vector<16x64xf32>
    %363 = arith.addf %362, %14 : vector<16x64xf32>
    %364 = arith.mulf %361, %363 : vector<16x64xf32>
    %365 = arith.addf %360, %364 : vector<16x64xf32>
    %366 = math.tanh %365 : vector<16x64xf32>
    %367 = vector.extract_strided_slice %359 {offsets = [0, 64], sizes = [16, 64], strides = [1, 1]} : vector<16x128xf32> to vector<16x64xf32>
    %cst_88 = arith.constant 1.000000e+00 : f32
    %368 = vector.broadcast %cst_88 : f32 to vector<16x64xf32>
    %369 = arith.subf %368, %367 : vector<16x64xf32>
    %370 = arith.mulf %369, %366 : vector<16x64xf32>
    %371 = vector.extract_strided_slice %359 {offsets = [0, 64], sizes = [16, 64], strides = [1, 1]} : vector<16x128xf32> to vector<16x64xf32>
    %372 = arith.mulf %371, %323 : vector<16x64xf32>
    %373 = arith.addf %370, %372 : vector<16x64xf32>
    %c96_89 = arith.constant 96 : index
    %c0_90 = arith.constant 0 : index
    %374 = vector.load %arg7[%c96_89, %c0_90] : memref<128x64xf32, #tpu.memory_space<vmem>>, vector<16x64xf32>
    tpu.vector_store %arg7[%c96_89, %c0_90], %373 {strides = array<i32>} : memref<128x64xf32, #tpu.memory_space<vmem>>, vector<16x64xf32>,
    %c112 = arith.constant 112 : index
    %c0_91 = arith.constant 0 : index
    %375 = vector.load %arg6[%c112, %c0_91] : memref<128x192xf32, #tpu.memory_space<vmem>>, vector<16x192xf32>
    %cst_92 = arith.constant dense<0.000000e+00> : vector<16x192xf32>
    %376 = tpu.matmul %349, %2, %cst_92 {dimension_numbers = #tpu.dot_dimension_numbers<[1], [0], [0], [1], [0, 0, 1, 1], [], []>} : vector<16x64xf32>, vector<64x192xf32>, vector<16x192xf32> -> vector<16x192xf32>
    %cst_93 = arith.constant dense<0.000000e+00> : vector<16x192xf32>
    %377 = tpu.matmul %373, %4, %cst_93 {dimension_numbers = #tpu.dot_dimension_numbers<[1], [0], [0], [1], [0, 0, 1, 1], [], []>} : vector<16x64xf32>, vector<64x192xf32>, vector<16x192xf32> -> vector<16x192xf32>
    %378 = vector.extract_strided_slice %375 {offsets = [0, 0], sizes = [16, 128], strides = [1, 1]} : vector<16x192xf32> to vector<16x128xf32>
    %379 = vector.extract_strided_slice %376 {offsets = [0, 0], sizes = [16, 128], strides = [1, 1]} : vector<16x192xf32> to vector<16x128xf32>
    %380 = arith.addf %378, %379 : vector<16x128xf32>
    %381 = arith.negf %380 : vector<16x128xf32>
    %382 = math.exp %381 : vector<16x128xf32>
    %cst_94 = arith.constant 1.000000e+00 : f32
    %383 = vector.broadcast %cst_94 : f32 to vector<16x128xf32>
    %384 = arith.addf %383, %382 : vector<16x128xf32>
    %385 = arith.divf %383, %384 : vector<16x128xf32>
    %386 = vector.extract_strided_slice %375 {offsets = [0, 128], sizes = [16, 64], strides = [1, 1]} : vector<16x192xf32> to vector<16x64xf32>
    %387 = vector.extract_strided_slice %385 {offsets = [0, 0], sizes = [16, 64], strides = [1, 1]} : vector<16x128xf32> to vector<16x64xf32>
    %388 = vector.extract_strided_slice %376 {offsets = [0, 128], sizes = [16, 64], strides = [1, 1]} : vector<16x192xf32> to vector<16x64xf32>
    %389 = arith.addf %388, %10 : vector<16x64xf32>
    %390 = arith.mulf %387, %389 : vector<16x64xf32>
    %391 = arith.addf %386, %390 : vector<16x64xf32>
    %392 = math.tanh %391 : vector<16x64xf32>
    %393 = vector.extract_strided_slice %385 {offsets = [0, 64], sizes = [16, 64], strides = [1, 1]} : vector<16x128xf32> to vector<16x64xf32>
    %cst_95 = arith.constant 1.000000e+00 : f32
    %394 = vector.broadcast %cst_95 : f32 to vector<16x64xf32>
    %395 = arith.subf %394, %393 : vector<16x64xf32>
    %396 = arith.mulf %395, %392 : vector<16x64xf32>
    %397 = vector.extract_strided_slice %385 {offsets = [0, 64], sizes = [16, 64], strides = [1, 1]} : vector<16x128xf32> to vector<16x64xf32>
    %398 = arith.mulf %397, %349 : vector<16x64xf32>
    %399 = arith.addf %396, %398 : vector<16x64xf32>
    %cst_96 = arith.constant dense<0.000000e+00> : vector<16x192xf32>
    %400 = tpu.matmul %399, %3, %cst_96 {dimension_numbers = #tpu.dot_dimension_numbers<[1], [0], [0], [1], [0, 0, 1, 1], [], []>} : vector<16x64xf32>, vector<64x192xf32>, vector<16x192xf32> -> vector<16x192xf32>
    %401 = arith.addf %400, %12 : vector<16x192xf32>
    %402 = vector.extract_strided_slice %401 {offsets = [0, 0], sizes = [16, 128], strides = [1, 1]} : vector<16x192xf32> to vector<16x128xf32>
    %403 = vector.extract_strided_slice %377 {offsets = [0, 0], sizes = [16, 128], strides = [1, 1]} : vector<16x192xf32> to vector<16x128xf32>
    %404 = arith.addf %402, %403 : vector<16x128xf32>
    %405 = arith.negf %404 : vector<16x128xf32>
    %406 = math.exp %405 : vector<16x128xf32>
    %cst_97 = arith.constant 1.000000e+00 : f32
    %407 = vector.broadcast %cst_97 : f32 to vector<16x128xf32>
    %408 = arith.addf %407, %406 : vector<16x128xf32>
    %409 = arith.divf %407, %408 : vector<16x128xf32>
    %410 = vector.extract_strided_slice %401 {offsets = [0, 128], sizes = [16, 64], strides = [1, 1]} : vector<16x192xf32> to vector<16x64xf32>
    %411 = vector.extract_strided_slice %409 {offsets = [0, 0], sizes = [16, 64], strides = [1, 1]} : vector<16x128xf32> to vector<16x64xf32>
    %412 = vector.extract_strided_slice %377 {offsets = [0, 128], sizes = [16, 64], strides = [1, 1]} : vector<16x192xf32> to vector<16x64xf32>
    %413 = arith.addf %412, %14 : vector<16x64xf32>
    %414 = arith.mulf %411, %413 : vector<16x64xf32>
    %415 = arith.addf %410, %414 : vector<16x64xf32>
    %416 = math.tanh %415 : vector<16x64xf32>
    %417 = vector.extract_strided_slice %409 {offsets = [0, 64], sizes = [16, 64], strides = [1, 1]} : vector<16x128xf32> to vector<16x64xf32>
    %cst_98 = arith.constant 1.000000e+00 : f32
    %418 = vector.broadcast %cst_98 : f32 to vector<16x64xf32>
    %419 = arith.subf %418, %417 : vector<16x64xf32>
    %420 = arith.mulf %419, %416 : vector<16x64xf32>
    %421 = vector.extract_strided_slice %409 {offsets = [0, 64], sizes = [16, 64], strides = [1, 1]} : vector<16x128xf32> to vector<16x64xf32>
    %422 = arith.mulf %421, %373 : vector<16x64xf32>
    %423 = arith.addf %420, %422 : vector<16x64xf32>
    %c112_99 = arith.constant 112 : index
    %c0_100 = arith.constant 0 : index
    %424 = vector.load %arg7[%c112_99, %c0_100] : memref<128x64xf32, #tpu.memory_space<vmem>>, vector<16x64xf32>
    tpu.vector_store %arg7[%c112_99, %c0_100], %423 {strides = array<i32>} : memref<128x64xf32, #tpu.memory_space<vmem>>, vector<16x64xf32>,
    %c0_101 = arith.constant 0 : index
    %c0_102 = arith.constant 0 : index
    %c0_103 = arith.constant 0 : index
    %425 = vector.load %arg5[%c0_101, %c0_102, %c0_103] : memref<2x16x64xf32, #tpu.memory_space<vmem>>, vector<1x16x64xf32>
    %426 = vector.shape_cast %425 : vector<1x16x64xf32> to vector<16x64xf32>
    %427 = vector.shape_cast %399 : vector<16x64xf32> to vector<1x16x64xf32>
    tpu.vector_store %arg5[%c0_101, %c0_102, %c0_103], %427 {strides = array<i32>} : memref<2x16x64xf32, #tpu.memory_space<vmem>>, vector<1x16x64xf32>,
    %c1_104 = arith.constant 1 : index
    %c0_105 = arith.constant 0 : index
    %c0_106 = arith.constant 0 : index
    %428 = vector.load %arg5[%c1_104, %c0_105, %c0_106] : memref<2x16x64xf32, #tpu.memory_space<vmem>>, vector<1x16x64xf32>
    %429 = vector.shape_cast %428 : vector<1x16x64xf32> to vector<16x64xf32>
    %430 = vector.shape_cast %423 : vector<16x64xf32> to vector<1x16x64xf32>
    tpu.vector_store %arg5[%c1_104, %c0_105, %c0_106], %430 {strides = array<i32>} : memref<2x16x64xf32, #tpu.memory_space<vmem>>, vector<1x16x64xf32>,
    %c0_107 = arith.constant 0 : index
    %c0_108 = arith.constant 0 : index
    %431 = vector.load %arg7[%c0_107, %c0_108] : memref<128x64xf32, #tpu.memory_space<vmem>>, vector<128x64xf32>
    %c208 = arith.constant 208 : index
    %c0_109 = arith.constant 0 : index
    %432 = vector.load %arg3[%c208, %c0_109] : memref<672x256xf32, #tpu.memory_space<vmem>>, vector<64x64xf32>
    %c272 = arith.constant 272 : index
    %c0_110 = arith.constant 0 : index
    %433 = vector.load %arg3[%c272, %c0_110] : memref<672x256xf32, #tpu.memory_space<vmem>>, vector<64x64xf32>
    %c336 = arith.constant 336 : index
    %c0_111 = arith.constant 0 : index
    %434 = vector.load %arg3[%c336, %c0_111] : memref<672x256xf32, #tpu.memory_space<vmem>>, vector<64x32xf32>
    %c400 = arith.constant 400 : index
    %c0_112 = arith.constant 0 : index
    %435 = vector.load %arg3[%c400, %c0_112] : memref<672x256xf32, #tpu.memory_space<vmem>>, vector<32x1xf32>
    %c660 = arith.constant 660 : index
    %c0_113 = arith.constant 0 : index
    %436 = vector.load %arg3[%c660, %c0_113] : memref<672x256xf32, #tpu.memory_space<vmem>>, vector<1x64xf32>
    %c661 = arith.constant 661 : index
    %c0_114 = arith.constant 0 : index
    %437 = vector.load %arg3[%c661, %c0_114] : memref<672x256xf32, #tpu.memory_space<vmem>>, vector<1x64xf32>
    %c662 = arith.constant 662 : index
    %c0_115 = arith.constant 0 : index
    %438 = vector.load %arg3[%c662, %c0_115] : memref<672x256xf32, #tpu.memory_space<vmem>>, vector<1x32xf32>
    %c663 = arith.constant 663 : index
    %c0_116 = arith.constant 0 : index
    %439 = vector.load %arg3[%c663, %c0_116] : memref<672x256xf32, #tpu.memory_space<vmem>>, vector<1x1xf32>
    %cst_117 = arith.constant dense<0.000000e+00> : vector<128x64xf32>
    %440 = tpu.matmul %431, %432, %cst_117 {dimension_numbers = #tpu.dot_dimension_numbers<[1], [0], [0], [1], [0, 0, 1, 1], [], []>} : vector<128x64xf32>, vector<64x64xf32>, vector<128x64xf32> -> vector<128x64xf32>
    %441 = vector.broadcast %436 : vector<1x64xf32> to vector<128x64xf32>
    %442 = arith.addf %440, %441 : vector<128x64xf32>
    %cst_118 = arith.constant 0.000000e+00 : f32
    %443 = vector.broadcast %cst_118 : f32 to vector<128x64xf32>
    %444 = arith.maximumf %442, %443 : vector<128x64xf32>
    %cst_119 = arith.constant dense<0.000000e+00> : vector<128x64xf32>
    %445 = tpu.matmul %444, %433, %cst_119 {dimension_numbers = #tpu.dot_dimension_numbers<[1], [0], [0], [1], [0, 0, 1, 1], [], []>} : vector<128x64xf32>, vector<64x64xf32>, vector<128x64xf32> -> vector<128x64xf32>
    %446 = vector.broadcast %437 : vector<1x64xf32> to vector<128x64xf32>
    %447 = arith.addf %445, %446 : vector<128x64xf32>
    %cst_120 = arith.constant 0.000000e+00 : f32
    %448 = vector.broadcast %cst_120 : f32 to vector<128x64xf32>
    %449 = arith.maximumf %447, %448 : vector<128x64xf32>
    %cst_121 = arith.constant dense<0.000000e+00> : vector<128x32xf32>
    %450 = tpu.matmul %449, %434, %cst_121 {dimension_numbers = #tpu.dot_dimension_numbers<[1], [0], [0], [1], [0, 0, 1, 1], [], []>} : vector<128x64xf32>, vector<64x32xf32>, vector<128x32xf32> -> vector<128x32xf32>
    %451 = vector.broadcast %438 : vector<1x32xf32> to vector<128x32xf32>
    %452 = arith.addf %450, %451 : vector<128x32xf32>
    %cst_122 = arith.constant 0.000000e+00 : f32
    %453 = vector.broadcast %cst_122 : f32 to vector<128x32xf32>
    %454 = arith.maximumf %452, %453 : vector<128x32xf32>
    %cst_123 = arith.constant dense<0.000000e+00> : vector<128x1xf32>
    %455 = tpu.matmul %454, %435, %cst_123 {dimension_numbers = #tpu.dot_dimension_numbers<[1], [0], [0], [1], [0, 0, 1, 1], [], []>} : vector<128x32xf32>, vector<32x1xf32>, vector<128x1xf32> -> vector<128x1xf32>
    %456 = vector.broadcast %439 : vector<1x1xf32> to vector<128x1xf32>
    %457 = arith.addf %455, %456 : vector<128x1xf32>
    %458 = math.tanh %457 : vector<128x1xf32>
    %459 = math.exp %458 : vector<128x1xf32>
    %460 = vector.broadcast %459 : vector<128x1xf32> to vector<128x64xf32>
    %461 = arith.mulf %460, %431 : vector<128x64xf32>
    %462 = vector.extract_strided_slice %461 {offsets = [0, 0], sizes = [16, 64], strides = [1, 1]} : vector<128x64xf32> to vector<16x64xf32>
    %463 = vector.extract_strided_slice %461 {offsets = [16, 0], sizes = [16, 64], strides = [1, 1]} : vector<128x64xf32> to vector<16x64xf32>
    %464 = vector.extract_strided_slice %461 {offsets = [32, 0], sizes = [16, 64], strides = [1, 1]} : vector<128x64xf32> to vector<16x64xf32>
    %465 = vector.extract_strided_slice %461 {offsets = [48, 0], sizes = [16, 64], strides = [1, 1]} : vector<128x64xf32> to vector<16x64xf32>
    %466 = vector.extract_strided_slice %461 {offsets = [64, 0], sizes = [16, 64], strides = [1, 1]} : vector<128x64xf32> to vector<16x64xf32>
    %467 = vector.extract_strided_slice %461 {offsets = [80, 0], sizes = [16, 64], strides = [1, 1]} : vector<128x64xf32> to vector<16x64xf32>
    %468 = vector.extract_strided_slice %461 {offsets = [96, 0], sizes = [16, 64], strides = [1, 1]} : vector<128x64xf32> to vector<16x64xf32>
    %469 = vector.extract_strided_slice %461 {offsets = [112, 0], sizes = [16, 64], strides = [1, 1]} : vector<128x64xf32> to vector<16x64xf32>
    %470 = arith.addf %462, %463 : vector<16x64xf32>
    %471 = arith.addf %464, %465 : vector<16x64xf32>
    %472 = arith.addf %466, %467 : vector<16x64xf32>
    %473 = arith.addf %468, %469 : vector<16x64xf32>
    %474 = arith.addf %470, %471 : vector<16x64xf32>
    %475 = arith.addf %472, %473 : vector<16x64xf32>
    %476 = arith.addf %474, %475 : vector<16x64xf32>
    %477 = vector.extract_strided_slice %459 {offsets = [0, 0], sizes = [16, 1], strides = [1, 1]} : vector<128x1xf32> to vector<16x1xf32>
    %478 = vector.extract_strided_slice %459 {offsets = [16, 0], sizes = [16, 1], strides = [1, 1]} : vector<128x1xf32> to vector<16x1xf32>
    %479 = vector.extract_strided_slice %459 {offsets = [32, 0], sizes = [16, 1], strides = [1, 1]} : vector<128x1xf32> to vector<16x1xf32>
    %480 = vector.extract_strided_slice %459 {offsets = [48, 0], sizes = [16, 1], strides = [1, 1]} : vector<128x1xf32> to vector<16x1xf32>
    %481 = vector.extract_strided_slice %459 {offsets = [64, 0], sizes = [16, 1], strides = [1, 1]} : vector<128x1xf32> to vector<16x1xf32>
    %482 = vector.extract_strided_slice %459 {offsets = [80, 0], sizes = [16, 1], strides = [1, 1]} : vector<128x1xf32> to vector<16x1xf32>
    %483 = vector.extract_strided_slice %459 {offsets = [96, 0], sizes = [16, 1], strides = [1, 1]} : vector<128x1xf32> to vector<16x1xf32>
    %484 = vector.extract_strided_slice %459 {offsets = [112, 0], sizes = [16, 1], strides = [1, 1]} : vector<128x1xf32> to vector<16x1xf32>
    %485 = arith.addf %477, %478 : vector<16x1xf32>
    %486 = arith.addf %479, %480 : vector<16x1xf32>
    %487 = arith.addf %481, %482 : vector<16x1xf32>
    %488 = arith.addf %483, %484 : vector<16x1xf32>
    %489 = arith.addf %485, %486 : vector<16x1xf32>
    %490 = arith.addf %487, %488 : vector<16x1xf32>
    %491 = arith.addf %489, %490 : vector<16x1xf32>
    %492 = vector.broadcast %491 : vector<16x1xf32> to vector<16x64xf32>
    %493 = arith.divf %476, %492 : vector<16x64xf32>
    %c432 = arith.constant 432 : index
    %c0_124 = arith.constant 0 : index
    %494 = vector.load %arg3[%c432, %c0_124] : memref<672x256xf32, #tpu.memory_space<vmem>>, vector<64x64xf32>
    %c496 = arith.constant 496 : index
    %c0_125 = arith.constant 0 : index
    %495 = vector.load %arg3[%c496, %c0_125] : memref<672x256xf32, #tpu.memory_space<vmem>>, vector<64x64xf32>
    %c560 = arith.constant 560 : index
    %c0_126 = arith.constant 0 : index
    %496 = vector.load %arg3[%c560, %c0_126] : memref<672x256xf32, #tpu.memory_space<vmem>>, vector<64x32xf32>
    %c624 = arith.constant 624 : index
    %c0_127 = arith.constant 0 : index
    %497 = vector.load %arg3[%c624, %c0_127] : memref<672x256xf32, #tpu.memory_space<vmem>>, vector<32x128xf32>
    %c664 = arith.constant 664 : index
    %c0_128 = arith.constant 0 : index
    %498 = vector.load %arg3[%c664, %c0_128] : memref<672x256xf32, #tpu.memory_space<vmem>>, vector<1x64xf32>
    %c665 = arith.constant 665 : index
    %c0_129 = arith.constant 0 : index
    %499 = vector.load %arg3[%c665, %c0_129] : memref<672x256xf32, #tpu.memory_space<vmem>>, vector<1x64xf32>
    %c666 = arith.constant 666 : index
    %c0_130 = arith.constant 0 : index
    %500 = vector.load %arg3[%c666, %c0_130] : memref<672x256xf32, #tpu.memory_space<vmem>>, vector<1x32xf32>
    %c667 = arith.constant 667 : index
    %c0_131 = arith.constant 0 : index
    %501 = vector.load %arg3[%c667, %c0_131] : memref<672x256xf32, #tpu.memory_space<vmem>>, vector<1x128xf32>
    %cst_132 = arith.constant dense<0.000000e+00> : vector<16x64xf32>
    %502 = tpu.matmul %493, %494, %cst_132 {dimension_numbers = #tpu.dot_dimension_numbers<[1], [0], [0], [1], [0, 0, 1, 1], [], []>} : vector<16x64xf32>, vector<64x64xf32>, vector<16x64xf32> -> vector<16x64xf32>
    %503 = vector.broadcast %498 : vector<1x64xf32> to vector<16x64xf32>
    %504 = arith.addf %502, %503 : vector<16x64xf32>
    %cst_133 = arith.constant 0.000000e+00 : f32
    %505 = vector.broadcast %cst_133 : f32 to vector<16x64xf32>
    %506 = arith.maximumf %504, %505 : vector<16x64xf32>
    %cst_134 = arith.constant dense<0.000000e+00> : vector<16x64xf32>
    %507 = tpu.matmul %506, %495, %cst_134 {dimension_numbers = #tpu.dot_dimension_numbers<[1], [0], [0], [1], [0, 0, 1, 1], [], []>} : vector<16x64xf32>, vector<64x64xf32>, vector<16x64xf32> -> vector<16x64xf32>
    %508 = vector.broadcast %499 : vector<1x64xf32> to vector<16x64xf32>
    %509 = arith.addf %507, %508 : vector<16x64xf32>
    %cst_135 = arith.constant 0.000000e+00 : f32
    %510 = vector.broadcast %cst_135 : f32 to vector<16x64xf32>
    %511 = arith.maximumf %509, %510 : vector<16x64xf32>
    %cst_136 = arith.constant dense<0.000000e+00> : vector<16x32xf32>
    %512 = tpu.matmul %511, %496, %cst_136 {dimension_numbers = #tpu.dot_dimension_numbers<[1], [0], [0], [1], [0, 0, 1, 1], [], []>} : vector<16x64xf32>, vector<64x32xf32>, vector<16x32xf32> -> vector<16x32xf32>
    %513 = vector.broadcast %500 : vector<1x32xf32> to vector<16x32xf32>
    %514 = arith.addf %512, %513 : vector<16x32xf32>
    %cst_137 = arith.constant 0.000000e+00 : f32
    %515 = vector.broadcast %cst_137 : f32 to vector<16x32xf32>
    %516 = arith.maximumf %514, %515 : vector<16x32xf32>
    %cst_138 = arith.constant dense<0.000000e+00> : vector<16x128xf32>
    %517 = tpu.matmul %516, %497, %cst_138 {dimension_numbers = #tpu.dot_dimension_numbers<[1], [0], [0], [1], [0, 0, 1, 1], [], []>} : vector<16x32xf32>, vector<32x128xf32>, vector<16x128xf32> -> vector<16x128xf32>
    %518 = vector.broadcast %501 : vector<1x128xf32> to vector<16x128xf32>
    %519 = arith.addf %517, %518 : vector<16x128xf32>
    %c0_139 = arith.constant 0 : index
    %c0_140 = arith.constant 0 : index
    %520 = vector.load %arg4[%c0_139, %c0_140] : memref<16x128xf32, #tpu.memory_space<vmem>>, vector<16x128xf32>
    tpu.vector_store %arg4[%c0_139, %c0_140], %519 {strides = array<i32>} : memref<16x128xf32, #tpu.memory_space<vmem>>, vector<16x128xf32>,
    return
  }
  func.func @transform_0(%arg0: i32) -> (i32, i32, i32) {
    %c0_i32 = arith.constant 0 : i32
    %c0_i32_0 = arith.constant 0 : i32
    %c0_i32_1 = arith.constant 0 : i32
    return %c0_i32, %arg0, %c0_i32_0 : i32, i32, i32
  }
  func.func @transform_1(%arg0: i32) -> (i32, i32, i32) {
    %c0_i32 = arith.constant 0 : i32
    %c0_i32_0 = arith.constant 0 : i32
    %c0_i32_1 = arith.constant 0 : i32
    return %c0_i32, %arg0, %c0_i32_0 : i32, i32, i32
  }
  func.func @transform_2(%arg0: i32) -> (i32, i32) {
    %c0_i32 = arith.constant 0 : i32
    %c0_i32_0 = arith.constant 0 : i32
    %c0_i32_1 = arith.constant 0 : i32
    return %c0_i32, %c0_i32_0 : i32, i32
  }
  func.func @transform_3(%arg0: i32) -> (i32, i32) {
    %c0_i32 = arith.constant 0 : i32
    %c0_i32_0 = arith.constant 0 : i32
    return %arg0, %c0_i32 : i32, i32
  }
  func.func @transform_4(%arg0: i32) -> (i32, i32, i32) {
    %c0_i32 = arith.constant 0 : i32
    %c0_i32_0 = arith.constant 0 : i32
    %c0_i32_1 = arith.constant 0 : i32
    return %c0_i32, %arg0, %c0_i32_0 : i32, i32, i32
  }
}

</mosaic_0001>

<bundles_post_ra>
// kernel: tpu_custom_call.1
= control target key start
LH: loop header
LB: loop body
LE: loop exit
PB: predicated region body
PF: predicated region fallthrough
CT: control target
= control target key end

     0   :  { %10 = vsyncpa [#allocation5], 0  ;;  %s5859_s0 = inlined_call_operand.hbm [shape: bf16[8,16,16], index: 0, kind: input, shape index: {}]   ;;  %s5860_s1 = inlined_call_operand.hbm [shape: f32[2,16,64], index: 1, kind: input, shape index: {}]   ;;  %s5861_s2 = inlined_call_operand.hbm [shape: f32[672,256], index: 2, kind: input, shape index: {}]   ;;  %s5862_s3 = inlined_call_operand.hbm [shape: f32[16,128], index: 3, kind: output, shape index: {0}]   ;;  %s5863_s4 = inlined_call_operand.hbm [shape: f32[2,16,64], index: 4, kind: output, shape index: {1}]  }
   0x1   :  { %11 = vsyncpa [#allocation8], 0 }
   0x2   :  { %12 = vsyncpa [#allocation6], 0  ;;  %s31_s17 = sshll.u32 %s5860_s1, 4  ;;  %s32_s17 = int_to_ptr.hbm [resolvable:$true] %s31_s17 }
   0x3   :  { %13 = vsyncpa [#allocation12], 0  ;;  %s4472_s18 = smov [#allocation7]   ;;  %s18_s22 = sshll.u32 %s5859_s0, 4  ;;  %s19_s22 = int_to_ptr.hbm [resolvable:$true] %s18_s22 }
   0x4   :  { %s33_s19 = sshll.u32 %s4472_s18, 4  ;;  %s4473_s23 = smov 128   ;;  %s34_s19 = int_to_ptr.vmem [resolvable:$true] %s33_s19 }
   0x5   :  { %s4474_s24 = smov 8   ;;  %s4475_s25 = smov [#allocation4]  }
   0x6   :  { %39 = dma.hbm_to_vmem [thread:$0]  %s32_s17, 512, %s34_s19, [#allocation8], %s4473_s23, %s4473_s23, %s4474_s24  }
   0x7   :  { %s20_s26 = sshll.u32 %s4475_s25, 4  ;;  %s4476_s1 = smov 64   ;;  %s21_s26 = int_to_ptr.vmem [resolvable:$true] %s20_s26 }
   0x8   :  { %s4477_s27 = smov 4   ;;  %s44_s30 = sshll.u32 %s5861_s2, 4  ;;  %s45_s30 = int_to_ptr.hbm [resolvable:$true] %s44_s30 }
   0x9   :  { %26 = dma.hbm_to_vmem [thread:$0]  %s19_s22, 1024, %s21_s26, [#allocation5], %s4476_s1, %s4476_s1, %s4477_s27  }
   0xa   :  { %s4478_s0 = smov [#allocation9]   ;;  %s4479_s6 = smov 256  }
   0xb   :  { %s46_s5 = sshll.u32 %s4478_s0, 4  ;;  %s4480_s7 = smov 16   ;;  %s47_s5 = int_to_ptr.vmem [resolvable:$true] %s46_s5 }
   0xc   :  { %52 = dma.hbm_to_vmem [thread:$0]  %s45_s30, 21504, %s47_s5, [#allocation8], %s4479_s6, %s4479_s6, %s4480_s7  }
   0xd   :  { %4464 = dma.done.wait [#allocation5], 1024  }
   0xe   :  { %4465 = vsyncadd [#allocation5], 4294966272 }
   0xf   :  { %4466 = dma.done.wait [#allocation8], 22016  }
  0x10   :  { %4467 = vsyncadd [#allocation8], 4294945280  ;;  %v4523_v0 = vld [vmem:[#allocation9 + $0x90] sm:$0xff]  ;;  %v66_v1 = vld [vmem:[#allocation9] sm:$0xff]  ;;  %vm197_vm0 = vcmask 130048   ;;  %vm321_vm1 = vcmask 523264  }
  0x11   :  { %v68_v2 = vld [vmem:[#allocation9 + $0x10] sm:$0xff]  ;;  %371 = vmatpush.msra.mxu2 %v4523_v0  ;;  %v4526_v4 = vld [vmem:[#allocation9 + $0x80] sm:$0xff]  ;;  %v4533_v8 = vld [vmem:[#allocation9 + $0x98] sm:$0xff]  ;;  %s4482_s2 = smov [#allocation11]   ;;  %s3668_s11 = sshll.u32 %s5863_s4, 4  ;;  %s3669_s11 = int_to_ptr.hbm [resolvable:$true] %s3668_s11 }
  0x12   :  { %v70_v3 = vpack.c.bf16 %v68_v2, %v66_v1  ;;  %v4528_v5 = vld [vmem:[#allocation9 + $0x70] sm:$0xff]  ;;  %v3935_v6 = vld [vmem:[#allocation4] sm:$0xff]  ;;  %v4535_v9 = vld [vmem:[#allocation9 + $0x88] sm:$0xff]  ;;  %394 = vmatpush.msra.mxu3 %v4533_v8  ;;  %s3666_s8 = sshll.u32 %s4482_s2, 4  ;;  %s4483_s12 = smov [#allocation10]   ;;  %s3667_s8 = int_to_ptr.vmem [resolvable:$true] %s3666_s8 }
  0x13   :  { %372 = vmatpush.msra.mxu2 %v4526_v4  ;;  %v4531_v7 = vld [vmem:[#allocation9 + $0x60] sm:$0xff]  ;;  %v67_v10 = vld [vmem:[#allocation9 + $0x8] sm:$0xff]  ;;  %v69_v11 = vld [vmem:[#allocation9 + $0x18] sm:$0xff]  ;;  %s3653_s13 = sshll.u32 %s4483_s12, 4  ;;  %s3655_s16 = sshll.u32 %s5862_s3, 4  ;;  %s3654_s13 = int_to_ptr.vmem [resolvable:$true] %s3653_s13  ;;  %s3656_s16 = int_to_ptr.hbm [resolvable:$true] %s3655_s16 }
  0x14   :  { %229 = vmatpush.bf16.msra.mxu0 %v70_v3  ;;  %v4540_v12 = vld [vmem:[#allocation9 + $0x50] sm:$0xff]  ;;  %v71_v13 = vpack.c.bf16 %v69_v11, %v67_v10  ;;  %v4542_v14 = vld [vmem:[#allocation9 + $0x78] sm:$0xff]  ;;  %395 = vmatpush.msra.mxu3 %v4535_v9  ;;  %v4546_v15 = vld [vmem:[#allocation9 + $0x40] sm:$0xff] }
  0x15   :  { %373 = vmatpush.msra.mxu2 %v4528_v5  ;;  %v4548_v16 = vld [vmem:[#allocation9 + $0x68] sm:$0xff]  ;;  %v4552_v17 = vld [vmem:[#allocation9 + $0x30] sm:$0xff]  ;;  %v4554_v18 = vld [vmem:[#allocation9 + $0x58] sm:$0xff] }
  0x16   :  { %278 = vmatpush.bf16.msra.mxu1 %v71_v13  ;;  %396 = vmatpush.msra.mxu3 %v4542_v14  ;;  %v4558_v19 = vld [vmem:[#allocation9 + $0x20] sm:$0xff]  ;;  %v4561_v20 = vld [vmem:[#allocation9 + $0x48] sm:$0xff]  ;;  %v4567_v22 = vld [vmem:[#allocation9 + $0x38] sm:$0xff] }
  0x17   :  { %3719 = vmatmul.msk.bf16.vlgmr.msra.gmra.mxu0 %vm197_vm0, %v3935_v6  ;;  %374 = vmatpush.msra.mxu2 %v4531_v7  ;;  %v4564_v21 = vld [vmem:[#allocation7] sm:$0xff]  ;;  %v4573_v23 = vld [vmem:[#allocation9 + $0x28] sm:$0xff] }
  0x18   :  { %397 = vmatpush.msra.mxu3 %v4548_v16  ;;  %v4579_v24 = vld [vmem:[#allocation7 + $0x8] sm:$0xff]  ;;  %v4595_v50 = vld [vmem:[#allocation9 + $0x521] ss:$0 sm:$0xff] }
  0x19   :  { %375 = vmatpush.msra.mxu2 %v4540_v12  ;;  %3727 = vmatmul.msk.bf16.vlgmr.msra.gmra.mxu1 %vm197_vm0, %v3935_v6  ;;  %v121_v25 = vld [vmem:[#allocation9 + $0x520] ss:$8 sm:$0x3] }
  0x1a   :  { %398 = vmatpush.msra.mxu3 %v4554_v18  ;;  %v4585_v26 = vperm.slane %v121_v25, 0  ;;  %v4588_v29 = vperm.slane %v121_v25, 1 }
  0x1b   :  { %376 = vmatpush.msra.mxu2 %v4546_v15 }
  0x1c   :  { %399 = vmatpush.msra.mxu3 %v4561_v20  ;;  %5908 = vst [vmem:[#allocation17_spill] sm:$0xff] %v4585_v26 }
  0x1d   :  { %377 = vmatpush.msra.mxu2 %v4552_v17  ;;  %5909 = vst [vmem:[#allocation18_spill] sm:$0xff] %v4588_v29 }
  0x1e   :  { %400 = vmatpush.msra.mxu3 %v4567_v22 }
  0x1f   :  { %378 = vmatpush.msra.mxu2 %v4558_v19 }
  0x20   :  { %3735 = vmatmul.msk.f32.vlgmr.msra.gmra.mxu2 %vm321_vm1, %v4564_v21  ;;  %401 = vmatpush.msra.mxu3 %v4573_v23 }
  0x21   :  { %3737 = vmatmul.msk.f32.vlgmr.msra.gmra.mxu3 %vm321_vm1, %v4564_v21 }
  0x28   :  { %3736 = vmatmul.msk.f32.gmra.mxu2 %vm321_vm1, %v4579_v24 }
  0x29   :  { %3738 = vmatmul.msk.f32.gmra.mxu3 %vm321_vm1, %v4579_v24 }
  0x94   :  { %v231_v27 = vpop.f32.mrf.mxu0 }
  0x95   :  { %v232_v28 = vadd.f32 %v231_v27, %v4585_v26 }
  0x96   :  { %v280_v30 = vpop.f32.mrf.mxu1 }
  0x97   :  { %v281_v31 = vadd.f32 %v280_v30, %v4588_v29 }
  0x99   :  { %322 = vst.msk [vmem:[#allocation2 + $0x8] sm:$0xff] %vm321_vm1, %v281_v31 }
  0x9c   :  { %v233_v32 = vpop.f32.mrf.mxu0 }
  0x9d   :  { %v234_v33 = vadd.f32 %v233_v32, %v4585_v26 }
  0x9e   :  { %v282_v34 = vpop.f32.mrf.mxu1 }
  0x9f   :  { %v283_v35 = vadd.f32 %v282_v34, %v4588_v29 }
  0xa0   :  { %v354_v60 = vld [vmem:[#allocation2 + $0x8] sm:$0xff] }
  0xa1   :  { %324 = vst.msk [vmem:[#allocation2 + $0x18] sm:$0xff] %vm321_vm1, %v283_v35  ;;  %v4611_v35 = vld [vmem:[#allocation9 + $0x190] sm:$0xff] }
  0xa2   :  { %423 = vmatpush.msrb.mxu2 %v4611_v35 }
  0xa3   :  { %v380_v36 = vpop.f32.mrf.mxu2 }
  0xa4   :  { %v461_v37 = vadd.f32 %v380_v36, %v232_v28  ;;  %v403_v48 = vpop.f32.mrf.mxu3  ;;  %v4613_v36 = vld [vmem:[#allocation9 + $0x198] sm:$0xff] }
  0xa5   :  { %v501_v54 = vadd.f32 %v403_v48, %v4595_v50  ;;  %446 = vmatpush.msrb.mxu3 %v4613_v36  ;;  %v4649_v48 = vld [vmem:[#allocation9 + $0x148] sm:$0xff] }
  0xa6   :  { %v3743_v38 = vmul.f32 -1.442695, %v461_v37  ;;  %v4615_v37 = vld [vmem:[#allocation9 + $0x180] sm:$0xff] }
  0xa7   :  { %424 = vmatpush.msrb.mxu2 %v4615_v37 }
  0xa8   :  { %3970 = vpow2.f32 %v3743_v38  ;;  %v356_v31 = vld [vmem:[#allocation2 + $0x18] sm:$0xff]  ;;  %v4619_v38 = vld [vmem:[#allocation9 + $0x188] sm:$0xff] }
  0xa9   :  { %447 = vmatpush.msrb.mxu3 %v4619_v38 }
  0xab   :  { %v383_v39 = vpop.f32.mrf.mxu2 }
  0xac   :  { %v462_v40 = vadd.f32 %v383_v39, %v234_v33  ;;  %v406_v1 = vpop.f32.mrf.mxu3  ;;  %v4621_v39 = vld [vmem:[#allocation9 + $0x170] sm:$0xff] }
  0xad   :  { %v502_v11 = vadd.f32 %v406_v1, %v4595_v50  ;;  %425 = vmatpush.msrb.mxu2 %v4621_v39 }
  0xae   :  { %v3971_v41 = vpop.eup %3970  ;;  %v3744_v42 = vmul.f32 -1.442695, %v462_v40  ;;  %v4623_v40 = vld [vmem:[#allocation9 + $0x178] sm:$0xff] }
  0xaf   :  { %v469_v43 = vadd.f32 1.0, %v3971_v41  ;;  %448 = vmatpush.msrb.mxu3 %v4623_v40  ;;  %v134_v41 = vld [vmem:[#allocation7 + $0x10] sm:$0xff] }
  0xb0   :  { %3972 = vpow2.f32 %v3744_v42  ;;  %v4633_v42 = vld [vmem:[#allocation9 + $0x110] sm:$0xff] }
  0xb1   :  { %3974 = vrcp.f32 %v469_v43  ;;  %v482_v51 = vand.u32 2147483648, %v469_v43  ;;  %v480_v53 = vand.u32 2147483647, %v469_v43  ;;  %vm476_vm3 = vweird.f32 %v469_v43  ;;  %1143 = vmatpush.msrb.mxu0 %v4633_v42 }
  0xb3   :  { %v483_v57 = vor.u32 1.1754944e-38, %v482_v51  ;;  %vm481_vm5 = vcmp.eq.f32.partialorder %v480_v53, 8.507059e+37  ;;  %v4657_v51 = vld [vmem:[#allocation9 + $0xf0] sm:$0xff]  ;;  %v4661_v53 = vld [vmem:[#allocation9 + $0x138] sm:$0xff] }
  0xb6   :  { %v3973_v44 = vpop.eup %3972 }
  0xb7   :  { %v3975_v45 = vpop.eup %3974  ;;  %v470_v46 = vadd.f32 1.0, %v3973_v44  ;;  %v4637_v44 = vld [vmem:[#allocation9 + $0x158] sm:$0xff] }
  0xb8   :  { %v472_v47 = vmul.f32 %v3975_v45, %v469_v43  ;;  %vm477_vm2 = vweird.f32 %v3975_v45  ;;  %v4635_v43 = vld [vmem:[#allocation9 + $0x150] sm:$0xff] }
  0xb9   :  { %3976 = vrcp.f32 %v470_v46  ;;  %vm478_vm4 = vmor %vm476_vm3, %vm477_vm2  ;;  %v497_v2 = vand.u32 2147483648, %v470_v46  ;;  %v495_v10 = vand.u32 2147483647, %v470_v46  ;;  %vm491_vm7 = vweird.f32 %v470_v46 }
  0xba   :  { %v473_v49 = vsub.f32 1.0, %v472_v47  ;;  %v4647_v47 = vld [vmem:[#allocation9 + $0x140] sm:$0xff] }
  0xbb   :  { %v498_v25 = vor.u32 1.1754944e-38, %v497_v2  ;;  %vm496_vm9 = vcmp.eq.f32.partialorder %v495_v10, 8.507059e+37  ;;  %v4702_v10 = vld [vmem:[#allocation9 + $0xb0] sm:$0xff] }
  0xbc   :  { %v474_v52 = vmul.f32 %v3975_v45, %v473_v49  ;;  %v4655_v49 = vld [vmem:[#allocation9 + $0x108] sm:$0xff] }
  0xbe   :  { %v475_v55 = vadd.f32 %v3975_v45, %v474_v52  ;;  %v4659_v52 = vld [vmem:[#allocation9 + $0x130] sm:$0xff] }
  0xbf   :  { %v3977_v56 = vpop.eup %3976 }
  0xc0   :  { %v487_v58 = vmul.f32 %v3977_v56, %v470_v46  ;;  %v479_v59 = vsel %vm478_vm4, %v3975_v45, %v475_v55  ;;  %vm492_vm6 = vweird.f32 %v3977_v56  ;;  %v4643_v45 = vld [vmem:[#allocation9 + $0x118] sm:$0xff]  ;;  %v4645_v46 = vld [vmem:[#allocation9 + $0x100] sm:$0xff] }
  0xc1   :  { %v4598_v61 = vsel %vm481_vm5, %v483_v57, %v479_v59  ;;  %vm493_vm8 = vmor %vm491_vm7, %vm492_vm6  ;;  %1144 = vmatpush.msrb.mxu0 %v4645_v46  ;;  %1166 = vmatpush.msrb.mxu1 %v4643_v45  ;;  %v4667_v55 = vld [vmem:[#allocation9 + $0xf8] sm:$0xff]  ;;  %v4671_v57 = vld [vmem:[#allocation9 + $0x120] sm:$0xff] }
  0xc2   :  { %v503_v62 = vmul.f32 %v501_v54, %v4598_v61  ;;  %v488_v63 = vsub.f32 1.0, %v487_v58  ;;  %v4673_v58 = vld [vmem:[#allocation9 + $0x128] sm:$0xff]  ;;  %v509_v1 = vsub.f32 1.0, %v4598_v61 }
  0xc3   :  { %1145 = vmatpush.msrb.mxu0 %v4657_v51  ;;  %1167 = vmatpush.msrb.mxu1 %v4655_v49  ;;  %v4679_v59 = vld [vmem:[#allocation9 + $0xe8] sm:$0xff] }
  0xc4   :  { %v505_v3 = vadd.f32 %v503_v62, %v354_v60  ;;  %v489_v6 = vmul.f32 %v3977_v56, %v488_v63  ;;  %v4681_v60 = vld [vmem:[#allocation9 + $0xd0] sm:$0xff]  ;;  %v4691_v62 = vld [vmem:[#allocation9 + $0xd8] sm:$0xff]  ;;  %v4693_v63 = vld [vmem:[#allocation9 + $0xc0] sm:$0xff] }
  0xc5   :  { %1168 = vmatpush.msrb.mxu1 %v4667_v55 }
  0xc6   :  { %3978 = vtanh.f32 %v505_v3  ;;  %v490_v13 = vadd.f32 %v3977_v56, %v489_v6  ;;  %v4700_v6 = vld [vmem:[#allocation9 + $0xc8] sm:$0xff] }
  0xc7   :  { %1169 = vmatpush.msrb.mxu1 %v4679_v59 }
  0xc8   :  { %v494_v27 = vsel %vm493_vm8, %v3977_v56, %v490_v13  ;;  %v4669_v56 = vld [vmem:[#allocation9 + $0xe0] sm:$0xff] }
  0xc9   :  { %v4602_v28 = vsel %vm496_vm9, %v498_v25, %v494_v27  ;;  %1146 = vmatpush.msrb.mxu0 %v4669_v56  ;;  %1170 = vmatpush.msrb.mxu1 %v4691_v62  ;;  %v4709_v25 = vld [vmem:[#allocation7 + $0x18] sm:$0xff] }
  0xca   :  { %v504_v30 = vmul.f32 %v502_v11, %v4602_v28  ;;  %v4711_v27 = vld [vmem:[#allocation9 + $0xb8] sm:$0xff] }
  0xcb   :  { %1147 = vmatpush.msrb.mxu0 %v4681_v60  ;;  %1171 = vmatpush.msrb.mxu1 %v4700_v6 }
  0xcc   :  { %v3979_v32 = vpop.eup %3978  ;;  %v506_v33 = vadd.f32 %v504_v30, %v356_v31  ;;  %v4713_v30 = vld [vmem:[#allocation9 + $0xa0] sm:$0xff] }
  0xcd   :  { %513 = vrot.lane.b32.xlu0 %v3979_v32, %s4476_s1  ;;  %1148 = vmatpush.msrb.mxu0 %v4693_v63  ;;  %v510_v32 = vsub.f32 1.0, %v4602_v28 }
  0xce   :  { %3980 = vtanh.f32 %v506_v33  ;;  %1172 = vmatpush.msrb.mxu1 %v4711_v27 }
  0xcf   :  { %1149 = vmatpush.msrb.mxu0 %v4702_v10 }
  0xd1   :  { %1150 = vmatpush.msrb.mxu0 %v4713_v30 }
  0xd3   :  { %1317 = vmatpush.msra.mxu0 %v4611_v35 }
  0xd4   :  { %v3981_v34 = vpop.eup %3980 }
  0xd5   :  { %515 = vrot.lane.b32.xlu1 %v3981_v34, %s4476_s1  ;;  %521 = vrot.lane.b32.xlu0 %v4564_v21, %s4476_s1  ;;  %v4627_v21 = vld [vmem:[#allocation9 + $0x160] sm:$0xff] }
  0xd6   :  { %426 = vmatpush.msrb.mxu2 %v4627_v21  ;;  %1318 = vmatpush.msra.mxu0 %v4615_v37 }
  0xd8   :  { %427 = vmatpush.msrb.mxu2 %v4635_v43  ;;  %1319 = vmatpush.msra.mxu0 %v4621_v39 }
  0xda   :  { %428 = vmatpush.msrb.mxu2 %v4647_v47  ;;  %1320 = vmatpush.msra.mxu0 %v4627_v21 }
  0xdc   :  { %429 = vmatpush.msrb.mxu2 %v4659_v52  ;;  %1321 = vmatpush.msra.mxu0 %v4635_v43 }
  0xdd   :  { %523 = vrot.lane.b32.xlu1 %v4579_v24, %s4476_s1  ;;  %v4629_v24 = vld [vmem:[#allocation9 + $0x168] sm:$0xff] }
  0xde   :  { %449 = vmatpush.msrb.mxu3 %v4629_v24  ;;  %430 = vmatpush.msrb.mxu2 %v4671_v57 }
  0xdf   :  { %3739 = vmatmul.msk.f32.vlgmr.msrb.gmra.mxu2 %vm321_vm1, %v134_v41  ;;  %1322 = vmatpush.msra.mxu0 %v4647_v47 }
  0xe0   :  { %450 = vmatpush.msrb.mxu3 %v4637_v44  ;;  %549 = vmatpush.msra.mxu2 %v4633_v42 }
  0xe1   :  { %1323 = vmatpush.msra.mxu0 %v4659_v52 }
  0xe2   :  { %451 = vmatpush.msrb.mxu3 %v4649_v48  ;;  %550 = vmatpush.msra.mxu2 %v4645_v46 }
  0xe3   :  { %1324 = vmatpush.msra.mxu0 %v4671_v57 }
  0xe4   :  { %452 = vmatpush.msrb.mxu3 %v4661_v53  ;;  %551 = vmatpush.msra.mxu2 %v4657_v51 }
  0xe5   :  { %647 = vrot.lane.b32.xlu1 %v134_v41, %s4476_s1 }
  0xe6   :  { %453 = vmatpush.msrb.mxu3 %v4673_v58  ;;  %552 = vmatpush.msra.mxu2 %v4669_v56 }
  0xe7   :  { %3741 = vmatmul.msk.f32.vlgmr.msrb.gmra.mxu3 %vm321_vm1, %v134_v41  ;;  %3740 = vmatmul.msk.f32.gmra.mxu2 %vm321_vm1, %v4709_v25 }
  0xe8   :  { %572 = vmatpush.msra.mxu3 %v4643_v45  ;;  %553 = vmatpush.msra.mxu2 %v4681_v60 }
  0xea   :  { %573 = vmatpush.msra.mxu3 %v4655_v49  ;;  %554 = vmatpush.msra.mxu2 %v4693_v63 }
  0xec   :  { %574 = vmatpush.msra.mxu3 %v4667_v55  ;;  %555 = vmatpush.msra.mxu2 %v4702_v10 }
  0xee   :  { %575 = vmatpush.msra.mxu3 %v4679_v59  ;;  %556 = vmatpush.msra.mxu2 %v4713_v30 }
  0xef   :  { %3742 = vmatmul.msk.f32.gmra.mxu3 %vm321_vm1, %v4709_v25 }
  0xf0   :  { %576 = vmatpush.msra.mxu3 %v4691_v62  ;;  %679 = vmatpush.msrb.mxu2 %v4523_v0 }
  0xf2   :  { %577 = vmatpush.msra.mxu3 %v4700_v6  ;;  %680 = vmatpush.msrb.mxu2 %v4526_v4 }
  0xf4   :  { %578 = vmatpush.msra.mxu3 %v4711_v27  ;;  %681 = vmatpush.msrb.mxu2 %v4528_v5 }
  0xf6   :  { %682 = vmatpush.msrb.mxu2 %v4531_v7 }
  0xf8   :  { %683 = vmatpush.msrb.mxu2 %v4540_v12 }
  0xfa   :  { %684 = vmatpush.msrb.mxu2 %v4546_v15 }
  0xfc   :  { %685 = vmatpush.msrb.mxu2 %v4552_v17 }
  0xfe   :  { %686 = vmatpush.msrb.mxu2 %v4558_v19 }
 0x13f   :  { %v514_v54 = vpop.permute.xlu0 %513 }
 0x140   :  { %v519_v11 = vmul.f32 %v514_v54, %v509_v1 }
 0x147   :  { %v516_v2 = vpop.permute.xlu1 %515  ;;  %v522_v3 = vpop.permute.xlu0 %521 }
 0x148   :  { %v527_v13 = vmul.f32 %v522_v3, %v4598_v61  ;;  %v4728_v61 = vld [vmem:[#allocation9 + $0xa8] sm:$0xff]  ;;  %v520_v34 = vmul.f32 %v516_v2, %v510_v32 }
 0x149   :  { %1173 = vmatpush.msrb.mxu1 %v4728_v61  ;;  %579 = vmatpush.msra.mxu3 %v4728_v61 }
 0x14a   :  { %v4715_v31 = vadd.f32 %v527_v13, %v519_v11 }
 0x14b   :  { %1340 = vmatpush.msra.mxu1 %v4613_v36  ;;  %702 = vmatpush.msrb.mxu3 %v4533_v8 }
 0x14c   :  { %533 = vrot.lane.b32.xlu2 %v4715_v31, %s4476_s1 }
 0x14d   :  { %1341 = vmatpush.msra.mxu1 %v4619_v38  ;;  %703 = vmatpush.msrb.mxu3 %v4535_v9 }
 0x14f   :  { %v524_v33 = vpop.permute.xlu1 %523  ;;  %1342 = vmatpush.msra.mxu1 %v4623_v40  ;;  %704 = vmatpush.msrb.mxu3 %v4542_v14 }
 0x150   :  { %v528_v41 = vmul.f32 %v524_v33, %v4602_v28  ;;  %v3936_v28 = vld [vmem:[#allocation4 + $0x8] sm:$0xff] }
 0x151   :  { %1343 = vmatpush.msra.mxu1 %v4629_v24  ;;  %705 = vmatpush.msrb.mxu3 %v4548_v16 }
 0x152   :  { %v4740_v54 = vadd.f32 %v528_v41, %v520_v34  ;;  %3720 = vmatmul.msk.bf16.gmra.mxu0 %vm197_vm0, %v3936_v28  ;;  %3728 = vmatmul.msk.bf16.gmra.mxu1 %vm197_vm0, %v3936_v28 }
 0x153   :  { %1344 = vmatpush.msra.mxu1 %v4637_v44  ;;  %706 = vmatpush.msrb.mxu3 %v4554_v18 }
 0x154   :  { %535 = vrot.lane.b32.xlu2 %v4740_v54, %s4476_s1 }
 0x155   :  { %1345 = vmatpush.msra.mxu1 %v4649_v48  ;;  %707 = vmatpush.msrb.mxu3 %v4561_v20 }
 0x157   :  { %1346 = vmatpush.msra.mxu1 %v4661_v53  ;;  %708 = vmatpush.msrb.mxu3 %v4567_v22 }
 0x159   :  { %1347 = vmatpush.msra.mxu1 %v4673_v58  ;;  %709 = vmatpush.msrb.mxu3 %v4573_v23 }
 0x1a6   :  { %v534_v1 = vpop.permute.xlu2 %533 }
 0x1a7   :  { %3745 = vmatmul.msk.f32.vlgmr.msra.gmra.mxu2 %vm321_vm1, %v534_v1  ;;  %3747 = vmatmul.msk.f32.vlgmr.msra.gmra.mxu3 %vm321_vm1, %v534_v1 }
 0x1a8   :  { %729 = vmatpush.msra.mxu2 %v4611_v35  ;;  %752 = vmatpush.msra.mxu3 %v4613_v36 }
 0x1aa   :  { %730 = vmatpush.msra.mxu2 %v4615_v37  ;;  %753 = vmatpush.msra.mxu3 %v4619_v38 }
 0x1ac   :  { %731 = vmatpush.msra.mxu2 %v4621_v39  ;;  %754 = vmatpush.msra.mxu3 %v4623_v40 }
 0x1ae   :  { %v536_v2 = vpop.permute.xlu2 %535  ;;  %732 = vmatpush.msra.mxu2 %v4627_v21  ;;  %755 = vmatpush.msra.mxu3 %v4629_v24 }
 0x1af   :  { %3746 = vmatmul.msk.f32.gmra.mxu2 %vm321_vm1, %v536_v2  ;;  %3748 = vmatmul.msk.f32.gmra.mxu3 %vm321_vm1, %v536_v2 }
 0x1b0   :  { %733 = vmatpush.msra.mxu2 %v4635_v43  ;;  %756 = vmatpush.msra.mxu3 %v4637_v44 }
 0x1b2   :  { %734 = vmatpush.msra.mxu2 %v4647_v47  ;;  %757 = vmatpush.msra.mxu3 %v4649_v48 }
 0x1b4   :  { %735 = vmatpush.msra.mxu2 %v4659_v52  ;;  %758 = vmatpush.msra.mxu3 %v4661_v53 }
 0x1b6   :  { %736 = vmatpush.msra.mxu2 %v4671_v57  ;;  %759 = vmatpush.msra.mxu3 %v4673_v58 }
 0x1b7   :  { %3751 = vmatmul.msk.f32.vlgmr.msrb.gmra.mxu2 %vm321_vm1, %v534_v1  ;;  %3753 = vmatmul.msk.f32.vlgmr.msrb.gmra.mxu3 %vm321_vm1, %v534_v1 }
 0x1b8   :  { %849 = vmatpush.msrb.mxu2 %v4633_v42  ;;  %872 = vmatpush.msrb.mxu3 %v4643_v45  ;;  %v432_v42 = vpop.f32.mrf.mxu2 }
 0x1ba   :  { %850 = vmatpush.msrb.mxu2 %v4645_v46  ;;  %873 = vmatpush.msrb.mxu3 %v4655_v49 }
 0x1bc   :  { %851 = vmatpush.msrb.mxu2 %v4657_v51  ;;  %874 = vmatpush.msrb.mxu3 %v4667_v55 }
 0x1be   :  { %852 = vmatpush.msrb.mxu2 %v4669_v56  ;;  %875 = vmatpush.msrb.mxu3 %v4679_v59  ;;  %v124_v56 = vld [vmem:[#allocation9 + $0x522] ss:$8 sm:$0x3] }
 0x1bf   :  { %3752 = vmatmul.msk.f32.gmra.mxu2 %vm321_vm1, %v536_v2  ;;  %3754 = vmatmul.msk.f32.gmra.mxu3 %vm321_vm1, %v536_v2  ;;  %v4820_v59 = vperm.slane %v124_v56, 0 }
 0x1c0   :  { %853 = vmatpush.msrb.mxu2 %v4681_v60  ;;  %876 = vmatpush.msrb.mxu3 %v4691_v62  ;;  %v435_v49 = vpop.f32.mrf.mxu2  ;;  %v455_v60 = vpop.f32.mrf.mxu3 }
 0x1c1   :  { %5910 = vst [vmem:[#allocation19_spill] sm:$0xff] %v4820_v59 }
 0x1c2   :  { %854 = vmatpush.msrb.mxu2 %v4693_v63  ;;  %877 = vmatpush.msrb.mxu3 %v4700_v6 }
 0x1c4   :  { %855 = vmatpush.msrb.mxu2 %v4702_v10  ;;  %878 = vmatpush.msrb.mxu3 %v4711_v27 }
 0x1c6   :  { %856 = vmatpush.msrb.mxu2 %v4713_v30  ;;  %879 = vmatpush.msrb.mxu3 %v4728_v61 }
 0x1c8   :  { %v4826_v30 = vpop.f32.mrf.mxu3 }
 0x1cf   :  { %v236_v45 = vpop.f32.mrf.mxu0  ;;  %v285_v10 = vpop.f32.mrf.mxu1 }
 0x1d0   :  { %v237_v46 = vadd.f32 %v236_v45, %v4585_v26  ;;  %v286_v11 = vadd.f32 %v285_v10, %v4588_v29 }
 0x1d2   :  { %326 = vst.msk [vmem:[#allocation2 + $0x28] sm:$0xff] %vm321_vm1, %v286_v11 }
 0x1d7   :  { %v238_v51 = vpop.f32.mrf.mxu0  ;;  %v287_v41 = vpop.f32.mrf.mxu1 }
 0x1d8   :  { %v239_v55 = vadd.f32 %v238_v51, %v4585_v26  ;;  %v288_v28 = vadd.f32 %v287_v41, %v4588_v29  ;;  %v4832_v41 = vperm.slane %v124_v56, 1 }
 0x1da   :  { %328 = vst.msk [vmem:[#allocation2 + $0x38] sm:$0xff] %vm321_vm1, %v288_v28 }
 0x22a   :  { %v558_v62 = vpop.f32.mrf.mxu2  ;;  %v581_v45 = vpop.f32.mrf.mxu3 }
 0x22b   :  { %v559_v63 = vadd.f32 %v558_v62, %v4820_v59 }
 0x22d   :  { %v587_v3 = vadd.f32 %v559_v63, %v432_v42 }
 0x22f   :  { %v3749_v6 = vmul.f32 -1.442695, %v587_v3 }
 0x231   :  { %3982 = vpow2.f32 %v3749_v6 }
 0x232   :  { %v561_v13 = vpop.f32.mrf.mxu2 }
 0x233   :  { %v562_v27 = vadd.f32 %v561_v13, %v4820_v59 }
 0x235   :  { %v588_v61 = vadd.f32 %v562_v27, %v435_v49 }
 0x237   :  { %v3983_v32 = vpop.eup %3982  ;;  %v3750_v33 = vmul.f32 -1.442695, %v588_v61 }
 0x238   :  { %v595_v34 = vadd.f32 1.0, %v3983_v32 }
 0x239   :  { %3984 = vpow2.f32 %v3750_v33 }
 0x23a   :  { %3986 = vrcp.f32 %v595_v34  ;;  %v688_v1 = vpop.f32.mrf.mxu2  ;;  %v608_v11 = vand.u32 2147483648, %v595_v34  ;;  %v606_v32 = vand.u32 2147483647, %v595_v34  ;;  %vm602_vm11 = vweird.f32 %v595_v34 }
 0x23b   :  { %v767_v2 = vadd.f32 %v688_v1, %v237_v46  ;;  %v4830_v46 = vld [vmem:[#allocation9 + $0x523] ss:$0 sm:$0xff] }
 0x23c   :  { %vm607_vm13 = vcmp.eq.f32.partialorder %v606_v32, 8.507059e+37 }
 0x23d   :  { %v3759_v42 = vmul.f32 -1.442695, %v767_v2  ;;  %v584_v2 = vpop.f32.mrf.mxu3 }
 0x23f   :  { %v3985_v51 = vpop.eup %3984  ;;  %3988 = vpow2.f32 %v3759_v42  ;;  %v627_v42 = vadd.f32 %v455_v60, %v4830_v46 }
 0x240   :  { %v3987_v62 = vpop.eup %3986  ;;  %v596_v63 = vadd.f32 1.0, %v3985_v51 }
 0x241   :  { %v598_v3 = vmul.f32 %v3987_v62, %v595_v34  ;;  %vm603_vm10 = vweird.f32 %v3987_v62 }
 0x242   :  { %3990 = vrcp.f32 %v596_v63  ;;  %v691_v49 = vpop.f32.mrf.mxu2  ;;  %vm604_vm12 = vmor %vm602_vm11, %vm603_vm10  ;;  %vm617_vm15 = vweird.f32 %v596_v63 }
 0x243   :  { %v768_v6 = vadd.f32 %v691_v49, %v239_v55  ;;  %v599_v10 = vsub.f32 1.0, %v598_v3  ;;  %v609_v55 = vor.u32 1.1754944e-38, %v608_v11 }
 0x245   :  { %v3989_v13 = vpop.eup %3988  ;;  %v3760_v27 = vmul.f32 -1.442695, %v768_v6  ;;  %v600_v61 = vmul.f32 %v3987_v62, %v599_v10  ;;  %v582_v6 = vadd.f32 %v581_v45, %v4832_v41  ;;  %v628_v45 = vadd.f32 %v4826_v30, %v4830_v46 }
 0x246   :  { %v775_v33 = vadd.f32 1.0, %v3989_v13  ;;  %v623_v13 = vand.u32 2147483648, %v596_v63 }
 0x247   :  { %3992 = vpow2.f32 %v3760_v27  ;;  %v601_v28 = vadd.f32 %v3987_v62, %v600_v61  ;;  %v621_v61 = vand.u32 2147483647, %v596_v63 }
 0x248   :  { %v3991_v1 = vpop.eup %3990  ;;  %3994 = vrcp.f32 %v775_v33  ;;  %vm782_vm5 = vweird.f32 %v775_v33 }
 0x249   :  { %v613_v51 = vmul.f32 %v3991_v1, %v596_v63  ;;  %v605_v3 = vsel %vm604_vm12, %v3987_v62, %v601_v28  ;;  %vm618_vm14 = vweird.f32 %v3991_v1  ;;  %v624_v62 = vor.u32 1.1754944e-38, %v623_v13 }
 0x24a   :  { %v4835_v49 = vsel %vm607_vm13, %v609_v55, %v605_v3  ;;  %vm619_vm2 = vmor %vm617_vm15, %vm618_vm14  ;;  %vm622_vm3 = vcmp.eq.f32.partialorder %v621_v61, 8.507059e+37  ;;  %v585_v55 = vadd.f32 %v584_v2, %v4832_v41  ;;  %v788_v3 = vand.u32 2147483648, %v775_v33  ;;  %v668_v61 = vld [vmem:[#allocation2 + $0x28] sm:$0xff] }
 0x24b   :  { %v614_v10 = vsub.f32 1.0, %v613_v51  ;;  %v629_v56 = vmul.f32 %v627_v42, %v4835_v49  ;;  %v711_v51 = vpop.f32.mrf.mxu3 }
 0x24c   :  { %v807_v30 = vadd.f32 %v711_v51, %v4595_v50 }
 0x24d   :  { %v3993_v27 = vpop.eup %3992  ;;  %v615_v34 = vmul.f32 %v3991_v1, %v614_v10  ;;  %v631_v29 = vadd.f32 %v629_v56, %v582_v6 }
 0x24e   :  { %v3995_v59 = vpop.eup %3994  ;;  %v776_v11 = vadd.f32 1.0, %v3993_v27 }
 0x24f   :  { %v616_v26 = vadd.f32 %v3991_v1, %v615_v34  ;;  %v778_v60 = vmul.f32 %v3995_v59, %v775_v33  ;;  %3996 = vtanh.f32 %v631_v29  ;;  %vm783_vm4 = vweird.f32 %v3995_v59 }
 0x250   :  { %3998 = vrcp.f32 %v776_v11  ;;  %v786_v29 = vand.u32 2147483647, %v775_v33  ;;  %vm784_vm6 = vmor %vm782_vm5, %vm783_vm4  ;;  %vm797_vm9 = vweird.f32 %v776_v11 }
 0x251   :  { %v620_v32 = vsel %vm619_vm2, %v3991_v1, %v616_v26  ;;  %v779_v28 = vsub.f32 1.0, %v778_v60  ;;  %v789_v26 = vor.u32 1.1754944e-38, %v788_v3 }
 0x252   :  { %v4842_v42 = vsel %vm622_vm3, %v624_v62, %v620_v32  ;;  %vm787_vm7 = vcmp.eq.f32.partialorder %v786_v29, 8.507059e+37 }
 0x253   :  { %v630_v6 = vmul.f32 %v628_v45, %v4842_v42  ;;  %v780_v63 = vmul.f32 %v3995_v59, %v779_v28  ;;  %v803_v45 = vand.u32 2147483648, %v776_v11  ;;  %v801_v28 = vand.u32 2147483647, %v776_v11 }
 0x255   :  { %v3997_v10 = vpop.eup %3996  ;;  %v632_v56 = vadd.f32 %v630_v6, %v585_v55  ;;  %v781_v13 = vadd.f32 %v3995_v59, %v780_v63  ;;  %v714_v55 = vpop.f32.mrf.mxu3  ;;  %v804_v51 = vor.u32 1.1754944e-38, %v803_v45  ;;  %vm802_vm11 = vcmp.eq.f32.partialorder %v801_v28, 8.507059e+37 }
 0x256   :  { %v3999_v27 = vpop.eup %3998  ;;  %639 = vrot.lane.b32.xlu0 %v3997_v10, %s4476_s1  ;;  %v808_v63 = vadd.f32 %v714_v55, %v4595_v50  ;;  %v670_v10 = vld [vmem:[#allocation2 + $0x38] sm:$0xff]  ;;  %v636_v45 = vsub.f32 1.0, %v4842_v42 }
 0x257   :  { %4000 = vtanh.f32 %v632_v56  ;;  %v785_v1 = vsel %vm784_vm6, %v3995_v59, %v781_v13  ;;  %v793_v2 = vmul.f32 %v3999_v27, %v776_v11  ;;  %vm798_vm8 = vweird.f32 %v3999_v27 }
 0x258   :  { %v790_v34 = vsel %vm787_vm7, %v789_v26, %v785_v1  ;;  %vm799_vm10 = vmor %vm797_vm9, %vm798_vm8  ;;  %v648_v1 = vpop.permute.xlu1 %647 }
 0x259   :  { %v809_v60 = vmul.f32 %v807_v30, %v790_v34  ;;  %v794_v62 = vsub.f32 1.0, %v793_v2 }
 0x25b   :  { %v795_v32 = vmul.f32 %v3999_v27, %v794_v62  ;;  %v811_v33 = vadd.f32 %v809_v60, %v668_v61 }
 0x25d   :  { %v4001_v6 = vpop.eup %4000  ;;  %v796_v3 = vadd.f32 %v3999_v27, %v795_v32  ;;  %4002 = vtanh.f32 %v811_v33 }
 0x25e   :  { %649 = vrot.lane.b32.xlu0 %v4709_v25, %s4476_s1  ;;  %641 = vrot.lane.b32.xlu2 %v4001_v6, %s4476_s1  ;;  %v635_v25 = vsub.f32 1.0, %v4835_v49 }
 0x25f   :  { %v800_v59 = vsel %vm799_vm10, %v3999_v27, %v796_v3  ;;  %v653_v27 = vmul.f32 %v648_v1, %v4835_v49 }
 0x260   :  { %v805_v29 = vsel %vm802_vm11, %v804_v51, %v800_v59  ;;  %v815_v51 = vsub.f32 1.0, %v790_v34 }
 0x261   :  { %v810_v56 = vmul.f32 %v808_v63, %v805_v29  ;;  %v816_v62 = vsub.f32 1.0, %v805_v29  ;;  %v828_v6 = vmul.f32 %v805_v29, %v4740_v54  ;;  %v3937_v54 = vld [vmem:[#allocation4 + $0x10] sm:$0xff] }
 0x262   :  { %3721 = vmatmul.msk.bf16.gmra.mxu0 %vm197_vm0, %v3937_v54  ;;  %3729 = vmatmul.msk.bf16.gmra.mxu1 %vm197_vm0, %v3937_v54 }
 0x263   :  { %v4003_v13 = vpop.eup %4002  ;;  %v812_v26 = vadd.f32 %v810_v56, %v670_v10  ;;  %v827_v10 = vmul.f32 %v790_v34, %v4715_v31 }
 0x264   :  { %819 = vrot.lane.b32.xlu1 %v4003_v13, %s4476_s1 }
 0x265   :  { %4004 = vtanh.f32 %v812_v26 }
 0x26b   :  { %v4005_v11 = vpop.eup %4004 }
 0x26c   :  { %821 = vrot.lane.b32.xlu2 %v4005_v11, %s4476_s1 }
 0x2b8   :  { %v642_v30 = vpop.permute.xlu2 %641 }
 0x2b9   :  { %v646_v33 = vmul.f32 %v642_v30, %v636_v45 }
 0x2c6   :  { %v822_v60 = vpop.permute.xlu2 %821 }
 0x2c7   :  { %v826_v32 = vmul.f32 %v822_v60, %v816_v62 }
 0x2c8   :  { %v640_v2 = vpop.permute.xlu0 %639 }
 0x2c9   :  { %v645_v61 = vmul.f32 %v640_v2, %v635_v25  ;;  %v4864_v49 = vadd.f32 %v828_v6, %v826_v32 }
 0x2cb   :  { %v4855_v50 = vadd.f32 %v653_v27, %v645_v61 }
 0x2cd   :  { %659 = vrot.lane.b32.xlu0 %v4855_v50, %s4476_s1 }
 0x2d0   :  { %v650_v28 = vpop.permute.xlu0 %649 }
 0x2d1   :  { %v654_v55 = vmul.f32 %v650_v28, %v4842_v42 }
 0x2d3   :  { %v4862_v3 = vadd.f32 %v654_v55, %v646_v33 }
 0x2d5   :  { %661 = vrot.lane.b32.xlu1 %v4862_v3, %s4476_s1  ;;  %835 = vrot.lane.b32.xlu0 %v4864_v49, %s4476_s1 }
 0x2d6   :  { %v820_v59 = vpop.permute.xlu1 %819 }
 0x2d7   :  { %v825_v63 = vmul.f32 %v820_v59, %v815_v51 }
 0x2d9   :  { %v4871_v56 = vadd.f32 %v827_v10, %v825_v63 }
 0x2db   :  { %833 = vrot.lane.b32.xlu2 %v4871_v56, %s4476_s1 }
 0x33f   :  { %v660_v42 = vpop.permute.xlu0 %659 }
 0x340   :  { %665 = vst.msk [vmem:[#allocation3] sm:$0xff] %vm321_vm1, %v660_v42  ;;  %3755 = vmatmul.msk.f32.vlgmr.msra.gmra.mxu2 %vm321_vm1, %v660_v42  ;;  %3757 = vmatmul.msk.f32.vlgmr.msra.gmra.mxu3 %vm321_vm1, %v660_v42 }
 0x341   :  { %973 = vmatpush.msra.mxu2 %v4523_v0  ;;  %996 = vmatpush.msra.mxu3 %v4533_v8  ;;  %v834_v0 = vpop.permute.xlu2 %833 }
 0x343   :  { %974 = vmatpush.msra.mxu2 %v4526_v4  ;;  %997 = vmatpush.msra.mxu3 %v4535_v9 }
 0x345   :  { %975 = vmatpush.msra.mxu2 %v4528_v5  ;;  %998 = vmatpush.msra.mxu3 %v4542_v14  ;;  %v4921_v5 = vld [vmem:[#allocation9 + $0x90] sm:$0xff] }
 0x347   :  { %v662_v31 = vpop.permute.xlu1 %661  ;;  %976 = vmatpush.msra.mxu2 %v4531_v7  ;;  %999 = vmatpush.msra.mxu3 %v4548_v16  ;;  %v836_v4 = vpop.permute.xlu0 %835  ;;  %v4925_v7 = vld [vmem:[#allocation9 + $0x80] sm:$0xff] }
 0x348   :  { %666 = vst.msk [vmem:[#allocation3 + $0x8] sm:$0xff] %vm321_vm1, %v662_v31  ;;  %3756 = vmatmul.msk.f32.gmra.mxu2 %vm321_vm1, %v662_v31  ;;  %3758 = vmatmul.msk.f32.gmra.mxu3 %vm321_vm1, %v662_v31 }
 0x349   :  { %977 = vmatpush.msra.mxu2 %v4540_v12  ;;  %1000 = vmatpush.msra.mxu3 %v4554_v18  ;;  %v4929_v12 = vld [vmem:[#allocation9 + $0x70] sm:$0xff] }
 0x34b   :  { %978 = vmatpush.msra.mxu2 %v4546_v15  ;;  %1001 = vmatpush.msra.mxu3 %v4561_v20 }
 0x34d   :  { %979 = vmatpush.msra.mxu2 %v4552_v17  ;;  %1002 = vmatpush.msra.mxu3 %v4567_v22 }
 0x34f   :  { %980 = vmatpush.msra.mxu2 %v4558_v19  ;;  %1003 = vmatpush.msra.mxu3 %v4573_v23 }
 0x350   :  { %3761 = vmatmul.msk.f32.vlgmr.msrb.gmra.mxu2 %vm321_vm1, %v834_v0  ;;  %3763 = vmatmul.msk.f32.vlgmr.msrb.gmra.mxu3 %vm321_vm1, %v834_v0 }
 0x351   :  { %1023 = vmatpush.msrb.mxu2 %v4611_v35  ;;  %1046 = vmatpush.msrb.mxu3 %v4613_v36  ;;  %v4933_v35 = vld [vmem:[#allocation9 + $0x60] sm:$0xff] }
 0x353   :  { %1024 = vmatpush.msrb.mxu2 %v4615_v37  ;;  %1047 = vmatpush.msrb.mxu3 %v4619_v38 }
 0x355   :  { %1025 = vmatpush.msrb.mxu2 %v4621_v39  ;;  %1048 = vmatpush.msrb.mxu3 %v4623_v40  ;;  %v290_v39 = vpop.f32.mrf.mxu1 }
 0x357   :  { %1026 = vmatpush.msrb.mxu2 %v4627_v21  ;;  %1049 = vmatpush.msrb.mxu3 %v4629_v24 }
 0x358   :  { %3762 = vmatmul.msk.f32.gmra.mxu2 %vm321_vm1, %v836_v4  ;;  %3764 = vmatmul.msk.f32.gmra.mxu3 %vm321_vm1, %v836_v4 }
 0x359   :  { %1027 = vmatpush.msrb.mxu2 %v4635_v43  ;;  %1050 = vmatpush.msrb.mxu3 %v4637_v44 }
 0x35b   :  { %1028 = vmatpush.msrb.mxu2 %v4647_v47  ;;  %1051 = vmatpush.msrb.mxu3 %v4649_v48 }
 0x35d   :  { %1029 = vmatpush.msrb.mxu2 %v4659_v52  ;;  %1052 = vmatpush.msrb.mxu3 %v4661_v53 }
 0x35f   :  { %1030 = vmatpush.msrb.mxu2 %v4671_v57  ;;  %1053 = vmatpush.msrb.mxu3 %v4673_v58 }
 0x360   :  { %3767 = vmatmul.msk.f32.vlgmr.msra.gmra.mxu2 %vm321_vm1, %v834_v0  ;;  %3769 = vmatmul.msk.f32.vlgmr.msra.gmra.mxu3 %vm321_vm1, %v834_v0 }
 0x361   :  { %1267 = vmatpush.msra.mxu2 %v4921_v5  ;;  %1290 = vmatpush.msra.mxu3 %v4533_v8  ;;  %v4939_v8 = vld [vmem:[#allocation9 + $0x50] sm:$0xff] }
 0x363   :  { %1268 = vmatpush.msra.mxu2 %v4925_v7  ;;  %1291 = vmatpush.msra.mxu3 %v4535_v9  ;;  %v241_v9 = vpop.f32.mrf.mxu0 }
 0x365   :  { %1269 = vmatpush.msra.mxu2 %v4929_v12  ;;  %1292 = vmatpush.msra.mxu3 %v4542_v14  ;;  %v5911_v14 = vld [vmem:[#allocation17_spill] sm:$0xff] }
 0x367   :  { %1270 = vmatpush.msra.mxu2 %v4933_v35  ;;  %1293 = vmatpush.msra.mxu3 %v4548_v16  ;;  %v242_v16 = vadd.f32 %v241_v9, %v5911_v14 }
 0x368   :  { %3768 = vmatmul.msk.f32.gmra.mxu2 %vm321_vm1, %v836_v4  ;;  %3770 = vmatmul.msk.f32.gmra.mxu3 %vm321_vm1, %v836_v4 }
 0x369   :  { %1271 = vmatpush.msra.mxu2 %v4939_v8  ;;  %1294 = vmatpush.msra.mxu3 %v4554_v18 }
 0x36b   :  { %1272 = vmatpush.msra.mxu2 %v4546_v15  ;;  %1295 = vmatpush.msra.mxu3 %v4561_v20  ;;  %v243_v36 = vpop.f32.mrf.mxu0  ;;  %v5912_v20 = vld [vmem:[#allocation19_spill] sm:$0xff] }
 0x36c   :  { %v244_v37 = vadd.f32 %v243_v36, %v5911_v14 }
 0x36d   :  { %1273 = vmatpush.msra.mxu2 %v4552_v17  ;;  %1296 = vmatpush.msra.mxu3 %v4567_v22  ;;  %v292_v22 = vpop.f32.mrf.mxu1 }
 0x36f   :  { %1274 = vmatpush.msra.mxu2 %v4558_v19  ;;  %1297 = vmatpush.msra.mxu3 %v4573_v23  ;;  %v5913_v19 = vld [vmem:[#allocation18_spill] sm:$0xff] }
 0x370   :  { %v291_v43 = vadd.f32 %v290_v39, %v5913_v19  ;;  %v293_v23 = vadd.f32 %v292_v22, %v5913_v19 }
 0x372   :  { %330 = vst.msk [vmem:[#allocation2 + $0x48] sm:$0xff] %vm321_vm1, %v291_v43 }
 0x373   :  { %332 = vst.msk [vmem:[#allocation2 + $0x58] sm:$0xff] %vm321_vm1, %v293_v23 }
 0x3c3   :  { %v738_v38 = vpop.f32.mrf.mxu2  ;;  %v761_v15 = vpop.f32.mrf.mxu3 }
 0x3c4   :  { %v927_v63 = vadd.f32 %v761_v15, %v4830_v46 }
 0x3cb   :  { %v741_v18 = vpop.f32.mrf.mxu2  ;;  %v764_v48 = vpop.f32.mrf.mxu3 }
 0x3d3   :  { %v858_v40 = vpop.f32.mrf.mxu2  ;;  %v881_v26 = vpop.f32.mrf.mxu3 }
 0x3d4   :  { %v859_v21 = vadd.f32 %v858_v40, %v5912_v20  ;;  %v882_v31 = vadd.f32 %v881_v26, %v4832_v41 }
 0x3d6   :  { %v887_v17 = vadd.f32 %v859_v21, %v738_v38 }
 0x3d8   :  { %v3765_v24 = vmul.f32 -1.442695, %v887_v17  ;;  %v928_v17 = vadd.f32 %v764_v48, %v4830_v46  ;;  %v4964_v46 = vld [vmem:[#allocation9 + $0x521] ss:$0 sm:$0xff] }
 0x3da   :  { %4006 = vpow2.f32 %v3765_v24 }
 0x3db   :  { %v861_v44 = vpop.f32.mrf.mxu2  ;;  %v884_v59 = vpop.f32.mrf.mxu3 }
 0x3dc   :  { %v862_v47 = vadd.f32 %v861_v44, %v5912_v20  ;;  %v885_v43 = vadd.f32 %v884_v59, %v4832_v41 }
 0x3de   :  { %v888_v52 = vadd.f32 %v862_v47, %v741_v18 }
 0x3e0   :  { %v4007_v53 = vpop.eup %4006  ;;  %v3766_v57 = vmul.f32 -1.442695, %v888_v52 }
 0x3e1   :  { %v895_v58 = vadd.f32 1.0, %v4007_v53 }
 0x3e2   :  { %4008 = vpow2.f32 %v3766_v57 }
 0x3e3   :  { %4010 = vrcp.f32 %v895_v58  ;;  %v982_v34 = vpop.f32.mrf.mxu2  ;;  %v908_v60 = vand.u32 2147483648, %v895_v58  ;;  %v906_v32 = vand.u32 2147483647, %v895_v58  ;;  %vm902_vm13 = vweird.f32 %v895_v58  ;;  %v1005_v44 = vpop.f32.mrf.mxu3 }
 0x3e4   :  { %v1061_v29 = vadd.f32 %v982_v34, %v242_v16  ;;  %v1101_v48 = vadd.f32 %v4964_v46, %v1005_v44 }
 0x3e5   :  { %v909_v51 = vor.u32 1.1754944e-38, %v908_v60  ;;  %vm907_vm15 = vcmp.eq.f32.partialorder %v906_v32, 8.507059e+37 }
 0x3e6   :  { %v3775_v13 = vmul.f32 -1.442695, %v1061_v29 }
 0x3e8   :  { %v4009_v11 = vpop.eup %4008  ;;  %4012 = vpow2.f32 %v3775_v13 }
 0x3e9   :  { %v4011_v30 = vpop.eup %4010  ;;  %v896_v1 = vadd.f32 1.0, %v4009_v11 }
 0x3ea   :  { %v898_v25 = vmul.f32 %v4011_v30, %v895_v58  ;;  %vm903_vm12 = vweird.f32 %v4011_v30 }
 0x3eb   :  { %4014 = vrcp.f32 %v896_v1  ;;  %v985_v2 = vpop.f32.mrf.mxu2  ;;  %vm904_vm14 = vmor %vm902_vm13, %vm903_vm12  ;;  %v923_v9 = vand.u32 2147483648, %v896_v1  ;;  %v921_v38 = vand.u32 2147483647, %v896_v1  ;;  %vm917_vm3 = vweird.f32 %v896_v1  ;;  %v1008_v32 = vpop.f32.mrf.mxu3 }
 0x3ec   :  { %v899_v27 = vsub.f32 1.0, %v898_v25  ;;  %v1062_v61 = vadd.f32 %v985_v2, %v244_v37  ;;  %v962_v25 = vld [vmem:[#allocation2 + $0x48] sm:$0xff] }
 0x3ed   :  { %v924_v21 = vor.u32 1.1754944e-38, %v923_v9  ;;  %vm922_vm5 = vcmp.eq.f32.partialorder %v921_v38, 8.507059e+37  ;;  %v3938_v38 = vld [vmem:[#allocation4 + $0x18] sm:$0xff] }
 0x3ee   :  { %v4013_v62 = vpop.eup %4012  ;;  %v900_v45 = vmul.f32 %v4011_v30, %v899_v27  ;;  %v3776_v28 = vmul.f32 -1.442695, %v1062_v61  ;;  %3722 = vmatmul.msk.bf16.gmra.mxu0 %vm197_vm0, %v3938_v38  ;;  %3730 = vmatmul.msk.bf16.gmra.mxu1 %vm197_vm0, %v3938_v38 }
 0x3ef   :  { %v1069_v33 = vadd.f32 1.0, %v4013_v62 }
 0x3f0   :  { %v901_v55 = vadd.f32 %v4011_v30, %v900_v45  ;;  %4016 = vpow2.f32 %v3776_v28 }
 0x3f1   :  { %v4015_v6 = vpop.eup %4014  ;;  %4018 = vrcp.f32 %v1069_v33  ;;  %v1082_v47 = vand.u32 2147483648, %v1069_v33  ;;  %v1080_v57 = vand.u32 2147483647, %v1069_v33  ;;  %vm1076_vm7 = vweird.f32 %v1069_v33 }
 0x3f2   :  { %v905_v10 = vsel %vm904_vm14, %v4011_v30, %v901_v55  ;;  %v913_v54 = vmul.f32 %v4015_v6, %v896_v1  ;;  %vm918_vm2 = vweird.f32 %v4015_v6 }
 0x3f3   :  { %v4958_v42 = vsel %vm907_vm15, %v909_v51, %v905_v10  ;;  %vm919_vm4 = vmor %vm917_vm3, %vm918_vm2  ;;  %v1083_v26 = vor.u32 1.1754944e-38, %v1082_v47  ;;  %vm1081_vm9 = vcmp.eq.f32.partialorder %v1080_v57, 8.507059e+37  ;;  %v1102_v51 = vadd.f32 %v4964_v46, %v1008_v32  ;;  %v964_v10 = vld [vmem:[#allocation2 + $0x58] sm:$0xff]  ;;  %v5055_v32 = vld [vmem:[#allocation9 + $0xa8] sm:$0xff] }
 0x3f4   :  { %v929_v0 = vmul.f32 %v927_v63, %v4958_v42  ;;  %v914_v4 = vsub.f32 1.0, %v913_v54  ;;  %v3942_v57 = vld [vmem:[#allocation4 + $0x38] sm:$0xff] }
 0x3f6   :  { %v4017_v16 = vpop.eup %4016  ;;  %v931_v36 = vadd.f32 %v929_v0, %v882_v31  ;;  %v915_v37 = vmul.f32 %v4015_v6, %v914_v4 }
 0x3f7   :  { %v4019_v18 = vpop.eup %4018  ;;  %v1070_v39 = vadd.f32 1.0, %v4017_v16 }
 0x3f8   :  { %4020 = vtanh.f32 %v931_v36  ;;  %v916_v15 = vadd.f32 %v4015_v6, %v915_v37  ;;  %v1072_v40 = vmul.f32 %v4019_v18, %v1069_v33  ;;  %vm1077_vm6 = vweird.f32 %v4019_v18 }
 0x3f9   :  { %4022 = vrcp.f32 %v1070_v39  ;;  %vm1078_vm8 = vmor %vm1076_vm7, %vm1077_vm6  ;;  %v1097_v61 = vand.u32 2147483648, %v1070_v39  ;;  %v1095_v62 = vand.u32 2147483647, %v1070_v39  ;;  %vm1091_vm11 = vweird.f32 %v1070_v39 }
 0x3fa   :  { %v920_v24 = vsel %vm919_vm4, %v4015_v6, %v916_v15  ;;  %v1073_v22 = vsub.f32 1.0, %v1072_v40  ;;  %v947_v40 = vmul.f32 %v4958_v42, %v4855_v50 }
 0x3fb   :  { %v925_v23 = vsel %vm922_vm5, %v924_v21, %v920_v24  ;;  %v1098_v55 = vor.u32 1.1754944e-38, %v1097_v61  ;;  %vm1096_vm13 = vcmp.eq.f32.partialorder %v1095_v62, 8.507059e+37  ;;  %v5043_v61 = vld [vmem:[#allocation9 + $0xc8] sm:$0xff]  ;;  %v5049_v62 = vld [vmem:[#allocation9 + $0xb8] sm:$0xff] }
 0x3fc   :  { %v930_v52 = vmul.f32 %v928_v17, %v925_v23  ;;  %v1074_v53 = vmul.f32 %v4019_v18, %v1073_v22  ;;  %v936_v4 = vsub.f32 1.0, %v925_v23  ;;  %v948_v36 = vmul.f32 %v925_v23, %v4862_v3  ;;  %v3939_v3 = vld [vmem:[#allocation4 + $0x20] sm:$0xff] }
 0x3fe   :  { %v4021_v58 = vpop.eup %4020  ;;  %v932_v34 = vadd.f32 %v930_v52, %v885_v43  ;;  %v1075_v29 = vadd.f32 %v4019_v18, %v1074_v53  ;;  %3723 = vmatmul.msk.bf16.gmra.mxu0 %vm197_vm0, %v3939_v3  ;;  %3731 = vmatmul.msk.bf16.gmra.mxu1 %vm197_vm0, %v3939_v3  ;;  %v3940_v53 = vld [vmem:[#allocation4 + $0x28] sm:$0xff] }
 0x3ff   :  { %v4023_v13 = vpop.eup %4022  ;;  %939 = vrot.lane.b32.xlu1 %v4021_v58, %s4476_s1  ;;  %v5007_v58 = vld [vmem:[#allocation9 + $0x110] sm:$0xff] }
 0x400   :  { %4024 = vtanh.f32 %v932_v34  ;;  %v1079_v11 = vsel %vm1078_vm8, %v4019_v18, %v1075_v29  ;;  %v1087_v30 = vmul.f32 %v4023_v13, %v1070_v39  ;;  %vm1092_vm10 = vweird.f32 %v4023_v13  ;;  %v5010_v34 = vld [vmem:[#allocation9 + $0x118] sm:$0xff]  ;;  %v5013_v29 = vld [vmem:[#allocation9 + $0x100] sm:$0xff] }
 0x401   :  { %v1084_v1 = vsel %vm1081_vm9, %v1083_v26, %v1079_v11  ;;  %vm1093_vm12 = vmor %vm1091_vm11, %vm1092_vm10  ;;  %v935_v18 = vsub.f32 1.0, %v4958_v42  ;;  %v5019_v26 = vld [vmem:[#allocation9 + $0xf0] sm:$0xff] }
 0x402   :  { %v1103_v2 = vmul.f32 %v1101_v48, %v1084_v1  ;;  %v1088_v27 = vsub.f32 1.0, %v1087_v30  ;;  %v1109_v17 = vsub.f32 1.0, %v1084_v1  ;;  %v1121_v43 = vmul.f32 %v1084_v1, %v4871_v56  ;;  %v3941_v56 = vld [vmem:[#allocation4 + $0x30] sm:$0xff]  ;;  %v5022_v48 = vld [vmem:[#allocation9 + $0xf8] sm:$0xff]  ;;  %v5025_v30 = vld [vmem:[#allocation9 + $0xe0] sm:$0xff] }
 0x403   :  { %v5028_v1 = vld [vmem:[#allocation9 + $0xe8] sm:$0xff] }
 0x404   :  { %v1089_v60 = vmul.f32 %v4023_v13, %v1088_v27  ;;  %v1105_v45 = vadd.f32 %v1103_v2, %v962_v25  ;;  %v5034_v25 = vld [vmem:[#allocation9 + $0xd0] sm:$0xff]  ;;  %v5037_v2 = vld [vmem:[#allocation9 + $0xd8] sm:$0xff]  ;;  %v5040_v27 = vld [vmem:[#allocation9 + $0xc0] sm:$0xff] }
 0x406   :  { %v4025_v28 = vpop.eup %4024  ;;  %v1090_v33 = vadd.f32 %v4023_v13, %v1089_v60  ;;  %4026 = vtanh.f32 %v1105_v45  ;;  %v5046_v60 = vld [vmem:[#allocation9 + $0xb0] sm:$0xff]  ;;  %v5052_v45 = vld [vmem:[#allocation9 + $0xa0] sm:$0xff] }
 0x407   :  { %941 = vrot.lane.b32.xlu2 %v4025_v28, %s4476_s1 }
 0x408   :  { %v1094_v6 = vsel %vm1093_vm12, %v4023_v13, %v1090_v33  ;;  %v5016_v13 = vld [vmem:[#allocation9 + $0x108] sm:$0xff] }
 0x409   :  { %v1099_v59 = vsel %vm1096_vm13, %v1098_v55, %v1094_v6 }
 0x40a   :  { %v1104_v63 = vmul.f32 %v1102_v51, %v1099_v59  ;;  %v1110_v50 = vsub.f32 1.0, %v1099_v59  ;;  %v1122_v47 = vmul.f32 %v1099_v59, %v4864_v49 }
 0x40c   :  { %v4027_v54 = vpop.eup %4026  ;;  %v1106_v31 = vadd.f32 %v1104_v63, %v964_v10 }
 0x40d   :  { %1113 = vrot.lane.b32.xlu0 %v4027_v54, %s4476_s1 }
 0x40e   :  { %4028 = vtanh.f32 %v1106_v31  ;;  %3724 = vmatmul.msk.bf16.gmra.mxu0 %vm197_vm0, %v3940_v53  ;;  %3732 = vmatmul.msk.bf16.gmra.mxu1 %vm197_vm0, %v3940_v53  ;;  %v5073_v31 = vld [vmem:[#allocation9 + $0x98] sm:$0xff] }
 0x414   :  { %v4029_v0 = vpop.eup %4028 }
 0x415   :  { %1115 = vrot.lane.b32.xlu1 %v4029_v0, %s4476_s1  ;;  %v5076_v0 = vld [vmem:[#allocation9 + $0x190] sm:$0xff] }
 0x416   :  { %5914 = vst [vmem:[#allocation17_spill] sm:$0xff] %v5076_v0 }
 0x41e   :  { %3725 = vmatmul.msk.bf16.gmra.mxu0 %vm197_vm0, %v3941_v56  ;;  %3733 = vmatmul.msk.bf16.gmra.mxu1 %vm197_vm0, %v3941_v56 }
 0x42e   :  { %3726 = vmatmul.msk.bf16.gmra.mxu0 %vm197_vm0, %v3942_v57  ;;  %3734 = vmatmul.msk.bf16.gmra.mxu1 %vm197_vm0, %v3942_v57  ;;  %v5129_v57 = vld [vmem:[#allocation9 + $0x150] sm:$0xff] }
 0x42f   :  { %5924 = vst [vmem:[#allocation28_spill] sm:$0xff] %v5129_v57 }
 0x461   :  { %v942_v9 = vpop.permute.xlu2 %941 }
 0x462   :  { %v946_v16 = vmul.f32 %v942_v9, %v936_v4  ;;  %v5079_v4 = vld [vmem:[#allocation9 + $0x198] sm:$0xff] }
 0x463   :  { %5915 = vst [vmem:[#allocation18_spill] sm:$0xff] %v5079_v4 }
 0x464   :  { %v4973_v37 = vadd.f32 %v948_v36, %v946_v16  ;;  %v5083_v36 = vld [vmem:[#allocation9 + $0x88] sm:$0xff] }
 0x466   :  { %955 = vrot.lane.b32.xlu0 %v4973_v37, %s4476_s1 }
 0x46b   :  { %v246_v28 = vpop.f32.mrf.mxu0  ;;  %v295_v33 = vpop.f32.mrf.mxu1 }
 0x46c   :  { %v5059_v55 = vadd.f32 %v246_v28, %v5911_v14  ;;  %v296_v6 = vadd.f32 %v295_v33, %v5913_v19  ;;  %v5138_v28 = vld [vmem:[#allocation9 + $0x48] sm:$0xff]  ;;  %v5141_v33 = vld [vmem:[#allocation9 + $0x140] sm:$0xff] }
 0x46d   :  { %5926 = vst [vmem:[#allocation30_spill] sm:$0xff] %v5141_v33 }
 0x46e   :  { %334 = vst.msk [vmem:[#allocation2 + $0x68] sm:$0xff] %vm321_vm1, %v296_v6  ;;  %v5144_v6 = vld [vmem:[#allocation9 + $0x148] sm:$0xff] }
 0x46f   :  { %5927 = vst [vmem:[#allocation31_spill] sm:$0xff] %v5144_v6 }
 0x471   :  { %v940_v39 = vpop.permute.xlu1 %939 }
 0x472   :  { %v945_v15 = vmul.f32 %v940_v39, %v935_v18  ;;  %v5090_v39 = vld [vmem:[#allocation9 + $0x180] sm:$0xff] }
 0x473   :  { %v248_v51 = vpop.f32.mrf.mxu0  ;;  %v297_v59 = vpop.f32.mrf.mxu1  ;;  %5917 = vst [vmem:[#allocation21_spill] sm:$0xff] %v5090_v39 }
 0x474   :  { %v4982_v21 = vadd.f32 %v947_v40, %v945_v15  ;;  %v5064_v63 = vadd.f32 %v248_v51, %v5911_v14  ;;  %v298_v10 = vadd.f32 %v297_v59, %v5913_v19  ;;  %v5093_v15 = vld [vmem:[#allocation9 + $0x188] sm:$0xff]  ;;  %v5097_v40 = vld [vmem:[#allocation9 + $0x78] sm:$0xff]  ;;  %v5148_v51 = vld [vmem:[#allocation9 + $0x30] sm:$0xff] }
 0x475   :  { %5918 = vst [vmem:[#allocation22_spill] sm:$0xff] %v5093_v15  ;;  %v5151_v59 = vld [vmem:[#allocation9 + $0x38] sm:$0xff] }
 0x476   :  { %953 = vrot.lane.b32.xlu2 %v4982_v21, %s4476_s1  ;;  %336 = vst.msk [vmem:[#allocation2 + $0x78] sm:$0xff] %vm321_vm1, %v298_v10  ;;  %v5154_v10 = vld [vmem:[#allocation9 + $0x130] sm:$0xff] }
 0x477   :  { %5928 = vst [vmem:[#allocation32_spill] sm:$0xff] %v5154_v10 }
 0x47b   :  { %v251_v9 = vpop.f32.mrf.mxu0  ;;  %v300_v16 = vpop.f32.mrf.mxu1 }
 0x47c   :  { %v5087_v38 = vadd.f32 %v251_v9, %v5911_v14  ;;  %v301_v18 = vadd.f32 %v300_v16, %v5913_v19  ;;  %v5160_v9 = vld [vmem:[#allocation9 + $0x20] sm:$0xff]  ;;  %v5163_v16 = vld [vmem:[#allocation9 + $0x28] sm:$0xff] }
 0x47d   :  { %5930 = vst [vmem:[#allocation34_spill] sm:$0xff] %v5160_v9 }
 0x47e   :  { %5916 = vst [vmem:[#allocation20_spill] sm:$0xff] %v5087_v38 }
 0x47f   :  { %v1114_v24 = vpop.permute.xlu0 %1113  ;;  %338 = vst.msk [vmem:[#allocation2 + $0x88] sm:$0xff] %vm321_vm1, %v301_v18  ;;  %v5166_v18 = vld [vmem:[#allocation9 + $0x120] sm:$0xff] }
 0x480   :  { %v1119_v22 = vmul.f32 %v1114_v24, %v1109_v17  ;;  %v5100_v17 = vld [vmem:[#allocation9 + $0x170] sm:$0xff]  ;;  %v5103_v24 = vld [vmem:[#allocation9 + $0x178] sm:$0xff]  ;;  %5931 = vst [vmem:[#allocation35_spill] sm:$0xff] %v5163_v16 }
 0x481   :  { %5919 = vst [vmem:[#allocation23_spill] sm:$0xff] %v5100_v17 }
 0x482   :  { %v4989_v23 = vadd.f32 %v1121_v43, %v1119_v22  ;;  %5920 = vst [vmem:[#allocation24_spill] sm:$0xff] %v5103_v24  ;;  %v5112_v22 = vld [vmem:[#allocation9 + $0x68] sm:$0xff]  ;;  %v5115_v43 = vld [vmem:[#allocation9 + $0x160] sm:$0xff] }
 0x483   :  { %5921 = vst [vmem:[#allocation25_spill] sm:$0xff] %v5115_v43 }
 0x484   :  { %1127 = vrot.lane.b32.xlu1 %v4989_v23, %s4476_s1  ;;  %5932 = vst [vmem:[#allocation36_spill] sm:$0xff] %v5166_v18 }
 0x487   :  { %v1116_v42 = vpop.permute.xlu1 %1115 }
 0x488   :  { %v1120_v44 = vmul.f32 %v1116_v42, %v1110_v50  ;;  %v5118_v50 = vld [vmem:[#allocation9 + $0x168] sm:$0xff]  ;;  %v253_v42 = vpop.f32.mrf.mxu0 }
 0x489   :  { %5922 = vst [vmem:[#allocation26_spill] sm:$0xff] %v5118_v50  ;;  %v5126_v53 = vadd.f32 %v253_v42, %v5911_v14 }
 0x48a   :  { %v4994_v52 = vadd.f32 %v1122_v47, %v1120_v44  ;;  %v302_v44 = vpop.f32.mrf.mxu1  ;;  %v5122_v47 = vld [vmem:[#allocation9 + $0x58] sm:$0xff] }
 0x48b   :  { %5923 = vst [vmem:[#allocation27_spill] sm:$0xff] %v5126_v53  ;;  %v303_v56 = vadd.f32 %v302_v44, %v5913_v19 }
 0x48c   :  { %1129 = vrot.lane.b32.xlu2 %v4994_v52, %s4476_s1 }
 0x48d   :  { %340 = vst.msk [vmem:[#allocation2 + $0x98] sm:$0xff] %vm321_vm1, %v303_v56 }
 0x490   :  { %v256_v42 = vpop.f32.mrf.mxu0 }
 0x491   :  { %v5173_v56 = vadd.f32 %v256_v42, %v5911_v14 }
 0x492   :  { %v305_v44 = vpop.f32.mrf.mxu1 }
 0x493   :  { %5934 = vst [vmem:[#allocation38_spill] sm:$0xff] %v5173_v56  ;;  %v306_v53 = vadd.f32 %v305_v44, %v5913_v19 }
 0x495   :  { %342 = vst.msk [vmem:[#allocation2 + $0xa8] sm:$0xff] %vm321_vm1, %v306_v53 }
 0x498   :  { %v258_v38 = vpop.f32.mrf.mxu0 }
 0x4d0   :  { %v954_v49 = vpop.permute.xlu2 %953 }
 0x4d1   :  { %959 = vst.msk [vmem:[#allocation3 + $0x10] sm:$0xff] %vm321_vm1, %v954_v49  ;;  %3771 = vmatmul.msk.f32.vlgmr.msrb.gmra.mxu2 %vm321_vm1, %v954_v49  ;;  %3773 = vmatmul.msk.f32.vlgmr.msrb.gmra.mxu3 %vm321_vm1, %v954_v49  ;;  %v5132_v49 = vld [vmem:[#allocation9 + $0x158] sm:$0xff] }
 0x4d2   :  { %1437 = vmatpush.msrb.mxu2 %v5007_v58  ;;  %1460 = vmatpush.msrb.mxu3 %v5010_v34  ;;  %5925 = vst [vmem:[#allocation29_spill] sm:$0xff] %v5132_v49 }
 0x4d4   :  { %1438 = vmatpush.msrb.mxu2 %v5013_v29  ;;  %1461 = vmatpush.msrb.mxu3 %v5016_v13 }
 0x4d6   :  { %1439 = vmatpush.msrb.mxu2 %v5019_v26  ;;  %1462 = vmatpush.msrb.mxu3 %v5022_v48 }
 0x4d8   :  { %v956_v11 = vpop.permute.xlu0 %955  ;;  %1440 = vmatpush.msrb.mxu2 %v5025_v30  ;;  %1463 = vmatpush.msrb.mxu3 %v5028_v1 }
 0x4d9   :  { %960 = vst.msk [vmem:[#allocation3 + $0x18] sm:$0xff] %vm321_vm1, %v956_v11  ;;  %3772 = vmatmul.msk.f32.gmra.mxu2 %vm321_vm1, %v956_v11  ;;  %3774 = vmatmul.msk.f32.gmra.mxu3 %vm321_vm1, %v956_v11  ;;  %v5135_v11 = vld [vmem:[#allocation9 + $0x40] sm:$0xff] }
 0x4da   :  { %1441 = vmatpush.msrb.mxu2 %v5034_v25  ;;  %1464 = vmatpush.msrb.mxu3 %v5037_v2 }
 0x4dc   :  { %1442 = vmatpush.msrb.mxu2 %v5040_v27  ;;  %1465 = vmatpush.msrb.mxu3 %v5043_v61 }
 0x4de   :  { %1443 = vmatpush.msrb.mxu2 %v5046_v60  ;;  %1466 = vmatpush.msrb.mxu3 %v5049_v62 }
 0x4e0   :  { %1444 = vmatpush.msrb.mxu2 %v5052_v45  ;;  %1467 = vmatpush.msrb.mxu3 %v5055_v32 }
 0x4e6   :  { %v1130_v3 = vpop.permute.xlu2 %1129 }
 0x4f6   :  { %v1128_v54 = vpop.permute.xlu1 %1127 }
 0x4f7   :  { %3777 = vmatmul.msk.f32.vlgmr.msrb.gmra.mxu0 %vm321_vm1, %v1128_v54  ;;  %3779 = vmatmul.msk.f32.vlgmr.msrb.gmra.mxu1 %vm321_vm1, %v1128_v54 }
 0x4f8   :  { %3783 = vmatmul.msk.f32.vlgmr.msra.gmra.mxu2 %vm321_vm1, %v1128_v54  ;;  %3785 = vmatmul.msk.f32.vlgmr.msra.gmra.mxu3 %vm321_vm1, %v1128_v54  ;;  %v5157_v54 = vld [vmem:[#allocation9 + $0x138] sm:$0xff] }
 0x4f9   :  { %1561 = vmatpush.msrb.mxu0 %v4921_v5  ;;  %1584 = vmatpush.msrb.mxu1 %v5073_v31  ;;  %5929 = vst [vmem:[#allocation33_spill] sm:$0xff] %v5157_v54 }
 0x4fa   :  { %1611 = vmatpush.msra.mxu2 %v5076_v0  ;;  %1634 = vmatpush.msra.mxu3 %v5079_v4 }
 0x4fb   :  { %1562 = vmatpush.msrb.mxu0 %v4925_v7  ;;  %1585 = vmatpush.msrb.mxu1 %v5083_v36 }
 0x4fc   :  { %1612 = vmatpush.msra.mxu2 %v5090_v39  ;;  %1635 = vmatpush.msra.mxu3 %v5093_v15 }
 0x4fd   :  { %1563 = vmatpush.msrb.mxu0 %v4929_v12  ;;  %1586 = vmatpush.msrb.mxu1 %v5097_v40 }
 0x4fe   :  { %1613 = vmatpush.msra.mxu2 %v5100_v17  ;;  %1636 = vmatpush.msra.mxu3 %v5103_v24 }
 0x4ff   :  { %3778 = vmatmul.msk.f32.gmra.mxu0 %vm321_vm1, %v1130_v3  ;;  %3780 = vmatmul.msk.f32.gmra.mxu1 %vm321_vm1, %v1130_v3 }
 0x500   :  { %3784 = vmatmul.msk.f32.gmra.mxu2 %vm321_vm1, %v1130_v3  ;;  %3786 = vmatmul.msk.f32.gmra.mxu3 %vm321_vm1, %v1130_v3  ;;  %v5169_v3 = vld [vmem:[#allocation9 + $0x128] sm:$0xff] }
 0x501   :  { %1564 = vmatpush.msrb.mxu0 %v4933_v35  ;;  %1587 = vmatpush.msrb.mxu1 %v5112_v22  ;;  %5933 = vst [vmem:[#allocation37_spill] sm:$0xff] %v5169_v3 }
 0x502   :  { %1614 = vmatpush.msra.mxu2 %v5115_v43  ;;  %1637 = vmatpush.msra.mxu3 %v5118_v50 }
 0x503   :  { %1565 = vmatpush.msrb.mxu0 %v4939_v8  ;;  %1588 = vmatpush.msrb.mxu1 %v5122_v47 }
 0x504   :  { %1615 = vmatpush.msra.mxu2 %v5129_v57  ;;  %1638 = vmatpush.msra.mxu3 %v5132_v49 }
 0x505   :  { %1566 = vmatpush.msrb.mxu0 %v5135_v11  ;;  %1589 = vmatpush.msrb.mxu1 %v5138_v28 }
 0x506   :  { %1616 = vmatpush.msra.mxu2 %v5141_v33  ;;  %1639 = vmatpush.msra.mxu3 %v5144_v6 }
 0x507   :  { %1567 = vmatpush.msrb.mxu0 %v5148_v51  ;;  %1590 = vmatpush.msrb.mxu1 %v5151_v59 }
 0x508   :  { %1617 = vmatpush.msra.mxu2 %v5154_v10  ;;  %1640 = vmatpush.msra.mxu3 %v5157_v54  ;;  %v307_v54 = vpop.f32.mrf.mxu1  ;;  %v259_v10 = vadd.f32 %v258_v38, %v5911_v14 }
 0x509   :  { %1568 = vmatpush.msrb.mxu0 %v5160_v9  ;;  %1591 = vmatpush.msrb.mxu1 %v5163_v16  ;;  %v308_v6 = vadd.f32 %v307_v54, %v5913_v19 }
 0x50a   :  { %1618 = vmatpush.msra.mxu2 %v5166_v18  ;;  %1641 = vmatpush.msra.mxu3 %v5169_v3  ;;  %343 = vst [vmem:[#allocation2 + $0xb0] sm:$0xff] %v259_v10  ;;  %v261_v18 = vpop.f32.mrf.mxu0 }
 0x50b   :  { %344 = vst.msk [vmem:[#allocation2 + $0xb8] sm:$0xff] %vm321_vm1, %v308_v6  ;;  %v262_v33 = vadd.f32 %v261_v18, %v5911_v14 }
 0x50d   :  { %345 = vst [vmem:[#allocation2 + $0xc0] sm:$0xff] %v262_v33 }
 0x510   :  { %v310_v3 = vpop.f32.mrf.mxu1 }
 0x511   :  { %v311_v42 = vadd.f32 %v310_v3, %v5913_v19 }
 0x512   :  { %v263_v44 = vpop.f32.mrf.mxu0 }
 0x513   :  { %346 = vst.msk [vmem:[#allocation2 + $0xc8] sm:$0xff] %vm321_vm1, %v311_v42  ;;  %v264_v56 = vadd.f32 %v263_v44, %v5911_v14 }
 0x515   :  { %347 = vst [vmem:[#allocation2 + $0xd0] sm:$0xff] %v264_v56 }
 0x518   :  { %v312_v53 = vpop.f32.mrf.mxu1 }
 0x519   :  { %v313_v38 = vadd.f32 %v312_v53, %v5913_v19 }
 0x51a   :  { %v266_v10 = vpop.f32.mrf.mxu0 }
 0x51b   :  { %348 = vst.msk [vmem:[#allocation2 + $0xd8] sm:$0xff] %vm321_vm1, %v313_v38  ;;  %v267_v54 = vadd.f32 %v266_v10, %v5911_v14 }
 0x51d   :  { %349 = vst [vmem:[#allocation2 + $0xe0] sm:$0xff] %v267_v54 }
 0x520   :  { %v315_v6 = vpop.f32.mrf.mxu1 }
 0x521   :  { %v316_v18 = vadd.f32 %v315_v6, %v5913_v19 }
 0x522   :  { %v268_v33 = vpop.f32.mrf.mxu0 }
 0x523   :  { %350 = vst.msk [vmem:[#allocation2 + $0xe8] sm:$0xff] %vm321_vm1, %v316_v18  ;;  %v269_v42 = vadd.f32 %v268_v33, %v5911_v14 }
 0x525   :  { %351 = vst [vmem:[#allocation2 + $0xf0] sm:$0xff] %v269_v42 }
 0x528   :  { %v317_v3 = vpop.f32.mrf.mxu1 }
 0x529   :  { %v318_v44 = vadd.f32 %v317_v3, %v5913_v19 }
 0x52b   :  { %352 = vst.msk [vmem:[#allocation2 + $0xf8] sm:$0xff] %vm321_vm1, %v318_v44 }
 0x554   :  { %v1032_v56 = vpop.f32.mrf.mxu2  ;;  %v1055_v44 = vpop.f32.mrf.mxu3 }
 0x55c   :  { %v1035_v53 = vpop.f32.mrf.mxu2 }
 0x574   :  { %v1152_v38 = vpop.f32.mrf.mxu0 }
 0x575   :  { %v1153_v49 = vadd.f32 %v1152_v38, %v5912_v20 }
 0x577   :  { %v1181_v10 = vadd.f32 %v1153_v49, %v1032_v56 }
 0x579   :  { %v3781_v57 = vmul.f32 -1.442695, %v1181_v10 }
 0x57b   :  { %4030 = vpow2.f32 %v3781_v57  ;;  %v1276_v6 = vpop.f32.mrf.mxu2 }
 0x57c   :  { %v1355_v54 = vadd.f32 %v1276_v6, %v5059_v55  ;;  %v1155_v18 = vpop.f32.mrf.mxu0 }
 0x57d   :  { %v1156_v50 = vadd.f32 %v1155_v18, %v5912_v20 }
 0x57e   :  { %v3791_v14 = vmul.f32 -1.442695, %v1355_v54 }
 0x57f   :  { %v1182_v33 = vadd.f32 %v1156_v50, %v1035_v53  ;;  %v1058_v50 = vpop.f32.mrf.mxu3 }
 0x580   :  { %4032 = vpow2.f32 %v3791_v14 }
 0x581   :  { %v4031_v19 = vpop.eup %4030  ;;  %v3782_v3 = vmul.f32 -1.442695, %v1182_v33 }
 0x582   :  { %v1189_v42 = vadd.f32 1.0, %v4031_v19 }
 0x583   :  { %4034 = vpow2.f32 %v3782_v3  ;;  %v1279_v43 = vpop.f32.mrf.mxu2 }
 0x584   :  { %4036 = vrcp.f32 %v1189_v42  ;;  %v1356_v49 = vadd.f32 %v1279_v43, %v5064_v63  ;;  %v1202_v18 = vand.u32 2147483648, %v1189_v42  ;;  %v1200_v19 = vand.u32 2147483647, %v1189_v42 }
 0x585   :  { %vm1196_vm14 = vweird.f32 %v1189_v42 }
 0x586   :  { %v4033_v56 = vpop.eup %4032  ;;  %v3792_v38 = vmul.f32 -1.442695, %v1356_v49  ;;  %v1203_v24 = vor.u32 1.1754944e-38, %v1202_v18  ;;  %vm1201_vm2 = vcmp.eq.f32.partialorder %v1200_v19, 8.507059e+37 }
 0x587   :  { %v1363_v57 = vadd.f32 1.0, %v4033_v56  ;;  %v5198_v56 = vld [vmem:[#allocation9 + $0x523] ss:$0 sm:$0xff] }
 0x589   :  { %v4035_v10 = vpop.eup %4034  ;;  %4038 = vrcp.f32 %v1363_v57  ;;  %v1376_v17 = vand.u32 2147483648, %v1363_v57  ;;  %vm1370_vm4 = vweird.f32 %v1363_v57 }
 0x58a   :  { %v4037_v55 = vpop.eup %4036  ;;  %v1190_v6 = vadd.f32 1.0, %v4035_v10  ;;  %4040 = vpow2.f32 %v3792_v38  ;;  %v1221_v38 = vadd.f32 %v5198_v56, %v1055_v44  ;;  %v1175_v10 = vpop.f32.mrf.mxu1 }
 0x58b   :  { %v1192_v54 = vmul.f32 %v4037_v55, %v1189_v42  ;;  %vm1197_vm0 = vweird.f32 %v4037_v55  ;;  %v1299_v44 = vpop.f32.mrf.mxu3 }
 0x58c   :  { %4042 = vrcp.f32 %v1190_v6  ;;  %vm1198_vm15 = vmor %vm1196_vm14, %vm1197_vm0  ;;  %v1217_v18 = vand.u32 2147483648, %v1190_v6  ;;  %vm1211_vm8 = vweird.f32 %v1190_v6 }
 0x58d   :  { %v1193_v53 = vsub.f32 1.0, %v1192_v54 }
 0x58f   :  { %v4039_v14 = vpop.eup %4038  ;;  %v1194_v33 = vmul.f32 %v4037_v55, %v1193_v53 }
 0x590   :  { %v4041_v3 = vpop.eup %4040  ;;  %v1366_v20 = vmul.f32 %v4039_v14, %v1363_v57  ;;  %vm1371_vm3 = vweird.f32 %v4039_v14 }
 0x591   :  { %v1195_v63 = vadd.f32 %v4037_v55, %v1194_v33  ;;  %v5196_v43 = vadd.f32 1.0, %v4041_v3  ;;  %v1374_v33 = vand.u32 2147483647, %v1363_v57  ;;  %v1176_v3 = vadd.f32 %v1175_v10, %v4832_v41  ;;  %vm1372_vm5 = vmor %vm1370_vm4, %vm1371_vm3  ;;  %v1256_v57 = vld [vmem:[#allocation2 + $0x68] sm:$0xff] }
 0x592   :  { %v4043_v49 = vpop.eup %4042  ;;  %v1367_v54 = vsub.f32 1.0, %v1366_v20  ;;  %v1377_v20 = vor.u32 1.1754944e-38, %v1376_v17 }
 0x593   :  { %v1199_v15 = vsel %vm1198_vm15, %v4037_v55, %v1195_v63  ;;  %v1207_v53 = vmul.f32 %v4043_v49, %v1190_v6  ;;  %4044 = vrcp.f32 %v5196_v43  ;;  %vm1212_vm6 = vweird.f32 %v4043_v49 }
 0x594   :  { %v5202_v39 = vsel %vm1201_vm2, %v1203_v24, %v1199_v15  ;;  %v1368_v42 = vmul.f32 %v4039_v14, %v1367_v54  ;;  %v1215_v63 = vand.u32 2147483647, %v1190_v6  ;;  %vm1375_vm7 = vcmp.eq.f32.partialorder %v1374_v33, 8.507059e+37  ;;  %vm1213_vm9 = vmor %vm1211_vm8, %vm1212_vm6  ;;  %v1178_v33 = vpop.f32.mrf.mxu1 }
 0x595   :  { %v1223_v4 = vmul.f32 %v1221_v38, %v5202_v39  ;;  %v1208_v0 = vsub.f32 1.0, %v1207_v53  ;;  %v1395_v24 = vadd.f32 %v4964_v46, %v1299_v44  ;;  %v1218_v53 = vor.u32 1.1754944e-38, %v1217_v18 }
 0x596   :  { %v1369_v16 = vadd.f32 %v4039_v14, %v1368_v42  ;;  %vm1216_vm10 = vcmp.eq.f32.partialorder %v1215_v63, 8.507059e+37  ;;  %v1391_v44 = vand.u32 2147483648, %v5196_v43  ;;  %vm1385_vm12 = vweird.f32 %v5196_v43 }
 0x597   :  { %v1225_v55 = vadd.f32 %v1223_v4, %v1176_v3  ;;  %v1209_v19 = vmul.f32 %v4043_v49, %v1208_v0  ;;  %v1222_v0 = vadd.f32 %v5198_v56, %v1058_v50  ;;  %v1389_v3 = vand.u32 2147483647, %v5196_v43 }
 0x598   :  { %v1373_v15 = vsel %vm1372_vm5, %v4039_v14, %v1369_v16  ;;  %v1392_v50 = vor.u32 1.1754944e-38, %v1391_v44 }
 0x599   :  { %v4045_v54 = vpop.eup %4044  ;;  %4046 = vtanh.f32 %v1225_v55  ;;  %v1378_v10 = vsel %vm1375_vm7, %v1377_v20, %v1373_v15  ;;  %v1210_v9 = vadd.f32 %v4043_v49, %v1209_v19  ;;  %v1302_v55 = vpop.f32.mrf.mxu3  ;;  %v1179_v19 = vadd.f32 %v1178_v33, %v4832_v41 }
 0x59a   :  { %v1397_v38 = vmul.f32 %v1395_v24, %v1378_v10  ;;  %v1381_v17 = vmul.f32 %v4045_v54, %v5196_v43  ;;  %vm1386_vm11 = vweird.f32 %v4045_v54  ;;  %vm1390_vm0 = vcmp.eq.f32.partialorder %v1389_v3, 8.507059e+37 }
 0x59b   :  { %v1214_v4 = vsel %vm1213_vm9, %v4043_v49, %v1210_v9  ;;  %vm1387_vm13 = vmor %vm1385_vm12, %vm1386_vm11  ;;  %v1396_v15 = vadd.f32 %v4964_v46, %v1302_v55  ;;  %v1229_v3 = vsub.f32 1.0, %v5202_v39  ;;  %v1403_v55 = vsub.f32 1.0, %v1378_v10 }
 0x59c   :  { %v1399_v42 = vadd.f32 %v1397_v38, %v1256_v57  ;;  %v1219_v16 = vsel %vm1216_vm10, %v1218_v53, %v1214_v4  ;;  %v1382_v14 = vsub.f32 1.0, %v1381_v17  ;;  %v1258_v17 = vld [vmem:[#allocation2 + $0x78] sm:$0xff] }
 0x59d   :  { %v1224_v6 = vmul.f32 %v1222_v0, %v1219_v16 }
 0x59e   :  { %4048 = vtanh.f32 %v1399_v42  ;;  %v1383_v20 = vmul.f32 %v4045_v54, %v1382_v14 }
 0x59f   :  { %v4047_v18 = vpop.eup %4046  ;;  %v1226_v49 = vadd.f32 %v1224_v6, %v1179_v19 }
 0x5a0   :  { %v1384_v9 = vadd.f32 %v4045_v54, %v1383_v20  ;;  %1233 = vrot.lane.b32.xlu1 %v4047_v18, %s4476_s1  ;;  %v1241_v20 = vmul.f32 %v5202_v39, %v4982_v21  ;;  %v1242_v21 = vmul.f32 %v1219_v16, %v4973_v37 }
 0x5a1   :  { %4050 = vtanh.f32 %v1226_v49  ;;  %v1230_v49 = vsub.f32 1.0, %v1219_v16  ;;  %v5940_v16 = vld [vmem:[#allocation22_spill] sm:$0xff] }
 0x5a2   :  { %v1388_v63 = vsel %vm1387_vm13, %v4045_v54, %v1384_v9  ;;  %v1415_v9 = vmul.f32 %v1378_v10, %v4989_v23 }
 0x5a3   :  { %v1393_v24 = vsel %vm1390_vm0, %v1392_v50, %v1388_v63 }
 0x5a4   :  { %v4049_v38 = vpop.eup %4048  ;;  %v1398_v53 = vmul.f32 %v1396_v15, %v1393_v24  ;;  %v1404_v0 = vsub.f32 1.0, %v1393_v24  ;;  %v1416_v14 = vmul.f32 %v1393_v24, %v4994_v52 }
 0x5a5   :  { %1407 = vrot.lane.b32.xlu0 %v4049_v38, %s4476_s1  ;;  %v5941_v38 = vld [vmem:[#allocation23_spill] sm:$0xff] }
 0x5a6   :  { %v1400_v57 = vadd.f32 %v1398_v53, %v1258_v17  ;;  %v5942_v53 = vld [vmem:[#allocation24_spill] sm:$0xff]  ;;  %v5943_v17 = vld [vmem:[#allocation25_spill] sm:$0xff] }
 0x5a7   :  { %v4051_v4 = vpop.eup %4050 }
 0x5a8   :  { %4052 = vtanh.f32 %v1400_v57  ;;  %v5944_v57 = vld [vmem:[#allocation26_spill] sm:$0xff] }
 0x5ad   :  { %1235 = vrot.lane.b32.xlu0 %v4051_v4, %s4476_s1  ;;  %v5945_v4 = vld [vmem:[#allocation28_spill] sm:$0xff] }
 0x5ae   :  { %v4053_v43 = vpop.eup %4052 }
 0x5af   :  { %1409 = vrot.lane.b32.xlu2 %v4053_v43, %s4476_s1  ;;  %v5946_v43 = vld [vmem:[#allocation29_spill] sm:$0xff] }
 0x609   :  { %v1410_v54 = vpop.permute.xlu2 %1409 }
 0x60a   :  { %v1414_v42 = vmul.f32 %v1410_v54, %v1404_v0  ;;  %v5947_v0 = vld [vmem:[#allocation30_spill] sm:$0xff]  ;;  %v5948_v54 = vld [vmem:[#allocation31_spill] sm:$0xff] }
 0x60c   :  { %v5219_v33 = vadd.f32 %v1416_v14, %v1414_v42  ;;  %v5949_v42 = vld [vmem:[#allocation32_spill] sm:$0xff]  ;;  %v5950_v14 = vld [vmem:[#allocation33_spill] sm:$0xff] }
 0x60e   :  { %1423 = vrot.lane.b32.xlu0 %v5219_v33, %s4476_s1 }
 0x612   :  { %v1234_v44 = vpop.permute.xlu1 %1233 }
 0x613   :  { %v1239_v6 = vmul.f32 %v1234_v44, %v1229_v3  ;;  %v5951_v3 = vld [vmem:[#allocation36_spill] sm:$0xff]  ;;  %v5952_v44 = vld [vmem:[#allocation37_spill] sm:$0xff] }
 0x615   :  { %v5226_v18 = vadd.f32 %v1241_v20, %v1239_v6 }
 0x617   :  { %v1408_v19 = vpop.permute.xlu0 %1407  ;;  %1247 = vrot.lane.b32.xlu2 %v5226_v18, %s4476_s1 }
 0x618   :  { %v1413_v52 = vmul.f32 %v1408_v19, %v1403_v55  ;;  %v5953_v55 = vld [vmem:[#allocation19_spill] sm:$0xff] }
 0x61a   :  { %v5231_v50 = vadd.f32 %v1415_v9, %v1413_v52 }
 0x61c   :  { %1421 = vrot.lane.b32.xlu1 %v5231_v50, %s4476_s1 }
 0x61f   :  { %v1236_v63 = vpop.permute.xlu0 %1235 }
 0x620   :  { %v1240_v15 = vmul.f32 %v1236_v63, %v1230_v49 }
 0x622   :  { %v5236_v39 = vadd.f32 %v1242_v21, %v1240_v15 }
 0x624   :  { %1249 = vrot.lane.b32.xlu1 %v5236_v39, %s4476_s1 }
 0x671   :  { %v1248_v24 = vpop.permute.xlu2 %1247 }
 0x672   :  { %1253 = vst.msk [vmem:[#allocation3 + $0x20] sm:$0xff] %vm321_vm1, %v1248_v24  ;;  %3787 = vmatmul.msk.f32.vlgmr.msra.gmra.mxu0 %vm321_vm1, %v1248_v24  ;;  %3789 = vmatmul.msk.f32.vlgmr.msra.gmra.mxu1 %vm321_vm1, %v1248_v24  ;;  %v5954_v24 = vld [vmem:[#allocation20_spill] sm:$0xff] }
 0x673   :  { %1731 = vmatpush.msra.mxu0 %v5007_v58  ;;  %1754 = vmatpush.msra.mxu1 %v5010_v34 }
 0x675   :  { %1732 = vmatpush.msra.mxu0 %v5013_v29  ;;  %1755 = vmatpush.msra.mxu1 %v5016_v13 }
 0x677   :  { %1733 = vmatpush.msra.mxu0 %v5019_v26  ;;  %1756 = vmatpush.msra.mxu1 %v5022_v48 }
 0x679   :  { %1734 = vmatpush.msra.mxu0 %v5025_v30  ;;  %1757 = vmatpush.msra.mxu1 %v5028_v1 }
 0x67b   :  { %1735 = vmatpush.msra.mxu0 %v5034_v25  ;;  %1758 = vmatpush.msra.mxu1 %v5037_v2 }
 0x67d   :  { %1736 = vmatpush.msra.mxu0 %v5040_v27  ;;  %1759 = vmatpush.msra.mxu1 %v5043_v61 }
 0x67f   :  { %1737 = vmatpush.msra.mxu0 %v5046_v60  ;;  %1760 = vmatpush.msra.mxu1 %v5049_v62 }
 0x680   :  { %v1424_v10 = vpop.permute.xlu0 %1423 }
 0x681   :  { %1738 = vmatpush.msra.mxu0 %v5052_v45  ;;  %1761 = vmatpush.msra.mxu1 %v5055_v32 }
 0x68e   :  { %v1422_v37 = vpop.permute.xlu1 %1421 }
 0x68f   :  { %3793 = vmatmul.msk.f32.vlgmr.msrb.gmra.mxu2 %vm321_vm1, %v1422_v37  ;;  %3795 = vmatmul.msk.f32.vlgmr.msrb.gmra.mxu3 %vm321_vm1, %v1422_v37 }
 0x690   :  { %1855 = vmatpush.msrb.mxu2 %v4921_v5  ;;  %1878 = vmatpush.msrb.mxu3 %v5073_v31  ;;  %v5935_v5 = vld [vmem:[#allocation34_spill] sm:$0xff] }
 0x692   :  { %1856 = vmatpush.msrb.mxu2 %v4925_v7  ;;  %1879 = vmatpush.msrb.mxu3 %v5083_v36  ;;  %v5936_v7 = vld [vmem:[#allocation35_spill] sm:$0xff] }
 0x694   :  { %1857 = vmatpush.msrb.mxu2 %v4929_v12  ;;  %1880 = vmatpush.msrb.mxu3 %v5097_v40  ;;  %v5937_v12 = vld [vmem:[#allocation17_spill] sm:$0xff] }
 0x696   :  { %v1250_v23 = vpop.permute.xlu1 %1249  ;;  %1858 = vmatpush.msrb.mxu2 %v4933_v35  ;;  %1881 = vmatpush.msrb.mxu3 %v5112_v22  ;;  %v5938_v35 = vld [vmem:[#allocation18_spill] sm:$0xff] }
 0x697   :  { %1254 = vst.msk [vmem:[#allocation3 + $0x28] sm:$0xff] %vm321_vm1, %v1250_v23  ;;  %3788 = vmatmul.msk.f32.gmra.mxu0 %vm321_vm1, %v1250_v23  ;;  %3790 = vmatmul.msk.f32.gmra.mxu1 %vm321_vm1, %v1250_v23 }
 0x698   :  { %3794 = vmatmul.msk.f32.gmra.mxu2 %vm321_vm1, %v1424_v10  ;;  %3796 = vmatmul.msk.f32.gmra.mxu3 %vm321_vm1, %v1424_v10 }
 0x699   :  { %1859 = vmatpush.msrb.mxu2 %v4939_v8  ;;  %1882 = vmatpush.msrb.mxu3 %v5122_v47  ;;  %v5939_v8 = vld [vmem:[#allocation21_spill] sm:$0xff] }
 0x69b   :  { %1860 = vmatpush.msrb.mxu2 %v5135_v11  ;;  %1883 = vmatpush.msrb.mxu3 %v5138_v28 }
 0x69d   :  { %1861 = vmatpush.msrb.mxu2 %v5148_v51  ;;  %1884 = vmatpush.msrb.mxu3 %v5151_v59 }
 0x69f   :  { %3799 = vmatmul.msk.f32.vlgmr.msrb.gmra.mxu0 %vm321_vm1, %v1422_v37  ;;  %3801 = vmatmul.msk.f32.vlgmr.msrb.gmra.mxu1 %vm321_vm1, %v1422_v37 }
 0x6a0   :  { %1862 = vmatpush.msrb.mxu2 %v5935_v5  ;;  %1885 = vmatpush.msrb.mxu3 %v5936_v7 }
 0x6a1   :  { %1905 = vmatpush.msrb.mxu0 %v5937_v12  ;;  %1928 = vmatpush.msrb.mxu1 %v5938_v35 }
 0x6a3   :  { %1906 = vmatpush.msrb.mxu0 %v5939_v8  ;;  %1929 = vmatpush.msrb.mxu1 %v5940_v16 }
 0x6a5   :  { %1907 = vmatpush.msrb.mxu0 %v5941_v38  ;;  %1930 = vmatpush.msrb.mxu1 %v5942_v53 }
 0x6a7   :  { %3800 = vmatmul.msk.f32.gmra.mxu0 %vm321_vm1, %v1424_v10  ;;  %3802 = vmatmul.msk.f32.gmra.mxu1 %vm321_vm1, %v1424_v10 }
 0x6a8   :  { %1908 = vmatpush.msrb.mxu0 %v5943_v17  ;;  %1931 = vmatpush.msrb.mxu1 %v5944_v57 }
 0x6aa   :  { %1909 = vmatpush.msrb.mxu0 %v5945_v4  ;;  %1932 = vmatpush.msrb.mxu1 %v5946_v43 }
 0x6ac   :  { %1910 = vmatpush.msrb.mxu0 %v5947_v0  ;;  %1933 = vmatpush.msrb.mxu1 %v5948_v54  ;;  %v5955_v54 = vld [vmem:[#allocation27_spill] sm:$0xff] }
 0x6ae   :  { %1911 = vmatpush.msrb.mxu0 %v5949_v42  ;;  %1934 = vmatpush.msrb.mxu1 %v5950_v14 }
 0x6b0   :  { %1912 = vmatpush.msrb.mxu0 %v5951_v3  ;;  %1935 = vmatpush.msrb.mxu1 %v5952_v44 }
 0x6ef   :  { %v1326_v6 = vpop.f32.mrf.mxu0  ;;  %v1349_v44 = vpop.f32.mrf.mxu1 }
 0x712   :  { %v1446_v20 = vpop.f32.mrf.mxu2 }
 0x713   :  { %v1447_v19 = vadd.f32 %v1446_v20, %v5953_v55 }
 0x714   :  { %v1329_v52 = vpop.f32.mrf.mxu0 }
 0x715   :  { %v1475_v9 = vadd.f32 %v1447_v19, %v1326_v6 }
 0x717   :  { %v3797_v49 = vmul.f32 -1.442695, %v1475_v9 }
 0x719   :  { %4054 = vpow2.f32 %v3797_v49 }
 0x71b   :  { %v1449_v63 = vpop.f32.mrf.mxu2 }
 0x71c   :  { %v1450_v15 = vadd.f32 %v1449_v63, %v5953_v55  ;;  %v1570_v21 = vpop.f32.mrf.mxu0 }
 0x71d   :  { %v1649_v37 = vadd.f32 %v1570_v21, %v5954_v24  ;;  %v1352_v21 = vpop.f32.mrf.mxu1 }
 0x71e   :  { %v1476_v23 = vadd.f32 %v1450_v15, %v1329_v52 }
 0x71f   :  { %v4055_v10 = vpop.eup %4054  ;;  %v3807_v14 = vmul.f32 -1.442695, %v1649_v37 }
 0x720   :  { %v1483_v3 = vadd.f32 1.0, %v4055_v10  ;;  %v3798_v42 = vmul.f32 -1.442695, %v1476_v23  ;;  %v1469_v23 = vpop.f32.mrf.mxu3 }
 0x721   :  { %4056 = vpow2.f32 %v3807_v14 }
 0x722   :  { %4058 = vrcp.f32 %v1483_v3  ;;  %v1496_v24 = vand.u32 2147483648, %v1483_v3  ;;  %v1494_v37 = vand.u32 2147483647, %v1483_v3  ;;  %vm1490_vm15 = vweird.f32 %v1483_v3 }
 0x723   :  { %4060 = vpow2.f32 %v3798_v42 }
 0x724   :  { %v1573_v20 = vpop.f32.mrf.mxu0  ;;  %vm1495_vm3 = vcmp.eq.f32.partialorder %v1494_v37, 8.507059e+37 }
 0x725   :  { %v1650_v6 = vadd.f32 %v1573_v20, %v5955_v54  ;;  %v1497_v20 = vor.u32 1.1754944e-38, %v1496_v24  ;;  %v1593_v57 = vpop.f32.mrf.mxu1 }
 0x727   :  { %v4057_v19 = vpop.eup %4056  ;;  %v3808_v9 = vmul.f32 -1.442695, %v1650_v6 }
 0x728   :  { %v4059_v49 = vpop.eup %4058  ;;  %v1657_v0 = vadd.f32 1.0, %v4057_v19  ;;  %v1515_v19 = vadd.f32 %v5198_v56, %v1349_v44 }
 0x729   :  { %v4061_v63 = vpop.eup %4060  ;;  %v1486_v55 = vmul.f32 %v4059_v49, %v1483_v3  ;;  %4062 = vpow2.f32 %v3808_v9  ;;  %vm1491_vm14 = vweird.f32 %v4059_v49 }
 0x72a   :  { %v1484_v52 = vadd.f32 1.0, %v4061_v63  ;;  %4064 = vrcp.f32 %v1657_v0  ;;  %vm1492_vm2 = vmor %vm1490_vm15, %vm1491_vm14  ;;  %v1668_v24 = vand.u32 2147483647, %v1657_v0  ;;  %vm1664_vm5 = vweird.f32 %v1657_v0 }
 0x72b   :  { %v1487_v15 = vsub.f32 1.0, %v1486_v55 }
 0x72c   :  { %4066 = vrcp.f32 %v1484_v52  ;;  %v1511_v37 = vand.u32 2147483648, %v1484_v52  ;;  %vm1505_vm7 = vweird.f32 %v1484_v52  ;;  %vm1669_vm9 = vcmp.eq.f32.partialorder %v1668_v24, 8.507059e+37 }
 0x72d   :  { %v1488_v14 = vmul.f32 %v4059_v49, %v1487_v15  ;;  %v1470_v15 = vadd.f32 %v1469_v23, %v4832_v41 }
 0x72f   :  { %v4063_v42 = vpop.eup %4062  ;;  %v1489_v10 = vadd.f32 %v4059_v49, %v1488_v14 }
 0x730   :  { %v4065_v54 = vpop.eup %4064  ;;  %v5306_v6 = vadd.f32 1.0, %v4063_v42  ;;  %v1670_v42 = vand.u32 2147483648, %v1657_v0 }
 0x731   :  { %v1493_v9 = vsel %vm1492_vm2, %v4059_v49, %v1489_v10  ;;  %v1660_v63 = vmul.f32 %v4065_v54, %v1657_v0  ;;  %vm1665_vm4 = vweird.f32 %v4065_v54  ;;  %v1509_v49 = vand.u32 2147483647, %v1484_v52 }
 0x732   :  { %v4067_v55 = vpop.eup %4066  ;;  %v5309_v43 = vsel %vm1495_vm3, %v1497_v20, %v1493_v9  ;;  %4068 = vrcp.f32 %v5306_v6  ;;  %vm1666_vm8 = vmor %vm1664_vm5, %vm1665_vm4  ;;  %v1671_v23 = vor.u32 1.1754944e-38, %v1670_v42  ;;  %v1512_v0 = vor.u32 1.1754944e-38, %v1511_v37  ;;  %v5322_v37 = vld [vmem:[#allocation9 + $0x521] ss:$0 sm:$0xff] }
 0x733   :  { %v1517_v14 = vmul.f32 %v1515_v19, %v5309_v43  ;;  %v1501_v3 = vmul.f32 %v4067_v55, %v1484_v52  ;;  %v1661_v4 = vsub.f32 1.0, %v1660_v63  ;;  %vm1506_vm6 = vweird.f32 %v4067_v55  ;;  %v1472_v63 = vpop.f32.mrf.mxu3 }
 0x734   :  { %v1689_v19 = vadd.f32 %v4964_v46, %v1593_v57  ;;  %vm1507_vm10 = vmor %vm1505_vm7, %vm1506_vm6  ;;  %vm1510_vm11 = vcmp.eq.f32.partialorder %v1509_v49, 8.507059e+37  ;;  %v1473_v52 = vadd.f32 %v1472_v63, %v4832_v41  ;;  %v1683_v46 = vand.u32 2147483647, %v5306_v6 }
 0x735   :  { %v1519_v17 = vadd.f32 %v1517_v14, %v1470_v15  ;;  %v1502_v53 = vsub.f32 1.0, %v1501_v3  ;;  %v1662_v44 = vmul.f32 %v4065_v54, %v1661_v4  ;;  %v1516_v15 = vadd.f32 %v5198_v56, %v1352_v21  ;;  %v1596_v21 = vpop.f32.mrf.mxu1 }
 0x736   :  { %v1685_v57 = vand.u32 2147483648, %v5306_v6  ;;  %vm1679_vm13 = vweird.f32 %v5306_v6  ;;  %vm1684_vm14 = vcmp.eq.f32.partialorder %v1683_v46, 8.507059e+37 }
 0x737   :  { %4070 = vtanh.f32 %v1519_v17  ;;  %v1503_v10 = vmul.f32 %v4067_v55, %v1502_v53  ;;  %v1663_v20 = vadd.f32 %v4065_v54, %v1662_v44  ;;  %v1550_v44 = vld [vmem:[#allocation2 + $0x88] sm:$0xff] }
 0x738   :  { %v4069_v9 = vpop.eup %4068 }
 0x739   :  { %v1504_v38 = vadd.f32 %v4067_v55, %v1503_v10  ;;  %v1667_v16 = vsel %vm1666_vm8, %v4065_v54, %v1663_v20  ;;  %v1675_v4 = vmul.f32 %v4069_v9, %v5306_v6  ;;  %vm1680_vm12 = vweird.f32 %v4069_v9 }
 0x73a   :  { %v1672_v17 = vsel %vm1669_vm9, %v1671_v23, %v1667_v16  ;;  %vm1681_vm0 = vmor %vm1679_vm13, %vm1680_vm12  ;;  %v1690_v23 = vadd.f32 %v5322_v37, %v1596_v21 }
 0x73b   :  { %v1508_v53 = vsel %vm1507_vm10, %v4067_v55, %v1504_v38  ;;  %v1691_v14 = vmul.f32 %v1689_v19, %v1672_v17  ;;  %v1676_v3 = vsub.f32 1.0, %v1675_v4  ;;  %v1686_v55 = vor.u32 1.1754944e-38, %v1685_v57  ;;  %v1552_v4 = vld [vmem:[#allocation2 + $0x98] sm:$0xff] }
 0x73c   :  { %v1513_v42 = vsel %vm1510_vm11, %v1512_v0, %v1508_v53 }
 0x73d   :  { %v4071_v54 = vpop.eup %4070  ;;  %v1518_v24 = vmul.f32 %v1516_v15, %v1513_v42  ;;  %v1693_v10 = vadd.f32 %v1691_v14, %v1550_v44  ;;  %v1677_v20 = vmul.f32 %v4069_v9, %v1676_v3 }
 0x73e   :  { %1527 = vrot.lane.b32.xlu2 %v4071_v54, %s4476_s1 }
 0x73f   :  { %v1520_v16 = vadd.f32 %v1518_v24, %v1473_v52  ;;  %4072 = vtanh.f32 %v1693_v10  ;;  %v1678_v38 = vadd.f32 %v4069_v9, %v1677_v20  ;;  %v1535_v52 = vmul.f32 %v5309_v43, %v5226_v18 }
 0x740   :  { %v1697_v20 = vsub.f32 1.0, %v1672_v17  ;;  %v1709_v18 = vmul.f32 %v1672_v17, %v5231_v50 }
 0x741   :  { %4074 = vtanh.f32 %v1520_v16  ;;  %v1682_v49 = vsel %vm1681_vm0, %v4069_v9, %v1678_v38  ;;  %v1523_v9 = vsub.f32 1.0, %v5309_v43  ;;  %v1524_v38 = vsub.f32 1.0, %v1513_v42 }
 0x742   :  { %v1687_v19 = vsel %vm1684_vm14, %v1686_v55, %v1682_v49 }
 0x743   :  { %v1692_v63 = vmul.f32 %v1690_v23, %v1687_v19  ;;  %v1698_v46 = vsub.f32 1.0, %v1687_v19  ;;  %v1710_v24 = vmul.f32 %v1687_v19, %v5219_v33  ;;  %v1536_v23 = vmul.f32 %v1513_v42, %v5236_v39 }
 0x745   :  { %v4073_v15 = vpop.eup %4072  ;;  %v1694_v0 = vadd.f32 %v1692_v63, %v1552_v4 }
 0x746   :  { %1701 = vrot.lane.b32.xlu1 %v4073_v15, %s4476_s1 }
 0x747   :  { %v4075_v53 = vpop.eup %4074  ;;  %4076 = vtanh.f32 %v1694_v0 }
 0x748   :  { %1529 = vrot.lane.b32.xlu0 %v4075_v53, %s4476_s1 }
 0x74d   :  { %v4077_v6 = vpop.eup %4076 }
 0x74e   :  { %1703 = vrot.lane.b32.xlu2 %v4077_v6, %s4476_s1 }
 0x798   :  { %v1528_v14 = vpop.permute.xlu2 %1527 }
 0x799   :  { %v1533_v3 = vmul.f32 %v1528_v14, %v1523_v9 }
 0x79b   :  { %v5331_v44 = vadd.f32 %v1535_v52, %v1533_v3 }
 0x79d   :  { %1541 = vrot.lane.b32.xlu0 %v5331_v44, %s4476_s1 }
 0x7a8   :  { %v1704_v57 = vpop.permute.xlu2 %1703 }
 0x7a9   :  { %v1708_v54 = vmul.f32 %v1704_v57, %v1698_v46 }
 0x7ab   :  { %v5336_v10 = vadd.f32 %v1710_v24, %v1708_v54 }
 0x7ad   :  { %1717 = vrot.lane.b32.xlu0 %v5336_v10, %s4476_s1 }
 0x7b8   :  { %v1702_v21 = vpop.permute.xlu1 %1701 }
 0x7b9   :  { %v1707_v16 = vmul.f32 %v1702_v21, %v1697_v20 }
 0x7ba   :  { %v1530_v43 = vpop.permute.xlu0 %1529 }
 0x7bb   :  { %v1534_v55 = vmul.f32 %v1530_v43, %v1524_v38  ;;  %v5341_v49 = vadd.f32 %v1709_v18, %v1707_v16  ;;  %v5970_v38 = vld [vmem:[#allocation38_spill] sm:$0xff] }
 0x7bd   :  { %1715 = vrot.lane.b32.xlu2 %v5341_v49, %s4476_s1  ;;  %v5346_v33 = vadd.f32 %v1536_v23, %v1534_v55 }
 0x7bf   :  { %1543 = vrot.lane.b32.xlu1 %v5346_v33, %s4476_s1 }
 0x80f   :  { %v1542_v19 = vpop.permute.xlu0 %1541 }
 0x810   :  { %1547 = vst.msk [vmem:[#allocation3 + $0x30] sm:$0xff] %vm321_vm1, %v1542_v19  ;;  %3803 = vmatmul.msk.f32.vlgmr.msra.gmra.mxu2 %vm321_vm1, %v1542_v19  ;;  %3805 = vmatmul.msk.f32.vlgmr.msra.gmra.mxu3 %vm321_vm1, %v1542_v19 }
 0x811   :  { %2025 = vmatpush.msra.mxu2 %v5007_v58  ;;  %2048 = vmatpush.msra.mxu3 %v5010_v34  ;;  %v5365_v58 = vld [vmem:[#allocation9 + $0x90] sm:$0xff]  ;;  %v5371_v34 = vld [vmem:[#allocation9 + $0x80] sm:$0xff] }
 0x813   :  { %2026 = vmatpush.msra.mxu2 %v5013_v29  ;;  %2049 = vmatpush.msra.mxu3 %v5016_v13  ;;  %v5377_v29 = vld [vmem:[#allocation9 + $0x70] sm:$0xff] }
 0x815   :  { %2027 = vmatpush.msra.mxu2 %v5019_v26  ;;  %2050 = vmatpush.msra.mxu3 %v5022_v48  ;;  %v5385_v26 = vld [vmem:[#allocation9 + $0x60] sm:$0xff]  ;;  %v5389_v48 = vld [vmem:[#allocation9 + $0x50] sm:$0xff] }
 0x817   :  { %v1716_v50 = vpop.permute.xlu2 %1715  ;;  %2028 = vmatpush.msra.mxu2 %v5025_v30  ;;  %2051 = vmatpush.msra.mxu3 %v5028_v1  ;;  %v5956_v1 = vld [vmem:[#allocation22_spill] sm:$0xff] }
 0x818   :  { %3809 = vmatmul.msk.f32.vlgmr.msra.gmra.mxu0 %vm321_vm1, %v1716_v50  ;;  %3811 = vmatmul.msk.f32.vlgmr.msra.gmra.mxu1 %vm321_vm1, %v1716_v50 }
 0x819   :  { %2029 = vmatpush.msra.mxu2 %v5034_v25  ;;  %2052 = vmatpush.msra.mxu3 %v5037_v2  ;;  %v5957_v25 = vld [vmem:[#allocation23_spill] sm:$0xff]  ;;  %v5958_v2 = vld [vmem:[#allocation24_spill] sm:$0xff] }
 0x81a   :  { %2149 = vmatpush.msra.mxu0 %v5365_v58  ;;  %2172 = vmatpush.msra.mxu1 %v5073_v31  ;;  %v5965_v31 = vld [vmem:[#allocation32_spill] sm:$0xff] }
 0x81b   :  { %2030 = vmatpush.msra.mxu2 %v5040_v27  ;;  %2053 = vmatpush.msra.mxu3 %v5043_v61  ;;  %v5959_v27 = vld [vmem:[#allocation25_spill] sm:$0xff]  ;;  %v5960_v61 = vld [vmem:[#allocation26_spill] sm:$0xff] }
 0x81c   :  { %2150 = vmatpush.msra.mxu0 %v5371_v34  ;;  %2173 = vmatpush.msra.mxu1 %v5083_v36  ;;  %v5966_v36 = vld [vmem:[#allocation33_spill] sm:$0xff] }
 0x81d   :  { %2031 = vmatpush.msra.mxu2 %v5046_v60  ;;  %2054 = vmatpush.msra.mxu3 %v5049_v62  ;;  %v5961_v60 = vld [vmem:[#allocation28_spill] sm:$0xff]  ;;  %v5962_v62 = vld [vmem:[#allocation29_spill] sm:$0xff] }
 0x81e   :  { %2151 = vmatpush.msra.mxu0 %v5377_v29  ;;  %2174 = vmatpush.msra.mxu1 %v5097_v40  ;;  %v5967_v40 = vld [vmem:[#allocation36_spill] sm:$0xff] }
 0x81f   :  { %v1718_v13 = vpop.permute.xlu0 %1717  ;;  %2032 = vmatpush.msra.mxu2 %v5052_v45  ;;  %2055 = vmatpush.msra.mxu3 %v5055_v32  ;;  %v5963_v45 = vld [vmem:[#allocation30_spill] sm:$0xff]  ;;  %v5964_v32 = vld [vmem:[#allocation31_spill] sm:$0xff] }
 0x820   :  { %3810 = vmatmul.msk.f32.gmra.mxu0 %vm321_vm1, %v1718_v13  ;;  %3812 = vmatmul.msk.f32.gmra.mxu1 %vm321_vm1, %v1718_v13 }
 0x821   :  { %2152 = vmatpush.msra.mxu0 %v5385_v26  ;;  %2175 = vmatpush.msra.mxu1 %v5112_v22  ;;  %v5968_v22 = vld [vmem:[#allocation37_spill] sm:$0xff] }
 0x823   :  { %2153 = vmatpush.msra.mxu0 %v5389_v48  ;;  %2176 = vmatpush.msra.mxu1 %v5122_v47 }
 0x825   :  { %2154 = vmatpush.msra.mxu0 %v5135_v11  ;;  %2177 = vmatpush.msra.mxu1 %v5138_v28  ;;  %v5969_v11 = vld [vmem:[#allocation19_spill] sm:$0xff] }
 0x827   :  { %2155 = vmatpush.msra.mxu0 %v5148_v51  ;;  %2178 = vmatpush.msra.mxu1 %v5151_v59 }
 0x829   :  { %2156 = vmatpush.msra.mxu0 %v5935_v5  ;;  %2179 = vmatpush.msra.mxu1 %v5936_v7 }
 0x831   :  { %v1544_v30 = vpop.permute.xlu1 %1543 }
 0x832   :  { %1548 = vst.msk [vmem:[#allocation3 + $0x38] sm:$0xff] %vm321_vm1, %v1544_v30  ;;  %3804 = vmatmul.msk.f32.gmra.mxu2 %vm321_vm1, %v1544_v30  ;;  %3806 = vmatmul.msk.f32.gmra.mxu3 %vm321_vm1, %v1544_v30 }
 0x83a   :  { %3815 = vmatmul.msk.f32.vlgmr.msrb.gmra.mxu2 %vm321_vm1, %v1716_v50  ;;  %3817 = vmatmul.msk.f32.vlgmr.msrb.gmra.mxu3 %vm321_vm1, %v1716_v50  ;;  %v1845_v50 = vld [vmem:[#allocation2 + $0xb0] sm:$0xff] }
 0x83b   :  { %2199 = vmatpush.msrb.mxu2 %v5937_v12  ;;  %2222 = vmatpush.msrb.mxu3 %v5938_v35 }
 0x83d   :  { %2200 = vmatpush.msrb.mxu2 %v5939_v8  ;;  %2223 = vmatpush.msrb.mxu3 %v5956_v1 }
 0x83f   :  { %2201 = vmatpush.msrb.mxu2 %v5957_v25  ;;  %2224 = vmatpush.msrb.mxu3 %v5958_v2 }
 0x841   :  { %2202 = vmatpush.msrb.mxu2 %v5959_v27  ;;  %2225 = vmatpush.msrb.mxu3 %v5960_v61 }
 0x842   :  { %3816 = vmatmul.msk.f32.gmra.mxu2 %vm321_vm1, %v1718_v13  ;;  %3818 = vmatmul.msk.f32.gmra.mxu3 %vm321_vm1, %v1718_v13 }
 0x843   :  { %2203 = vmatpush.msrb.mxu2 %v5961_v60  ;;  %2226 = vmatpush.msrb.mxu3 %v5962_v62 }
 0x845   :  { %2204 = vmatpush.msrb.mxu2 %v5963_v45  ;;  %2227 = vmatpush.msrb.mxu3 %v5964_v32 }
 0x847   :  { %2205 = vmatpush.msrb.mxu2 %v5965_v31  ;;  %2228 = vmatpush.msrb.mxu3 %v5966_v36 }
 0x849   :  { %2206 = vmatpush.msrb.mxu2 %v5967_v40  ;;  %2229 = vmatpush.msrb.mxu3 %v5968_v22 }
 0x893   :  { %v1620_v51 = vpop.f32.mrf.mxu2  ;;  %v1643_v4 = vpop.f32.mrf.mxu3 }
 0x894   :  { %v1809_v9 = vadd.f32 %v5198_v56, %v1643_v4 }
 0x895   :  { %v1740_v47 = vpop.f32.mrf.mxu0  ;;  %v1763_v53 = vpop.f32.mrf.mxu1 }
 0x896   :  { %v1741_v28 = vadd.f32 %v1740_v47, %v5969_v11  ;;  %v1764_v57 = vadd.f32 %v1763_v53, %v4832_v41 }
 0x898   :  { %v1769_v59 = vadd.f32 %v1741_v28, %v1620_v51 }
 0x89a   :  { %v3813_v39 = vmul.f32 -1.442695, %v1769_v59 }
 0x89c   :  { %4078 = vpow2.f32 %v3813_v39 }
 0x89d   :  { %v1743_v15 = vpop.f32.mrf.mxu0 }
 0x89e   :  { %v1744_v3 = vadd.f32 %v1743_v15, %v5969_v11 }
 0x8a2   :  { %v4079_v5 = vpop.eup %4078 }
 0x8a3   :  { %v1777_v7 = vadd.f32 1.0, %v4079_v5 }
 0x8a5   :  { %4080 = vrcp.f32 %v1777_v7  ;;  %v1790_v17 = vand.u32 2147483648, %v1777_v7  ;;  %v1788_v63 = vand.u32 2147483647, %v1777_v7  ;;  %vm1784_vm2 = vweird.f32 %v1777_v7 }
 0x8a7   :  { %v1791_v6 = vor.u32 1.1754944e-38, %v1790_v17  ;;  %vm1789_vm4 = vcmp.eq.f32.partialorder %v1788_v63, 8.507059e+37 }
 0x8ab   :  { %v4081_v12 = vpop.eup %4080 }
 0x8ac   :  { %v1780_v35 = vmul.f32 %v4081_v12, %v1777_v7  ;;  %vm1785_vm15 = vweird.f32 %v4081_v12 }
 0x8ad   :  { %vm1786_vm3 = vmor %vm1784_vm2, %vm1785_vm15 }
 0x8ae   :  { %v1781_v8 = vsub.f32 1.0, %v1780_v35 }
 0x8b0   :  { %v1782_v42 = vmul.f32 %v4081_v12, %v1781_v8 }
 0x8b2   :  { %v1783_v0 = vadd.f32 %v4081_v12, %v1782_v42 }
 0x8b4   :  { %v1787_v14 = vsel %vm1786_vm3, %v4081_v12, %v1783_v0 }
 0x8b5   :  { %v5425_v52 = vsel %vm1789_vm4, %v1791_v6, %v1787_v14  ;;  %v1623_v46 = vpop.f32.mrf.mxu2  ;;  %v1646_v60 = vpop.f32.mrf.mxu3 }
 0x8b6   :  { %v1811_v54 = vmul.f32 %v1809_v9, %v5425_v52  ;;  %v1770_v24 = vadd.f32 %v1744_v3, %v1623_v46  ;;  %v1810_v14 = vadd.f32 %v5198_v56, %v1646_v60  ;;  %v1844_v3 = vld [vmem:[#allocation2 + $0xa8] sm:$0xff] }
 0x8b8   :  { %v1813_v20 = vadd.f32 %v1811_v54, %v1764_v57  ;;  %v3814_v21 = vmul.f32 -1.442695, %v1770_v24  ;;  %v1766_v57 = vpop.f32.mrf.mxu1 }
 0x8ba   :  { %4082 = vtanh.f32 %v1813_v20 }
 0x8bb   :  { %4084 = vpow2.f32 %v3814_v21 }
 0x8bd   :  { %v1864_v16 = vpop.f32.mrf.mxu2  ;;  %v1887_v28 = vpop.f32.mrf.mxu3 }
 0x8be   :  { %v1943_v18 = vadd.f32 %v1864_v16, %v5970_v38  ;;  %v1983_v42 = vadd.f32 %v5322_v37, %v1887_v28 }
 0x8c0   :  { %v4083_v43 = vpop.eup %4082  ;;  %v3823_v55 = vmul.f32 -1.442695, %v1943_v18  ;;  %v1767_v18 = vadd.f32 %v1766_v57, %v4832_v41 }
 0x8c1   :  { %v4085_v23 = vpop.eup %4084  ;;  %1821 = vrot.lane.b32.xlu2 %v4083_v43, %s4476_s1 }
 0x8c2   :  { %v1778_v19 = vadd.f32 1.0, %v4085_v23  ;;  %4086 = vpow2.f32 %v3823_v55 }
 0x8c4   :  { %4088 = vrcp.f32 %v1778_v19  ;;  %v1805_v59 = vand.u32 2147483648, %v1778_v19  ;;  %vm1799_vm7 = vweird.f32 %v1778_v19  ;;  %v1803_v7 = vand.u32 2147483647, %v1778_v19 }
 0x8c5   :  { %v1867_v13 = vpop.f32.mrf.mxu2  ;;  %v1890_v16 = vpop.f32.mrf.mxu3 }
 0x8c6   :  { %v1944_v30 = vadd.f32 %v1867_v13, %v1845_v50  ;;  %v1806_v63 = vor.u32 1.1754944e-38, %v1805_v59  ;;  %vm1804_vm12 = vcmp.eq.f32.partialorder %v1803_v7, 8.507059e+37  ;;  %v1984_v56 = vadd.f32 %v5322_v37, %v1890_v16  ;;  %v1846_v13 = vld [vmem:[#allocation2 + $0xb8] sm:$0xff]  ;;  %v4305_v16 = vld [vmem:[#allocation9 + $0x68] sm:$0xff] }
 0x8c8   :  { %v4087_v1 = vpop.eup %4086  ;;  %v3824_v25 = vmul.f32 -1.442695, %v1944_v30 }
 0x8c9   :  { %v1951_v2 = vadd.f32 1.0, %v4087_v1 }
 0x8ca   :  { %v4089_v27 = vpop.eup %4088  ;;  %4090 = vpow2.f32 %v3824_v25 }
 0x8cb   :  { %v1795_v61 = vmul.f32 %v4089_v27, %v1778_v19  ;;  %4092 = vrcp.f32 %v1951_v2  ;;  %vm1800_vm5 = vweird.f32 %v4089_v27  ;;  %v1964_v51 = vand.u32 2147483648, %v1951_v2 }
 0x8cc   :  { %v1962_v5 = vand.u32 2147483647, %v1951_v2  ;;  %vm1801_vm8 = vmor %vm1799_vm7, %vm1800_vm5  ;;  %vm1958_vm9 = vweird.f32 %v1951_v2 }
 0x8cd   :  { %v1796_v62 = vsub.f32 1.0, %v1795_v61  ;;  %v1965_v17 = vor.u32 1.1754944e-38, %v1964_v51 }
 0x8ce   :  { %vm1963_vm11 = vcmp.eq.f32.partialorder %v1962_v5, 8.507059e+37 }
 0x8cf   :  { %v1797_v31 = vmul.f32 %v4089_v27, %v1796_v62  ;;  %v1829_v62 = vmul.f32 %v5425_v52, %v5331_v44 }
 0x8d0   :  { %v4091_v45 = vpop.eup %4090 }
 0x8d1   :  { %v4093_v32 = vpop.eup %4092  ;;  %v1952_v36 = vadd.f32 1.0, %v4091_v45  ;;  %v1798_v47 = vadd.f32 %v4089_v27, %v1797_v31 }
 0x8d2   :  { %v1954_v40 = vmul.f32 %v4093_v32, %v1951_v2  ;;  %vm1959_vm6 = vweird.f32 %v4093_v32 }
 0x8d3   :  { %4094 = vrcp.f32 %v1952_v36  ;;  %v1802_v8 = vsel %vm1801_vm8, %v4089_v27, %v1798_v47  ;;  %vm1960_vm10 = vmor %vm1958_vm9, %vm1959_vm6  ;;  %v1979_v46 = vand.u32 2147483648, %v1952_v36  ;;  %v1977_v20 = vand.u32 2147483647, %v1952_v36 }
 0x8d4   :  { %v1955_v22 = vsub.f32 1.0, %v1954_v40  ;;  %v1807_v53 = vsel %vm1804_vm12, %v1806_v63, %v1802_v8  ;;  %vm1973_vm0 = vweird.f32 %v1952_v36  ;;  %v1817_v27 = vsub.f32 1.0, %v5425_v52  ;;  %v5472_v8 = vld [vmem:[#allocation9 + $0x108] sm:$0xff]  ;;  %v5481_v63 = vld [vmem:[#allocation9 + $0xe0] sm:$0xff] }
 0x8d5   :  { %v1812_v21 = vmul.f32 %v1810_v14, %v1807_v53  ;;  %v1980_v43 = vor.u32 1.1754944e-38, %v1979_v46  ;;  %vm1978_vm15 = vcmp.eq.f32.partialorder %v1977_v20, 8.507059e+37  ;;  %v1818_v28 = vsub.f32 1.0, %v1807_v53  ;;  %v5502_v14 = vld [vmem:[#allocation9 + $0xb8] sm:$0xff]  ;;  %v5508_v46 = vld [vmem:[#allocation9 + $0xa8] sm:$0xff] }
 0x8d6   :  { %v1956_v39 = vmul.f32 %v4093_v32, %v1955_v22  ;;  %v1830_v5 = vmul.f32 %v1807_v53, %v5346_v33  ;;  %v5466_v33 = vld [vmem:[#allocation9 + $0x118] sm:$0xff]  ;;  %v5493_v53 = vld [vmem:[#allocation9 + $0xc0] sm:$0xff] }
 0x8d7   :  { %v1814_v23 = vadd.f32 %v1812_v21, %v1767_v18  ;;  %v4304_v20 = vld [vmem:[#allocation9 + $0x78] sm:$0xff] }
 0x8d8   :  { %v1957_v12 = vadd.f32 %v4093_v32, %v1956_v39  ;;  %v4310_v18 = vld [vmem:[#allocation9 + $0x38] sm:$0xff] }
 0x8d9   :  { %v4095_v35 = vpop.eup %4094 }
 0x8da   :  { %v1961_v4 = vsel %vm1960_vm10, %v4093_v32, %v1957_v12  ;;  %v1969_v15 = vmul.f32 %v4095_v35, %v1952_v36  ;;  %vm1974_vm13 = vweird.f32 %v4095_v35 }
 0x8db   :  { %v1966_v0 = vsel %vm1963_vm11, %v1965_v17, %v1961_v4  ;;  %vm1975_vm14 = vmor %vm1973_vm0, %vm1974_vm13  ;;  %v5475_v17 = vld [vmem:[#allocation9 + $0xf0] sm:$0xff]  ;;  %v5484_v4 = vld [vmem:[#allocation9 + $0xe8] sm:$0xff] }
 0x8dc   :  { %v1985_v6 = vmul.f32 %v1983_v42, %v1966_v0  ;;  %v1970_v9 = vsub.f32 1.0, %v1969_v15  ;;  %v1991_v32 = vsub.f32 1.0, %v1966_v0  ;;  %v2003_v40 = vmul.f32 %v1966_v0, %v5341_v49  ;;  %v5478_v42 = vld [vmem:[#allocation9 + $0xf8] sm:$0xff]  ;;  %v5487_v15 = vld [vmem:[#allocation9 + $0xd0] sm:$0xff] }
 0x8dd   :  { %v5490_v0 = vld [vmem:[#allocation9 + $0xd8] sm:$0xff] }
 0x8de   :  { %v1987_v54 = vadd.f32 %v1985_v6, %v1844_v3  ;;  %v1971_v24 = vmul.f32 %v4095_v35, %v1970_v9  ;;  %v5496_v6 = vld [vmem:[#allocation9 + $0xc8] sm:$0xff]  ;;  %v5499_v9 = vld [vmem:[#allocation9 + $0xb0] sm:$0xff]  ;;  %v5505_v3 = vld [vmem:[#allocation9 + $0xa0] sm:$0xff] }
 0x8e0   :  { %4096 = vtanh.f32 %v1987_v54  ;;  %v1972_v38 = vadd.f32 %v4095_v35, %v1971_v24  ;;  %v4302_v54 = vld [vmem:[#allocation9 + $0x98] sm:$0xff]  ;;  %v4303_v24 = vld [vmem:[#allocation9 + $0x88] sm:$0xff] }
 0x8e1   :  { %4098 = vtanh.f32 %v1814_v23  ;;  %v4316_v23 = vld [vmem:[#allocation9 + $0x188] sm:$0xff] }
 0x8e2   :  { %v1976_v55 = vsel %vm1975_vm14, %v4095_v35, %v1972_v38  ;;  %v5469_v35 = vld [vmem:[#allocation9 + $0x100] sm:$0xff]  ;;  %v4309_v38 = vld [vmem:[#allocation9 + $0x30] sm:$0xff] }
 0x8e3   :  { %v1981_v19 = vsel %vm1978_vm15, %v1980_v43, %v1976_v55  ;;  %v4312_v43 = vld [vmem:[#allocation9 + $0x28] sm:$0xff]  ;;  %v4313_v55 = vld [vmem:[#allocation9 + $0x190] sm:$0xff] }
 0x8e4   :  { %v1986_v50 = vmul.f32 %v1984_v56, %v1981_v19  ;;  %v1992_v47 = vsub.f32 1.0, %v1981_v19  ;;  %v2004_v39 = vmul.f32 %v1981_v19, %v5336_v10  ;;  %v5463_v10 = vld [vmem:[#allocation9 + $0x110] sm:$0xff]  ;;  %v4315_v56 = vld [vmem:[#allocation9 + $0x180] sm:$0xff] }
 0x8e5   :  { %v4317_v19 = vld [vmem:[#allocation9 + $0x170] sm:$0xff] }
 0x8e6   :  { %v4097_v30 = vpop.eup %4096  ;;  %v1988_v1 = vadd.f32 %v1986_v50, %v1846_v13  ;;  %v4318_v50 = vld [vmem:[#allocation9 + $0x178] sm:$0xff]  ;;  %v4319_v13 = vld [vmem:[#allocation9 + $0x160] sm:$0xff] }
 0x8e7   :  { %1995 = vrot.lane.b32.xlu1 %v4097_v30, %s4476_s1  ;;  %v4099_v25 = vpop.eup %4098  ;;  %v4320_v30 = vld [vmem:[#allocation9 + $0x168] sm:$0xff] }
 0x8e8   :  { %4100 = vtanh.f32 %v1988_v1  ;;  %v4321_v1 = vld [vmem:[#allocation9 + $0x150] sm:$0xff] }
 0x8ee   :  { %v4101_v2 = vpop.eup %4100 }
 0x8ef   :  { %1997 = vrot.lane.b32.xlu0 %v4101_v2, %s4476_s1  ;;  %1823 = vrot.lane.b32.xlu1 %v4099_v25, %s4476_s1  ;;  %v4322_v25 = vld [vmem:[#allocation9 + $0x158] sm:$0xff]  ;;  %v4323_v2 = vld [vmem:[#allocation9 + $0x140] sm:$0xff] }
 0x91b   :  { %v1822_v61 = vpop.permute.xlu2 %1821 }
 0x91c   :  { %v1827_v60 = vmul.f32 %v1822_v61, %v1817_v27  ;;  %v4324_v27 = vld [vmem:[#allocation9 + $0x148] sm:$0xff]  ;;  %v4325_v61 = vld [vmem:[#allocation9 + $0x130] sm:$0xff] }
 0x91e   :  { %v5441_v45 = vadd.f32 %v1829_v62, %v1827_v60  ;;  %v4326_v60 = vld [vmem:[#allocation9 + $0x138] sm:$0xff] }
 0x920   :  { %1835 = vrot.lane.b32.xlu0 %v5441_v45, %s4476_s1 }
 0x959   :  { %v1996_v31 = vpop.permute.xlu1 %1995 }
 0x95a   :  { %v2001_v36 = vmul.f32 %v1996_v31, %v1991_v32  ;;  %v4327_v32 = vld [vmem:[#allocation9 + $0x120] sm:$0xff]  ;;  %v4328_v31 = vld [vmem:[#allocation9 + $0x128] sm:$0xff] }
 0x95c   :  { %v5446_v22 = vadd.f32 %v2003_v40, %v2001_v36 }
 0x95e   :  { %2009 = vrot.lane.b32.xlu2 %v5446_v22, %s4476_s1 }
 0x961   :  { %v1998_v51 = vpop.permute.xlu0 %1997  ;;  %v1824_v59 = vpop.permute.xlu1 %1823 }
 0x962   :  { %v2002_v44 = vmul.f32 %v1998_v51, %v1992_v47  ;;  %v1828_v52 = vmul.f32 %v1824_v59, %v1818_v28 }
 0x964   :  { %v5452_v7 = vadd.f32 %v2004_v39, %v2002_v44  ;;  %v5454_v12 = vadd.f32 %v1830_v5, %v1828_v52  ;;  %v2137_v44 = vld [vmem:[#allocation2 + $0xc0] sm:$0xff] }
 0x966   :  { %2011 = vrot.lane.b32.xlu1 %v5452_v7, %s4476_s1  ;;  %1837 = vrot.lane.b32.xlu2 %v5454_v12, %s4476_s1 }
 0x992   :  { %v1836_v49 = vpop.permute.xlu0 %1835 }
 0x993   :  { %1841 = vst.msk [vmem:[#allocation3 + $0x40] sm:$0xff] %vm321_vm1, %v1836_v49  ;;  %3819 = vmatmul.msk.f32.vlgmr.msrb.gmra.mxu0 %vm321_vm1, %v1836_v49  ;;  %3821 = vmatmul.msk.f32.vlgmr.msrb.gmra.mxu1 %vm321_vm1, %v1836_v49 }
 0x994   :  { %2319 = vmatpush.msrb.mxu0 %v5463_v10  ;;  %2342 = vmatpush.msrb.mxu1 %v5466_v33 }
 0x996   :  { %2320 = vmatpush.msrb.mxu0 %v5469_v35  ;;  %2343 = vmatpush.msrb.mxu1 %v5472_v8 }
 0x998   :  { %2321 = vmatpush.msrb.mxu0 %v5475_v17  ;;  %2344 = vmatpush.msrb.mxu1 %v5478_v42 }
 0x99a   :  { %2322 = vmatpush.msrb.mxu0 %v5481_v63  ;;  %2345 = vmatpush.msrb.mxu1 %v5484_v4 }
 0x99c   :  { %2323 = vmatpush.msrb.mxu0 %v5487_v15  ;;  %2346 = vmatpush.msrb.mxu1 %v5490_v0 }
 0x99e   :  { %2324 = vmatpush.msrb.mxu0 %v5493_v53  ;;  %2347 = vmatpush.msrb.mxu1 %v5496_v6 }
 0x9a0   :  { %2325 = vmatpush.msrb.mxu0 %v5499_v9  ;;  %2348 = vmatpush.msrb.mxu1 %v5502_v14 }
 0x9a2   :  { %2326 = vmatpush.msrb.mxu0 %v5505_v3  ;;  %2349 = vmatpush.msrb.mxu1 %v5508_v46 }
 0x9b8   :  { %v2010_v57 = vpop.permute.xlu2 %2009 }
 0x9b9   :  { %3825 = vmatmul.msk.f32.vlgmr.msra.gmra.mxu2 %vm321_vm1, %v2010_v57  ;;  %3827 = vmatmul.msk.f32.vlgmr.msra.gmra.mxu3 %vm321_vm1, %v2010_v57 }
 0x9ba   :  { %2443 = vmatpush.msra.mxu2 %v5365_v58  ;;  %2466 = vmatpush.msra.mxu3 %v4302_v54  ;;  %v4306_v58 = vld [vmem:[#allocation9 + $0x58] sm:$0xff] }
 0x9bc   :  { %2444 = vmatpush.msra.mxu2 %v5371_v34  ;;  %2467 = vmatpush.msra.mxu3 %v4303_v24  ;;  %v4307_v34 = vld [vmem:[#allocation9 + $0x40] sm:$0xff] }
 0x9be   :  { %2445 = vmatpush.msra.mxu2 %v5377_v29  ;;  %2468 = vmatpush.msra.mxu3 %v4304_v20  ;;  %v4308_v29 = vld [vmem:[#allocation9 + $0x48] sm:$0xff] }
 0x9c0   :  { %v1838_v21 = vpop.permute.xlu2 %1837  ;;  %2446 = vmatpush.msra.mxu2 %v5385_v26  ;;  %2469 = vmatpush.msra.mxu3 %v4305_v16  ;;  %v4311_v26 = vld [vmem:[#allocation9 + $0x20] sm:$0xff] }
 0x9c1   :  { %1842 = vst.msk [vmem:[#allocation3 + $0x48] sm:$0xff] %vm321_vm1, %v1838_v21  ;;  %3820 = vmatmul.msk.f32.gmra.mxu0 %vm321_vm1, %v1838_v21  ;;  %3822 = vmatmul.msk.f32.gmra.mxu1 %vm321_vm1, %v1838_v21 }
 0x9c2   :  { %2447 = vmatpush.msra.mxu2 %v5389_v48  ;;  %2470 = vmatpush.msra.mxu3 %v4306_v58  ;;  %v4314_v48 = vld [vmem:[#allocation9 + $0x198] sm:$0xff] }
 0x9c4   :  { %2448 = vmatpush.msra.mxu2 %v4307_v34  ;;  %2471 = vmatpush.msra.mxu3 %v4308_v29 }
 0x9c6   :  { %2449 = vmatpush.msra.mxu2 %v4309_v38  ;;  %2472 = vmatpush.msra.mxu3 %v4310_v18 }
 0x9c8   :  { %2450 = vmatpush.msra.mxu2 %v4311_v26  ;;  %2473 = vmatpush.msra.mxu3 %v4312_v43  ;;  %v2139_v26 = vld [vmem:[#allocation2 + $0xd0] sm:$0xff] }
 0x9c9   :  { %3831 = vmatmul.msk.f32.vlgmr.msra.gmra.mxu0 %vm321_vm1, %v2010_v57  ;;  %3833 = vmatmul.msk.f32.vlgmr.msra.gmra.mxu1 %vm321_vm1, %v2010_v57 }
 0x9ca   :  { %2493 = vmatpush.msra.mxu0 %v4313_v55  ;;  %2516 = vmatpush.msra.mxu1 %v4314_v48 }
 0x9cc   :  { %2494 = vmatpush.msra.mxu0 %v4315_v56  ;;  %2517 = vmatpush.msra.mxu1 %v4316_v23 }
 0x9ce   :  { %2495 = vmatpush.msra.mxu0 %v4317_v19  ;;  %2518 = vmatpush.msra.mxu1 %v4318_v50 }
 0x9d0   :  { %2496 = vmatpush.msra.mxu0 %v4319_v13  ;;  %2519 = vmatpush.msra.mxu1 %v4320_v30  ;;  %v5530_v13 = vld [vmem:[#allocation9 + $0x523] ss:$0 sm:$0xff] }
 0x9d2   :  { %2497 = vmatpush.msra.mxu0 %v4321_v1  ;;  %2520 = vmatpush.msra.mxu1 %v4322_v25 }
 0x9d4   :  { %2498 = vmatpush.msra.mxu0 %v4323_v2  ;;  %2521 = vmatpush.msra.mxu1 %v4324_v27 }
 0x9d6   :  { %2499 = vmatpush.msra.mxu0 %v4325_v61  ;;  %2522 = vmatpush.msra.mxu1 %v4326_v60 }
 0x9d8   :  { %v2012_v62 = vpop.permute.xlu1 %2011  ;;  %2500 = vmatpush.msra.mxu0 %v4327_v32  ;;  %2523 = vmatpush.msra.mxu1 %v4328_v31 }
 0x9d9   :  { %3826 = vmatmul.msk.f32.gmra.mxu2 %vm321_vm1, %v2012_v62  ;;  %3828 = vmatmul.msk.f32.gmra.mxu3 %vm321_vm1, %v2012_v62 }
 0x9da   :  { %3832 = vmatmul.msk.f32.gmra.mxu0 %vm321_vm1, %v2012_v62  ;;  %3834 = vmatmul.msk.f32.gmra.mxu1 %vm321_vm1, %v2012_v62 }
 0xa10   :  { %v1914_v36 = vpop.f32.mrf.mxu0  ;;  %v1937_v54 = vpop.f32.mrf.mxu1 }
 0xa11   :  { %v2103_v30 = vadd.f32 %v5530_v13, %v1937_v54 }
 0xa3c   :  { %v2034_v40 = vpop.f32.mrf.mxu2  ;;  %v2057_v23 = vpop.f32.mrf.mxu3 }
 0xa3d   :  { %v2035_v47 = vadd.f32 %v2034_v40, %v5969_v11  ;;  %v2058_v61 = vadd.f32 %v2057_v23, %v4832_v41 }
 0xa3e   :  { %v1917_v28 = vpop.f32.mrf.mxu0  ;;  %v5528_v34 = vpop.f32.mrf.mxu1 }
 0xa3f   :  { %v2063_v51 = vadd.f32 %v2035_v47, %v1914_v36 }
 0xa41   :  { %v3829_v59 = vmul.f32 -1.442695, %v2063_v51 }
 0xa43   :  { %4102 = vpow2.f32 %v3829_v59 }
 0xa46   :  { %v2158_v52 = vpop.f32.mrf.mxu0  ;;  %v2181_v47 = vpop.f32.mrf.mxu1 }
 0xa47   :  { %v2237_v39 = vadd.f32 %v2158_v52, %v2137_v44 }
 0xa49   :  { %v4103_v5 = vpop.eup %4102  ;;  %v3839_v49 = vmul.f32 -1.442695, %v2237_v39 }
 0xa4a   :  { %v2071_v57 = vadd.f32 1.0, %v4103_v5 }
 0xa4b   :  { %4104 = vpow2.f32 %v3839_v49  ;;  %v2277_v49 = vadd.f32 %v5322_v37, %v2181_v47 }
 0xa4c   :  { %4106 = vrcp.f32 %v2071_v57  ;;  %v2084_v29 = vand.u32 2147483648, %v2071_v57  ;;  %v2082_v18 = vand.u32 2147483647, %v2071_v57  ;;  %vm2078_vm3 = vweird.f32 %v2071_v57 }
 0xa4e   :  { %v2085_v19 = vor.u32 1.1754944e-38, %v2084_v29  ;;  %vm2083_vm5 = vcmp.eq.f32.partialorder %v2082_v18, 8.507059e+37 }
 0xa51   :  { %v4105_v24 = vpop.eup %4104 }
 0xa52   :  { %v4107_v20 = vpop.eup %4106  ;;  %v2245_v21 = vadd.f32 1.0, %v4105_v24 }
 0xa53   :  { %v2074_v16 = vmul.f32 %v4107_v20, %v2071_v57  ;;  %vm2079_vm2 = vweird.f32 %v4107_v20 }
 0xa54   :  { %4108 = vrcp.f32 %v2245_v21  ;;  %vm2080_vm4 = vmor %vm2078_vm3, %vm2079_vm2  ;;  %v2256_v31 = vand.u32 2147483647, %v2245_v21  ;;  %v2258_v36 = vand.u32 2147483648, %v2245_v21  ;;  %vm2252_vm7 = vweird.f32 %v2245_v21 }
 0xa55   :  { %v2075_v58 = vsub.f32 1.0, %v2074_v16  ;;  %v2138_v16 = vld [vmem:[#allocation2 + $0xc8] sm:$0xff] }
 0xa56   :  { %v2259_v5 = vor.u32 1.1754944e-38, %v2258_v36  ;;  %vm2257_vm9 = vcmp.eq.f32.partialorder %v2256_v31, 8.507059e+37  ;;  %v2140_v31 = vld [vmem:[#allocation2 + $0xd8] sm:$0xff] }
 0xa57   :  { %v2076_v38 = vmul.f32 %v4107_v20, %v2075_v58  ;;  %v2161_v43 = vpop.f32.mrf.mxu0  ;;  %v2184_v23 = vpop.f32.mrf.mxu1 }
 0xa58   :  { %v2238_v55 = vadd.f32 %v2161_v43, %v2139_v26 }
 0xa59   :  { %v2077_v48 = vadd.f32 %v4107_v20, %v2076_v38 }
 0xa5a   :  { %v4109_v56 = vpop.eup %4108  ;;  %v3840_v50 = vmul.f32 -1.442695, %v2238_v55 }
 0xa5b   :  { %v2081_v1 = vsel %vm2080_vm4, %v4107_v20, %v2077_v48  ;;  %v2248_v25 = vmul.f32 %v4109_v56, %v2245_v21  ;;  %vm2253_vm6 = vweird.f32 %v4109_v56 }
 0xa5c   :  { %v5533_v2 = vsel %vm2083_vm5, %v2085_v19, %v2081_v1  ;;  %4110 = vpow2.f32 %v3840_v50  ;;  %v2037_v27 = vpop.f32.mrf.mxu2  ;;  %vm2254_vm8 = vmor %vm2252_vm7, %vm2253_vm6 }
 0xa5d   :  { %v2105_v60 = vmul.f32 %v2103_v30, %v5533_v2  ;;  %v2249_v62 = vsub.f32 1.0, %v2248_v25  ;;  %v2038_v32 = vadd.f32 %v2037_v27, %v5969_v11  ;;  %v2278_v27 = vadd.f32 %v5322_v37, %v2184_v23 }
 0xa5f   :  { %v2107_v40 = vadd.f32 %v2105_v60, %v2058_v61  ;;  %v2250_v51 = vmul.f32 %v4109_v56, %v2249_v62  ;;  %v2064_v59 = vadd.f32 %v2038_v32, %v1917_v28 }
 0xa61   :  { %4112 = vtanh.f32 %v2107_v40  ;;  %v2251_v44 = vadd.f32 %v4109_v56, %v2250_v51  ;;  %v3830_v52 = vmul.f32 -1.442695, %v2064_v59  ;;  %v2060_v59 = vpop.f32.mrf.mxu3 }
 0xa62   :  { %v4111_v39 = vpop.eup %4110 }
 0xa63   :  { %v2255_v57 = vsel %vm2254_vm8, %v4109_v56, %v2251_v44  ;;  %v2246_v54 = vadd.f32 1.0, %v4111_v39  ;;  %4114 = vpow2.f32 %v3830_v52  ;;  %v2104_v52 = vadd.f32 %v5530_v13, %v5528_v34 }
 0xa64   :  { %v2260_v24 = vsel %vm2257_vm9, %v2259_v5, %v2255_v57  ;;  %v2061_v5 = vadd.f32 %v2060_v59, %v4832_v41 }
 0xa65   :  { %v2279_v20 = vmul.f32 %v2277_v49, %v2260_v24  ;;  %4116 = vrcp.f32 %v2246_v54  ;;  %v2273_v55 = vand.u32 2147483648, %v2246_v54  ;;  %v2271_v56 = vand.u32 2147483647, %v2246_v54 }
 0xa66   :  { %vm2267_vm11 = vweird.f32 %v2246_v54 }
 0xa67   :  { %v4113_v58 = vpop.eup %4112  ;;  %v2281_v29 = vadd.f32 %v2279_v20, %v2138_v16  ;;  %v2274_v30 = vor.u32 1.1754944e-38, %v2273_v55  ;;  %vm2272_vm13 = vcmp.eq.f32.partialorder %v2271_v56, 8.507059e+37  ;;  %v2285_v16 = vsub.f32 1.0, %v2260_v24 }
 0xa68   :  { %2115 = vrot.lane.b32.xlu0 %v4113_v58, %s4476_s1 }
 0xa69   :  { %v4115_v28 = vpop.eup %4114  ;;  %4118 = vtanh.f32 %v2281_v29 }
 0xa6a   :  { %v2072_v21 = vadd.f32 1.0, %v4115_v28  ;;  %v2297_v28 = vmul.f32 %v2260_v24, %v5446_v22 }
 0xa6b   :  { %v4117_v38 = vpop.eup %4116 }
 0xa6c   :  { %v2263_v18 = vmul.f32 %v4117_v38, %v2246_v54  ;;  %4120 = vrcp.f32 %v2072_v21  ;;  %vm2268_vm10 = vweird.f32 %v4117_v38  ;;  %v2099_v32 = vand.u32 2147483648, %v2072_v21 }
 0xa6d   :  { %vm2269_vm12 = vmor %vm2267_vm11, %vm2268_vm10  ;;  %v2097_v40 = vand.u32 2147483647, %v2072_v21  ;;  %vm2093_vm14 = vweird.f32 %v2072_v21 }
 0xa6e   :  { %v2264_v26 = vsub.f32 1.0, %v2263_v18  ;;  %v2100_v44 = vor.u32 1.1754944e-38, %v2099_v32 }
 0xa6f   :  { %v4119_v43 = vpop.eup %4118  ;;  %vm2098_vm2 = vcmp.eq.f32.partialorder %v2097_v40, 8.507059e+37 }
 0xa70   :  { %v2265_v48 = vmul.f32 %v4117_v38, %v2264_v26  ;;  %2289 = vrot.lane.b32.xlu2 %v4119_v43, %s4476_s1  ;;  %v2123_v26 = vmul.f32 %v5533_v2, %v5441_v45 }
 0xa72   :  { %v4121_v19 = vpop.eup %4120  ;;  %v2266_v50 = vadd.f32 %v4117_v38, %v2265_v48 }
 0xa73   :  { %v2089_v1 = vmul.f32 %v4121_v19, %v2072_v21  ;;  %vm2094_vm0 = vweird.f32 %v4121_v19  ;;  %v2111_v21 = vsub.f32 1.0, %v5533_v2 }
 0xa74   :  { %v2270_v25 = vsel %vm2269_vm12, %v4117_v38, %v2266_v50  ;;  %vm2095_vm15 = vmor %vm2093_vm14, %vm2094_vm0 }
 0xa75   :  { %v2275_v61 = vsel %vm2272_vm13, %v2274_v30, %v2270_v25  ;;  %v2090_v60 = vsub.f32 1.0, %v2089_v1 }
 0xa76   :  { %v2280_v62 = vmul.f32 %v2278_v27, %v2275_v61  ;;  %v2286_v55 = vsub.f32 1.0, %v2275_v61  ;;  %v2298_v24 = vmul.f32 %v2275_v61, %v5452_v7 }
 0xa77   :  { %v2091_v36 = vmul.f32 %v4121_v19, %v2090_v60 }
 0xa78   :  { %v2282_v47 = vadd.f32 %v2280_v62, %v2140_v31 }
 0xa79   :  { %v2092_v51 = vadd.f32 %v4121_v19, %v2091_v36  ;;  %v2433_v36 = vld [vmem:[#allocation2 + $0xf0] sm:$0xff] }
 0xa7a   :  { %4122 = vtanh.f32 %v2282_v47 }
 0xa7b   :  { %v2096_v39 = vsel %vm2095_vm15, %v4121_v19, %v2092_v51 }
 0xa7c   :  { %v2101_v37 = vsel %vm2098_vm2, %v2100_v44, %v2096_v39 }
 0xa7d   :  { %v2106_v49 = vmul.f32 %v2104_v52, %v2101_v37  ;;  %v2112_v23 = vsub.f32 1.0, %v2101_v37  ;;  %v2124_v45 = vmul.f32 %v2101_v37, %v5454_v12 }
 0xa7f   :  { %v2108_v57 = vadd.f32 %v2106_v49, %v2061_v5 }
 0xa80   :  { %v4123_v54 = vpop.eup %4122 }
 0xa81   :  { %4124 = vtanh.f32 %v2108_v57  ;;  %2291 = vrot.lane.b32.xlu0 %v4123_v54, %s4476_s1 }
 0xa87   :  { %v4125_v20 = vpop.eup %4124 }
 0xa88   :  { %2117 = vrot.lane.b32.xlu1 %v4125_v20, %s4476_s1 }
 0xaca   :  { %v2290_v58 = vpop.permute.xlu2 %2289 }
 0xacb   :  { %v2295_v29 = vmul.f32 %v2290_v58, %v2285_v16 }
 0xacd   :  { %v5548_v34 = vadd.f32 %v2297_v28, %v2295_v29 }
 0xacf   :  { %2303 = vrot.lane.b32.xlu0 %v5548_v34, %s4476_s1 }
 0xada   :  { %v2116_v38 = vpop.permute.xlu0 %2115 }
 0xadb   :  { %v2121_v18 = vmul.f32 %v2116_v38, %v2111_v21 }
 0xadd   :  { %v5555_v43 = vadd.f32 %v2123_v26, %v2121_v18 }
 0xadf   :  { %2129 = vrot.lane.b32.xlu1 %v5555_v43, %s4476_s1 }
 0xaf3   :  { %v2292_v48 = vpop.permute.xlu0 %2291 }
 0xaf4   :  { %v2296_v22 = vmul.f32 %v2292_v48, %v2286_v55 }
 0xaf6   :  { %v5560_v56 = vadd.f32 %v2298_v24, %v2296_v22 }
 0xaf8   :  { %2305 = vrot.lane.b32.xlu1 %v5560_v56, %s4476_s1 }
 0xafa   :  { %v2118_v19 = vpop.permute.xlu1 %2117 }
 0xafb   :  { %v2122_v50 = vmul.f32 %v2118_v19, %v2112_v23 }
 0xafd   :  { %v5565_v2 = vadd.f32 %v2124_v45, %v2122_v50 }
 0xaff   :  { %2131 = vrot.lane.b32.xlu2 %v5565_v2, %s4476_s1 }
 0xb41   :  { %v2304_v30 = vpop.permute.xlu0 %2303 }
 0xb42   :  { %3841 = vmatmul.msk.f32.vlgmr.msrb.gmra.mxu0 %vm321_vm1, %v2304_v30  ;;  %3843 = vmatmul.msk.f32.vlgmr.msrb.gmra.mxu1 %vm321_vm1, %v2304_v30 }
 0xb51   :  { %v2130_v7 = vpop.permute.xlu1 %2129 }
 0xb52   :  { %2135 = vst.msk [vmem:[#allocation3 + $0x50] sm:$0xff] %vm321_vm1, %v2130_v7  ;;  %3835 = vmatmul.msk.f32.vlgmr.msrb.gmra.mxu2 %vm321_vm1, %v2130_v7  ;;  %3837 = vmatmul.msk.f32.vlgmr.msrb.gmra.mxu3 %vm321_vm1, %v2130_v7 }
 0xb53   :  { %2613 = vmatpush.msrb.mxu2 %v5463_v10  ;;  %2636 = vmatpush.msrb.mxu3 %v5466_v33 }
 0xb55   :  { %2614 = vmatpush.msrb.mxu2 %v5469_v35  ;;  %2637 = vmatpush.msrb.mxu3 %v5472_v8 }
 0xb57   :  { %2615 = vmatpush.msrb.mxu2 %v5475_v17  ;;  %2638 = vmatpush.msrb.mxu3 %v5478_v42 }
 0xb59   :  { %v2132_v12 = vpop.permute.xlu2 %2131  ;;  %2616 = vmatpush.msrb.mxu2 %v5481_v63  ;;  %2639 = vmatpush.msrb.mxu3 %v5484_v4 }
 0xb5a   :  { %2136 = vst.msk [vmem:[#allocation3 + $0x58] sm:$0xff] %vm321_vm1, %v2132_v12  ;;  %3836 = vmatmul.msk.f32.gmra.mxu2 %vm321_vm1, %v2132_v12  ;;  %3838 = vmatmul.msk.f32.gmra.mxu3 %vm321_vm1, %v2132_v12 }
 0xb5b   :  { %2617 = vmatpush.msrb.mxu2 %v5487_v15  ;;  %2640 = vmatpush.msrb.mxu3 %v5490_v0  ;;  %v2431_v0 = vld [vmem:[#allocation2 + $0xe0] sm:$0xff] }
 0xb5d   :  { %2618 = vmatpush.msrb.mxu2 %v5493_v53  ;;  %2641 = vmatpush.msrb.mxu3 %v5496_v6 }
 0xb5f   :  { %2619 = vmatpush.msrb.mxu2 %v5499_v9  ;;  %2642 = vmatpush.msrb.mxu3 %v5502_v14 }
 0xb61   :  { %2620 = vmatpush.msrb.mxu2 %v5505_v3  ;;  %2643 = vmatpush.msrb.mxu3 %v5508_v46 }
 0xb62   :  { %3847 = vmatmul.msk.f32.vlgmr.msra.gmra.mxu2 %vm321_vm1, %v2304_v30  ;;  %3849 = vmatmul.msk.f32.vlgmr.msra.gmra.mxu3 %vm321_vm1, %v2304_v30 }
 0xb6a   :  { %v2306_v10 = vpop.permute.xlu1 %2305 }
 0xb6b   :  { %3842 = vmatmul.msk.f32.gmra.mxu0 %vm321_vm1, %v2306_v10  ;;  %3844 = vmatmul.msk.f32.gmra.mxu1 %vm321_vm1, %v2306_v10 }
 0xb6c   :  { %3848 = vmatmul.msk.f32.gmra.mxu2 %vm321_vm1, %v2306_v10  ;;  %3850 = vmatmul.msk.f32.gmra.mxu3 %vm321_vm1, %v2306_v10  ;;  %v4330_v10 = vld [vmem:[#allocation9 + $0x521] ss:$0 sm:$0xff] }
 0xbbf   :  { %v2328_v33 = vpop.f32.mrf.mxu0  ;;  %v2351_v44 = vpop.f32.mrf.mxu1 }
 0xbc0   :  { %v2329_v35 = vadd.f32 %v2328_v33, %v5969_v11  ;;  %v2352_v54 = vadd.f32 %v2351_v44, %v4832_v41 }
 0xbd5   :  { %v2208_v8 = vpop.f32.mrf.mxu2  ;;  %v2231_v25 = vpop.f32.mrf.mxu3 }
 0xbd6   :  { %v2357_v17 = vadd.f32 %v2329_v35, %v2208_v8  ;;  %v2397_v5 = vadd.f32 %v5530_v13, %v2231_v25 }
 0xbd8   :  { %v3845_v42 = vmul.f32 -1.442695, %v2357_v17 }
 0xbda   :  { %4126 = vpow2.f32 %v3845_v42 }
 0xbdd   :  { %v2211_v63 = vpop.f32.mrf.mxu2  ;;  %v2234_v58 = vpop.f32.mrf.mxu3 }
 0xbe0   :  { %v4127_v4 = vpop.eup %4126 }
 0xbe1   :  { %v2365_v15 = vadd.f32 1.0, %v4127_v4 }
 0xbe3   :  { %4128 = vrcp.f32 %v2365_v15  ;;  %v2378_v60 = vand.u32 2147483648, %v2365_v15  ;;  %v2376_v31 = vand.u32 2147483647, %v2365_v15  ;;  %vm2372_vm4 = vweird.f32 %v2365_v15 }
 0xbe5   :  { %v2452_v53 = vpop.f32.mrf.mxu2  ;;  %v2379_v52 = vor.u32 1.1754944e-38, %v2378_v60  ;;  %vm2377_vm6 = vcmp.eq.f32.partialorder %v2376_v31, 8.507059e+37  ;;  %v2475_v50 = vpop.f32.mrf.mxu3 }
 0xbe6   :  { %v2531_v6 = vadd.f32 %v2452_v53, %v2431_v0  ;;  %v2571_v33 = vadd.f32 %v4330_v10, %v2475_v50  ;;  %v2398_v53 = vadd.f32 %v5530_v13, %v2234_v58 }
 0xbe8   :  { %v3855_v9 = vmul.f32 -1.442695, %v2531_v6  ;;  %v2331_v14 = vpop.f32.mrf.mxu0  ;;  %v2432_v6 = vld [vmem:[#allocation2 + $0xe8] sm:$0xff] }
 0xbe9   :  { %v4129_v3 = vpop.eup %4128  ;;  %v2332_v46 = vadd.f32 %v2331_v14, %v5969_v11 }
 0xbea   :  { %v2368_v1 = vmul.f32 %v4129_v3, %v2365_v15  ;;  %4130 = vpow2.f32 %v3855_v9  ;;  %vm2373_vm3 = vweird.f32 %v4129_v3 }
 0xbeb   :  { %v2358_v27 = vadd.f32 %v2332_v46, %v2211_v63  ;;  %vm2374_vm5 = vmor %vm2372_vm4, %vm2373_vm3  ;;  %v2354_v46 = vpop.f32.mrf.mxu1 }
 0xbec   :  { %v2369_v61 = vsub.f32 1.0, %v2368_v1  ;;  %v2355_v31 = vadd.f32 %v2354_v46, %v4832_v41  ;;  %v2739_v46 = vld [vmem:[#allocation3 + $0x38] sm:$0xff] }
 0xbed   :  { %v3846_v62 = vmul.f32 -1.442695, %v2358_v27 }
 0xbee   :  { %v2370_v32 = vmul.f32 %v4129_v3, %v2369_v61 }
 0xbef   :  { %4132 = vpow2.f32 %v3846_v62  ;;  %v2455_v40 = vpop.f32.mrf.mxu2 }
 0xbf0   :  { %v4131_v47 = vpop.eup %4130  ;;  %v2371_v51 = vadd.f32 %v4129_v3, %v2370_v32  ;;  %v2532_v59 = vadd.f32 %v2455_v40, %v2433_v36  ;;  %v2478_v32 = vpop.f32.mrf.mxu3 }
 0xbf1   :  { %v2539_v39 = vadd.f32 1.0, %v4131_v47  ;;  %v2572_v44 = vadd.f32 %v4330_v10, %v2478_v32  ;;  %v2752_v10 = vld [vmem:[#allocation9 + $0x1e0] sm:$0xff]  ;;  %v2761_v32 = vld [vmem:[#allocation9 + $0x270] sm:$0xff] }
 0xbf2   :  { %v2375_v37 = vsel %vm2374_vm5, %v4129_v3, %v2371_v51  ;;  %v3856_v49 = vmul.f32 -1.442695, %v2532_v59 }
 0xbf3   :  { %v5602_v57 = vsel %vm2377_vm6, %v2379_v52, %v2375_v37  ;;  %4134 = vrcp.f32 %v2539_v39  ;;  %v2552_v48 = vand.u32 2147483648, %v2539_v39  ;;  %v2550_v23 = vand.u32 2147483647, %v2539_v39 }
 0xbf4   :  { %v2399_v20 = vmul.f32 %v2397_v5, %v5602_v57  ;;  %4136 = vpow2.f32 %v3856_v49  ;;  %vm2546_vm8 = vweird.f32 %v2539_v39  ;;  %v2434_v5 = vld [vmem:[#allocation2 + $0xf8] sm:$0xff] }
 0xbf5   :  { %v4133_v16 = vpop.eup %4132  ;;  %v2553_v7 = vor.u32 1.1754944e-38, %v2552_v48  ;;  %vm2551_vm10 = vcmp.eq.f32.partialorder %v2550_v23, 8.507059e+37 }
 0xbf6   :  { %v2401_v29 = vadd.f32 %v2399_v20, %v2352_v54  ;;  %v2366_v28 = vadd.f32 1.0, %v4133_v16 }
 0xbf8   :  { %4138 = vtanh.f32 %v2401_v29  ;;  %v2391_v42 = vand.u32 2147483647, %v2366_v28  ;;  %v2393_v63 = vand.u32 2147483648, %v2366_v28  ;;  %vm2387_vm12 = vweird.f32 %v2366_v28 }
 0xbf9   :  { %v4135_v21 = vpop.eup %4134  ;;  %4140 = vrcp.f32 %v2366_v28 }
 0xbfa   :  { %v4137_v38 = vpop.eup %4136  ;;  %v2542_v18 = vmul.f32 %v4135_v21, %v2539_v39  ;;  %vm2547_vm7 = vweird.f32 %v4135_v21  ;;  %vm2392_vm0 = vcmp.eq.f32.partialorder %v2391_v42, 8.507059e+37  ;;  %v2394_v1 = vor.u32 1.1754944e-38, %v2393_v63 }
 0xbfb   :  { %v2540_v26 = vadd.f32 1.0, %v4137_v38  ;;  %vm2548_vm9 = vmor %vm2546_vm8, %vm2547_vm7  ;;  %v2405_v38 = vsub.f32 1.0, %v5602_v57 }
 0xbfc   :  { %v2543_v55 = vsub.f32 1.0, %v2542_v18 }
 0xbfd   :  { %4142 = vrcp.f32 %v2540_v26  ;;  %v2565_v25 = vand.u32 2147483647, %v2540_v26  ;;  %v2567_v27 = vand.u32 2147483648, %v2540_v26  ;;  %vm2561_vm15 = vweird.f32 %v2540_v26 }
 0xbfe   :  { %v4139_v22 = vpop.eup %4138  ;;  %v2544_v24 = vmul.f32 %v4135_v21, %v2543_v55 }
 0xbff   :  { %v4141_v19 = vpop.eup %4140  ;;  %2409 = vrot.lane.b32.xlu0 %v4139_v22, %s4476_s1  ;;  %v2568_v47 = vor.u32 1.1754944e-38, %v2567_v27  ;;  %vm2566_vm3 = vcmp.eq.f32.partialorder %v2565_v25, 8.507059e+37  ;;  %v2741_v25 = vld [vmem:[#allocation3 + $0x48] sm:$0xff]  ;;  %v2742_v27 = vld [vmem:[#allocation3 + $0x50] sm:$0xff] }
 0xc00   :  { %v2545_v45 = vadd.f32 %v4135_v21, %v2544_v24  ;;  %v2383_v30 = vmul.f32 %v4141_v19, %v2366_v28  ;;  %vm2388_vm11 = vweird.f32 %v4141_v19  ;;  %v2417_v24 = vmul.f32 %v5602_v57, %v5555_v43  ;;  %v2755_v43 = vld [vmem:[#allocation9 + $0x210] sm:$0xff] }
 0xc01   :  { %vm2389_vm13 = vmor %vm2387_vm12, %vm2388_vm11  ;;  %2836 = vmatpush.msrb.mxu0 %v2755_v43  ;;  %v2753_v57 = vld [vmem:[#allocation9 + $0x1f0] sm:$0xff]  ;;  %vm3167_vm12 = vcmask 261120  }
 0xc02   :  { %v2549_v12 = vsel %vm2548_vm9, %v4135_v21, %v2545_v45  ;;  %v2384_v35 = vsub.f32 1.0, %v2383_v30 }
 0xc03   :  { %v4143_v8 = vpop.eup %4142  ;;  %v2554_v17 = vsel %vm2551_vm10, %v2553_v7, %v2549_v12 }
 0xc04   :  { %v2573_v4 = vmul.f32 %v2571_v33, %v2554_v17  ;;  %v2385_v15 = vmul.f32 %v4141_v19, %v2384_v35  ;;  %v2557_v0 = vmul.f32 %v4143_v8, %v2540_v26  ;;  %vm2562_vm14 = vweird.f32 %v4143_v8  ;;  %v2751_v33 = vld [vmem:[#allocation9 + $0x1d0] sm:$0xff]  ;;  %v2750_v35 = vld [vmem:[#allocation9 + $0x1c0] sm:$0xff] }
 0xc05   :  { %vm2563_vm2 = vmor %vm2561_vm15, %vm2562_vm14  ;;  %v2579_v16 = vsub.f32 1.0, %v2554_v17  ;;  %v2591_v28 = vmul.f32 %v2554_v17, %v5548_v34  ;;  %v2748_v17 = vld [vmem:[#allocation9 + $0x1a0] sm:$0xff] }
 0xc06   :  { %v2575_v9 = vadd.f32 %v2573_v4, %v2432_v6  ;;  %v2386_v14 = vadd.f32 %v4141_v19, %v2385_v15  ;;  %v2558_v3 = vsub.f32 1.0, %v2557_v0  ;;  %v2732_v15 = vld [vmem:[#allocation3] sm:$0xff]  ;;  %v2733_v0 = vld [vmem:[#allocation3 + $0x8] sm:$0xff]  ;;  %v2735_v6 = vld [vmem:[#allocation3 + $0x18] sm:$0xff] }
 0xc08   :  { %4144 = vtanh.f32 %v2575_v9  ;;  %v2390_v61 = vsel %vm2389_vm13, %v4141_v19, %v2386_v14  ;;  %v2559_v60 = vmul.f32 %v4143_v8, %v2558_v3  ;;  %v2736_v9 = vld [vmem:[#allocation3 + $0x20] sm:$0xff]  ;;  %v2737_v14 = vld [vmem:[#allocation3 + $0x28] sm:$0xff]  ;;  %v2738_v3 = vld [vmem:[#allocation3 + $0x30] sm:$0xff] }
 0xc09   :  { %v2395_v62 = vsel %vm2392_vm0, %v2394_v1, %v2390_v61  ;;  %v2740_v1 = vld [vmem:[#allocation3 + $0x40] sm:$0xff]  ;;  %v2763_v61 = vld [vmem:[#allocation9 + $0x290] sm:$0xff] }
 0xc0a   :  { %v2400_v36 = vmul.f32 %v2398_v53, %v2395_v62  ;;  %v2560_v40 = vadd.f32 %v4143_v8, %v2559_v60  ;;  %v2406_v18 = vsub.f32 1.0, %v2395_v62  ;;  %v2418_v23 = vmul.f32 %v2395_v62, %v5565_v2  ;;  %v2754_v2 = vld [vmem:[#allocation9 + $0x200] sm:$0xff]  ;;  %v2734_v53 = vld [vmem:[#allocation3 + $0x10] sm:$0xff]  ;;  %2965 = vmatpush.msrb.mxu1 %v2763_v61  ;;  %v2743_v62 = vld [vmem:[#allocation3 + $0x58] sm:$0xff] }
 0xc0b   :  { %2837 = vmatpush.msrb.mxu0 %v2754_v2  ;;  %v2762_v60 = vld [vmem:[#allocation9 + $0x280] sm:$0xff] }
 0xc0c   :  { %v2402_v51 = vadd.f32 %v2400_v36, %v2355_v31  ;;  %v2564_v59 = vsel %vm2563_vm2, %v4143_v8, %v2560_v40  ;;  %v2749_v8 = vld [vmem:[#allocation9 + $0x1b0] sm:$0xff]  ;;  %2966 = vmatpush.msrb.mxu1 %v2762_v60  ;;  %v2760_v31 = vld [vmem:[#allocation9 + $0x260] sm:$0xff] }
 0xc0d   :  { %v2569_v52 = vsel %vm2566_vm3, %v2568_v47, %v2564_v59  ;;  %2838 = vmatpush.msrb.mxu0 %v2753_v57  ;;  %v2759_v36 = vld [vmem:[#allocation9 + $0x250] sm:$0xff]  ;;  %v2758_v40 = vld [vmem:[#allocation9 + $0x240] sm:$0xff] }
 0xc0e   :  { %v4145_v39 = vpop.eup %4144  ;;  %v2574_v37 = vmul.f32 %v2572_v44, %v2569_v52  ;;  %4146 = vtanh.f32 %v2402_v51  ;;  %v2580_v34 = vsub.f32 1.0, %v2569_v52  ;;  %v2592_v7 = vmul.f32 %v2569_v52, %v5560_v56  ;;  %2967 = vmatpush.msrb.mxu1 %v2761_v32  ;;  %v2757_v51 = vld [vmem:[#allocation9 + $0x230] sm:$0xff]  ;;  %v2756_v59 = vld [vmem:[#allocation9 + $0x220] sm:$0xff] }
 0xc0f   :  { %2583 = vrot.lane.b32.xlu2 %v4145_v39, %s4476_s1  ;;  %2839 = vmatpush.msrb.mxu0 %v2752_v10 }
 0xc10   :  { %v2576_v49 = vadd.f32 %v2574_v37, %v2434_v5  ;;  %2968 = vmatpush.msrb.mxu1 %v2760_v31 }
 0xc11   :  { %2840 = vmatpush.msrb.mxu0 %v2751_v33 }
 0xc12   :  { %4148 = vtanh.f32 %v2576_v49  ;;  %2969 = vmatpush.msrb.mxu1 %v2759_v36 }
 0xc13   :  { %2841 = vmatpush.msrb.mxu0 %v2750_v35 }
 0xc14   :  { %v4147_v54 = vpop.eup %4146  ;;  %2970 = vmatpush.msrb.mxu1 %v2758_v40 }
 0xc15   :  { %2842 = vmatpush.msrb.mxu0 %v2749_v8 }
 0xc16   :  { %2971 = vmatpush.msrb.mxu1 %v2757_v51 }
 0xc17   :  { %2411 = vrot.lane.b32.xlu2 %v4147_v54, %s4476_s1  ;;  %2843 = vmatpush.msrb.mxu0 %v2748_v17 }
 0xc18   :  { %v4149_v20 = vpop.eup %4148  ;;  %2972 = vmatpush.msrb.mxu1 %v2756_v59 }
 0xc19   :  { %2585 = vrot.lane.b32.xlu1 %v4149_v20, %s4476_s1 }
 0xc69   :  { %v2584_v58 = vpop.permute.xlu2 %2583 }
 0xc6a   :  { %v2589_v29 = vmul.f32 %v2584_v58, %v2579_v16 }
 0xc6c   :  { %v2593_v21 = vadd.f32 %v2591_v28, %v2589_v29 }
 0xc6e   :  { %2597 = vrot.lane.b32.xlu0 %v2593_v21, %s4476_s1 }
 0xc71   :  { %v2410_v26 = vpop.permute.xlu0 %2409  ;;  %v2412_v55 = vpop.permute.xlu2 %2411 }
 0xc72   :  { %v2415_v48 = vmul.f32 %v2410_v26, %v2405_v38  ;;  %v2416_v22 = vmul.f32 %v2412_v55, %v2406_v18  ;;  %v5659_v38 = vld [vmem:[#allocation9 + $0x524] ss:$0 sm:$0xff] }
 0xc74   :  { %v5618_v19 = vadd.f32 %v2417_v24, %v2415_v48  ;;  %v5620_v50 = vadd.f32 %v2418_v23, %v2416_v22 }
 0xc76   :  { %2423 = vrot.lane.b32.xlu1 %v5618_v19, %s4476_s1  ;;  %2425 = vrot.lane.b32.xlu0 %v5620_v50, %s4476_s1 }
 0xc8b   :  { %v2586_v45 = vpop.permute.xlu1 %2585 }
 0xc8c   :  { %v2590_v30 = vmul.f32 %v2586_v45, %v2580_v34 }
 0xc8e   :  { %v2594_v12 = vadd.f32 %v2592_v7, %v2590_v30 }
 0xc90   :  { %2599 = vrot.lane.b32.xlu2 %v2594_v12, %s4476_s1 }
 0xce0   :  { %v2598_v56 = vpop.permute.xlu0 %2597 }
 0xce1   :  { %2727 = vst.msk [vmem:[#allocation11] sm:$0xff] %vm321_vm1, %v2598_v56  ;;  %3857 = vmatmul.msk.f32.vlgmr.msrb.gmra.mxu2 %vm321_vm1, %v2598_v56  ;;  %3859 = vmatmul.msk.f32.vlgmr.msrb.gmra.mxu3 %vm321_vm1, %v2598_v56 }
 0xce8   :  { %v2424_v42 = vpop.permute.xlu1 %2423  ;;  %v2426_v63 = vpop.permute.xlu0 %2425 }
 0xce9   :  { %2429 = vst.msk [vmem:[#allocation3 + $0x60] sm:$0xff] %vm321_vm1, %v2424_v42  ;;  %3851 = vmatmul.msk.f32.vlgmr.msra.gmra.mxu0 %vm321_vm1, %v2424_v42  ;;  %3853 = vmatmul.msk.f32.vlgmr.msra.gmra.mxu1 %vm321_vm1, %v2424_v42 }
 0xcea   :  { %2430 = vst.msk [vmem:[#allocation3 + $0x68] sm:$0xff] %vm321_vm1, %v2426_v63  ;;  %v2600_v4 = vpop.permute.xlu2 %2599 }
 0xceb   :  { %2728 = vst.msk [vmem:[#allocation11 + $0x8] sm:$0xff] %vm321_vm1, %v2600_v4  ;;  %3858 = vmatmul.msk.f32.gmra.mxu2 %vm321_vm1, %v2600_v4  ;;  %3860 = vmatmul.msk.f32.gmra.mxu3 %vm321_vm1, %v2600_v4 }
 0xcf0   :  { %v5652_v47 = vld [vmem:[#allocation3 + $0x60] sm:$0xff] }
 0xcf1   :  { %3852 = vmatmul.msk.f32.gmra.mxu0 %vm321_vm1, %v2426_v63  ;;  %3854 = vmatmul.msk.f32.gmra.mxu1 %vm321_vm1, %v2426_v63  ;;  %v2745_v44 = vld [vmem:[#allocation3 + $0x68] sm:$0xff] }
 0xcf9   :  { %3863 = vmatmul.msk.f32.vlgmr.msrb.gmra.mxu0 %vm321_vm1, %v2732_v15 }
 0xd01   :  { %3864 = vmatmul.msk.f32.gmra.mxu0 %vm321_vm1, %v2733_v0 }
 0xd09   :  { %3865 = vmatmul.msk.f32.gmra.mxu0 %vm321_vm1, %v2734_v53 }
 0xd11   :  { %3866 = vmatmul.msk.f32.gmra.mxu0 %vm321_vm1, %v2735_v6 }
 0xd19   :  { %3867 = vmatmul.msk.f32.gmra.mxu0 %vm321_vm1, %v2736_v9 }
 0xd21   :  { %3868 = vmatmul.msk.f32.gmra.mxu0 %vm321_vm1, %v2737_v14 }
 0xd29   :  { %3869 = vmatmul.msk.f32.gmra.mxu0 %vm321_vm1, %v2738_v3 }
 0xd31   :  { %3870 = vmatmul.msk.f32.gmra.mxu0 %vm321_vm1, %v2739_v46 }
 0xd39   :  { %3871 = vmatmul.msk.f32.gmra.mxu0 %vm321_vm1, %v2740_v1 }
 0xd41   :  { %3872 = vmatmul.msk.f32.gmra.mxu0 %vm321_vm1, %v2741_v25 }
 0xd49   :  { %3873 = vmatmul.msk.f32.gmra.mxu0 %vm321_vm1, %v2742_v27 }
 0xd51   :  { %3874 = vmatmul.msk.f32.gmra.mxu0 %vm321_vm1, %v2743_v62 }
 0xd59   :  { %3875 = vmatmul.msk.f32.gmra.mxu0 %vm321_vm1, %v5652_v47 }
 0xd61   :  { %3876 = vmatmul.msk.f32.gmra.mxu0 %vm321_vm1, %v2745_v44 }
 0xd64   :  { %v2622_v52 = vpop.f32.mrf.mxu2  ;;  %v2645_v57 = vpop.f32.mrf.mxu3 }
 0xd65   :  { %v2623_v39 = vadd.f32 %v2622_v52, %v5969_v11  ;;  %v2646_v42 = vadd.f32 %v2645_v57, %v4832_v41  ;;  %v2768_v57 = vld [vmem:[#allocation9 + $0x2e0] sm:$0xff] }
 0xd66   :  { %v2502_v37 = vpop.f32.mrf.mxu0  ;;  %v2525_v12 = vpop.f32.mrf.mxu1 }
 0xd67   :  { %v2651_v5 = vadd.f32 %v2623_v39, %v2502_v37  ;;  %v2691_v8 = vadd.f32 %v5530_v13, %v2525_v12 }
 0xd69   :  { %v3861_v49 = vmul.f32 -1.442695, %v2651_v5 }
 0xd6b   :  { %4150 = vpow2.f32 %v3861_v49 }
 0xd6e   :  { %v2625_v54 = vpop.f32.mrf.mxu2  ;;  %v2505_v16 = vpop.f32.mrf.mxu0 }
 0xd6f   :  { %v2626_v20 = vadd.f32 %v2625_v54, %v5969_v11  ;;  %v2528_v46 = vpop.f32.mrf.mxu1  ;;  %v2648_v27 = vpop.f32.mrf.mxu3 }
 0xd70   :  { %v2692_v62 = vadd.f32 %v5530_v13, %v2528_v46  ;;  %v2649_v36 = vadd.f32 %v2648_v27, %v4832_v41  ;;  %v5704_v46 = vld [vmem:[#allocation9 + $0x525] ss:$0 sm:$0xff] }
 0xd71   :  { %v4151_v58 = vpop.eup %4150  ;;  %v2652_v29 = vadd.f32 %v2626_v20, %v2505_v16 }
 0xd72   :  { %v2659_v28 = vadd.f32 1.0, %v4151_v58 }
 0xd73   :  { %v3862_v21 = vmul.f32 -1.442695, %v2652_v29 }
 0xd74   :  { %4152 = vrcp.f32 %v2659_v28  ;;  %v2672_v34 = vand.u32 2147483648, %v2659_v28  ;;  %v2670_v30 = vand.u32 2147483647, %v2659_v28  ;;  %vm2666_vm5 = vweird.f32 %v2659_v28 }
 0xd75   :  { %4154 = vpow2.f32 %v3862_v21 }
 0xd76   :  { %v2845_v18 = vpop.f32.mrf.mxu0  ;;  %v2673_v10 = vor.u32 1.1754944e-38, %v2672_v34  ;;  %vm2671_vm7 = vcmp.eq.f32.partialorder %v2670_v30, 8.507059e+37  ;;  %v2769_v34 = vld [vmem:[#allocation9 + $0x2f0] sm:$0xff] }
 0xd77   :  { %v2846_v26 = vadd.f32 %v2845_v18, %v5659_v38 }
 0xd79   :  { %v2893_v48 = vmax.f32 %v2846_v26, 0.0 }
 0xd7a   :  { %v4153_v55 = vpop.eup %4152 }
 0xd7b   :  { %v4155_v22 = vpop.eup %4154  ;;  %v2662_v24 = vmul.f32 %v4153_v55, %v2659_v28  ;;  %3879 = vmatmul.msk.f32.vlgmr.msrb.gmra.mxu1 %vm321_vm1, %v2893_v48  ;;  %vm2667_vm4 = vweird.f32 %v4153_v55 }
 0xd7c   :  { %v2660_v23 = vadd.f32 1.0, %v4155_v22  ;;  %vm2668_vm6 = vmor %vm2666_vm5, %vm2667_vm4 }
 0xd7d   :  { %v2663_v11 = vsub.f32 1.0, %v2662_v24 }
 0xd7e   :  { %4156 = vrcp.f32 %v2660_v23  ;;  %v2848_v7 = vpop.f32.mrf.mxu0  ;;  %v2687_v6 = vand.u32 2147483648, %v2660_v23  ;;  %v2685_v3 = vand.u32 2147483647, %v2660_v23  ;;  %vm2681_vm9 = vweird.f32 %v2660_v23 }
 0xd7f   :  { %v2664_v45 = vmul.f32 %v4153_v55, %v2663_v11  ;;  %v2849_v43 = vadd.f32 %v2848_v7, %v5659_v38  ;;  %v2770_v11 = vld [vmem:[#allocation9 + $0x300] sm:$0xff] }
 0xd80   :  { %v2688_v61 = vor.u32 1.1754944e-38, %v2687_v6  ;;  %vm2686_vm11 = vcmp.eq.f32.partialorder %v2685_v3, 8.507059e+37 }
 0xd81   :  { %v2665_v2 = vadd.f32 %v4153_v55, %v2664_v45  ;;  %v2894_v33 = vmax.f32 %v2849_v43, 0.0 }
 0xd83   :  { %v2669_v35 = vsel %vm2668_vm6, %v4153_v55, %v2665_v2  ;;  %3880 = vmatmul.msk.f32.gmra.mxu1 %vm321_vm1, %v2894_v33 }
 0xd84   :  { %v4157_v17 = vpop.eup %4156  ;;  %v5665_v56 = vsel %vm2671_vm7, %v2673_v10, %v2669_v35  ;;  %v2767_v10 = vld [vmem:[#allocation9 + $0x2d0] sm:$0xff] }
 0xd85   :  { %v2693_v63 = vmul.f32 %v2691_v8, %v5665_v56  ;;  %v2677_v4 = vmul.f32 %v4157_v17, %v2660_v23  ;;  %vm2682_vm8 = vweird.f32 %v4157_v17  ;;  %v2771_v23 = vld [vmem:[#allocation9 + $0x310] sm:$0xff]  ;;  %v2766_v8 = vld [vmem:[#allocation9 + $0x2c0] sm:$0xff] }
 0xd86   :  { %v2851_v53 = vpop.f32.mrf.mxu0  ;;  %vm2683_vm10 = vmor %vm2681_vm9, %vm2682_vm8  ;;  %3094 = vmatpush.msra.mxu2 %v2771_v23 }
 0xd87   :  { %v2695_v15 = vadd.f32 %v2693_v63, %v2646_v42  ;;  %v2678_v0 = vsub.f32 1.0, %v2677_v4  ;;  %v2852_v9 = vadd.f32 %v2851_v53, %v5659_v38  ;;  %v2765_v42 = vld [vmem:[#allocation9 + $0x2b0] sm:$0xff]  ;;  %v2764_v63 = vld [vmem:[#allocation9 + $0x2a0] sm:$0xff] }
 0xd88   :  { %3095 = vmatpush.msra.mxu2 %v2770_v11 }
 0xd89   :  { %4158 = vtanh.f32 %v2695_v15  ;;  %v2679_v14 = vmul.f32 %v4157_v17, %v2678_v0  ;;  %v2895_v1 = vmax.f32 %v2852_v9, 0.0 }
 0xd8a   :  { %3096 = vmatpush.msra.mxu2 %v2769_v34 }
 0xd8b   :  { %v2680_v25 = vadd.f32 %v4157_v17, %v2679_v14  ;;  %3881 = vmatmul.msk.f32.gmra.mxu1 %vm321_vm1, %v2895_v1 }
 0xd8c   :  { %3097 = vmatpush.msra.mxu2 %v2768_v57 }
 0xd8d   :  { %v2684_v60 = vsel %vm2683_vm10, %v4157_v17, %v2680_v25 }
 0xd8e   :  { %v5673_v32 = vsel %vm2686_vm11, %v2688_v61, %v2684_v60  ;;  %v2854_v51 = vpop.f32.mrf.mxu0  ;;  %3098 = vmatpush.msra.mxu2 %v2767_v10  ;;  %v2699_v60 = vsub.f32 1.0, %v5665_v56 }
 0xd8f   :  { %v4159_v31 = vpop.eup %4158  ;;  %v2694_v40 = vmul.f32 %v2692_v62, %v5673_v32  ;;  %v2855_v59 = vadd.f32 %v2854_v51, %v5659_v38  ;;  %v2700_v53 = vsub.f32 1.0, %v5673_v32  ;;  %v2712_v14 = vmul.f32 %v5673_v32, %v5620_v50 }
 0xd90   :  { %2703 = vrot.lane.b32.xlu1 %v4159_v31, %s4476_s1  ;;  %3099 = vmatpush.msra.mxu2 %v2766_v8  ;;  %v2711_v50 = vmul.f32 %v5665_v56, %v5618_v19  ;;  %v2773_v8 = vld [vmem:[#allocation9 + $0x330] sm:$0xff] }
 0xd91   :  { %v2696_v44 = vadd.f32 %v2694_v40, %v2649_v36  ;;  %v2896_v52 = vmax.f32 %v2855_v59, 0.0 }
 0xd92   :  { %3100 = vmatpush.msra.mxu2 %v2765_v42 }
 0xd93   :  { %4160 = vtanh.f32 %v2696_v44  ;;  %3882 = vmatmul.msk.f32.gmra.mxu1 %vm321_vm1, %v2896_v52 }
 0xd94   :  { %3101 = vmatpush.msra.mxu2 %v2764_v63 }
 0xd96   :  { %v2857_v39 = vpop.f32.mrf.mxu0 }
 0xd97   :  { %v2858_v13 = vadd.f32 %v2857_v39, %v5659_v38 }
 0xd99   :  { %v4161_v37 = vpop.eup %4160  ;;  %v2897_v5 = vmax.f32 %v2858_v13, 0.0 }
 0xd9a   :  { %2705 = vrot.lane.b32.xlu2 %v4161_v37, %s4476_s1 }
 0xd9b   :  { %3883 = vmatmul.msk.f32.gmra.mxu1 %vm321_vm1, %v2897_v5 }
 0xd9e   :  { %v2860_v41 = vpop.f32.mrf.mxu0 }
 0xd9f   :  { %v2861_v49 = vadd.f32 %v2860_v41, %v5659_v38 }
 0xda1   :  { %v2898_v54 = vmax.f32 %v2861_v49, 0.0 }
 0xda3   :  { %3884 = vmatmul.msk.f32.gmra.mxu1 %vm321_vm1, %v2898_v54 }
 0xda6   :  { %v2863_v20 = vpop.f32.mrf.mxu0 }
 0xda7   :  { %v2864_v16 = vadd.f32 %v2863_v20, %v5659_v38 }
 0xda9   :  { %v2899_v58 = vmax.f32 %v2864_v16, 0.0 }
 0xdab   :  { %3885 = vmatmul.msk.f32.gmra.mxu1 %vm321_vm1, %v2899_v58 }
 0xdae   :  { %v2866_v29 = vpop.f32.mrf.mxu0 }
 0xdaf   :  { %v2867_v28 = vadd.f32 %v2866_v29, %v5659_v38 }
 0xdb1   :  { %v2900_v21 = vmax.f32 %v2867_v28, 0.0 }
 0xdb3   :  { %3886 = vmatmul.msk.f32.gmra.mxu1 %vm321_vm1, %v2900_v21 }
 0xdb6   :  { %v2869_v18 = vpop.f32.mrf.mxu0 }
 0xdb7   :  { %v2870_v26 = vadd.f32 %v2869_v18, %v5659_v38 }
 0xdb9   :  { %v2901_v55 = vmax.f32 %v2870_v26, 0.0 }
 0xdbb   :  { %3887 = vmatmul.msk.f32.gmra.mxu1 %vm321_vm1, %v2901_v55 }
 0xdbe   :  { %v2872_v48 = vpop.f32.mrf.mxu0 }
 0xdbf   :  { %v2873_v22 = vadd.f32 %v2872_v48, %v5659_v38 }
 0xdc1   :  { %v2902_v24 = vmax.f32 %v2873_v22, 0.0 }
 0xdc3   :  { %3888 = vmatmul.msk.f32.gmra.mxu1 %vm321_vm1, %v2902_v24 }
 0xdc6   :  { %v2875_v45 = vpop.f32.mrf.mxu0 }
 0xdc7   :  { %v2876_v30 = vadd.f32 %v2875_v45, %v5659_v38 }
 0xdc9   :  { %v2903_v7 = vmax.f32 %v2876_v30, 0.0 }
 0xdcb   :  { %3889 = vmatmul.msk.f32.gmra.mxu1 %vm321_vm1, %v2903_v7 }
 0xdce   :  { %v2878_v12 = vpop.f32.mrf.mxu0 }
 0xdcf   :  { %v2879_v43 = vadd.f32 %v2878_v12, %v5659_v38 }
 0xdd1   :  { %v2904_v2 = vmax.f32 %v2879_v43, 0.0  ;;  %v2775_v43 = vld [vmem:[#allocation9 + $0x350] sm:$0xff] }
 0xdd2   :  { %3228 = vmatpush.msra.mxu3 %v2775_v43 }
 0xdd3   :  { %3890 = vmatmul.msk.f32.gmra.mxu1 %vm321_vm1, %v2904_v2 }
 0xdd6   :  { %v2881_v33 = vpop.f32.mrf.mxu0 }
 0xdd7   :  { %v2882_v35 = vadd.f32 %v2881_v33, %v5659_v38  ;;  %v2774_v33 = vld [vmem:[#allocation9 + $0x340] sm:$0xff] }
 0xdd8   :  { %3229 = vmatpush.msra.mxu3 %v2774_v33 }
 0xdd9   :  { %v2905_v17 = vmax.f32 %v2882_v35, 0.0 }
 0xdda   :  { %3230 = vmatpush.msra.mxu3 %v2773_v8 }
 0xddb   :  { %3891 = vmatmul.msk.f32.gmra.mxu1 %vm321_vm1, %v2905_v17  ;;  %v2772_v17 = vld [vmem:[#allocation9 + $0x320] sm:$0xff] }
 0xddc   :  { %3231 = vmatpush.msra.mxu3 %v2772_v17 }
 0xdde   :  { %v2884_v4 = vpop.f32.mrf.mxu0 }
 0xddf   :  { %v2885_v15 = vadd.f32 %v2884_v4, %v5659_v38  ;;  %v5743_v4 = vld [vmem:[#allocation9 + $0x526] ss:$0 sm:$0xff] }
 0xde1   :  { %v2906_v0 = vmax.f32 %v2885_v15, 0.0 }
 0xde3   :  { %3892 = vmatmul.msk.f32.gmra.mxu1 %vm321_vm1, %v2906_v0 }
 0xdf4   :  { %v2706_v6 = vpop.permute.xlu2 %2705 }
 0xdf5   :  { %v2710_v9 = vmul.f32 %v2706_v6, %v2700_v53 }
 0xdf7   :  { %v2714_v3 = vadd.f32 %v2712_v14, %v2710_v9 }
 0xdf8   :  { %v2974_v1 = vpop.f32.mrf.mxu1 }
 0xdf9   :  { %2719 = vrot.lane.b32.xlu1 %v2714_v3, %s4476_s1  ;;  %v2975_v25 = vadd.f32 %v2974_v1, %v5704_v46 }
 0xdfb   :  { %v3022_v27 = vmax.f32 %v2975_v25, 0.0 }
 0xdfd   :  { %3895 = vmatmul.msk.f32.vlgmr.msra.gmra.mxu2 %vm321_vm1, %v3022_v27 }
 0xe00   :  { %v2977_v61 = vpop.f32.mrf.mxu1 }
 0xe01   :  { %v2978_v62 = vadd.f32 %v2977_v61, %v5704_v46 }
 0xe02   :  { %v2704_v31 = vpop.permute.xlu1 %2703 }
 0xe03   :  { %v2709_v36 = vmul.f32 %v2704_v31, %v2699_v60  ;;  %v3023_v32 = vmax.f32 %v2978_v62, 0.0 }
 0xe05   :  { %v2713_v40 = vadd.f32 %v2711_v50, %v2709_v36  ;;  %3896 = vmatmul.msk.f32.gmra.mxu2 %vm321_vm1, %v3023_v32 }
 0xe07   :  { %2717 = vrot.lane.b32.xlu0 %v2713_v40, %s4476_s1 }
 0xe08   :  { %v2980_v51 = vpop.f32.mrf.mxu1 }
 0xe09   :  { %v2981_v59 = vadd.f32 %v2980_v51, %v5704_v46 }
 0xe0b   :  { %v3024_v44 = vmax.f32 %v2981_v59, 0.0 }
 0xe0d   :  { %3897 = vmatmul.msk.f32.gmra.mxu2 %vm321_vm1, %v3024_v44 }
 0xe10   :  { %v2983_v52 = vpop.f32.mrf.mxu1 }
 0xe11   :  { %v2984_v39 = vadd.f32 %v2983_v52, %v5704_v46 }
 0xe13   :  { %v3025_v13 = vmax.f32 %v2984_v39, 0.0 }
 0xe15   :  { %3898 = vmatmul.msk.f32.gmra.mxu2 %vm321_vm1, %v3025_v13 }
 0xe18   :  { %v2986_v37 = vpop.f32.mrf.mxu1 }
 0xe19   :  { %v2987_v19 = vadd.f32 %v2986_v37, %v5704_v46 }
 0xe1b   :  { %v3026_v56 = vmax.f32 %v2987_v19, 0.0 }
 0xe1d   :  { %3899 = vmatmul.msk.f32.gmra.mxu2 %vm321_vm1, %v3026_v56 }
 0xe20   :  { %v2989_v5 = vpop.f32.mrf.mxu1 }
 0xe21   :  { %v2990_v41 = vadd.f32 %v2989_v5, %v5704_v46 }
 0xe23   :  { %v3027_v49 = vmax.f32 %v2990_v41, 0.0 }
 0xe25   :  { %3900 = vmatmul.msk.f32.gmra.mxu2 %vm321_vm1, %v3027_v49 }
 0xe28   :  { %v2992_v54 = vpop.f32.mrf.mxu1 }
 0xe29   :  { %v2993_v20 = vadd.f32 %v2992_v54, %v5704_v46 }
 0xe2b   :  { %v3028_v16 = vmax.f32 %v2993_v20, 0.0 }
 0xe2d   :  { %3901 = vmatmul.msk.f32.gmra.mxu2 %vm321_vm1, %v3028_v16 }
 0xe30   :  { %v2995_v58 = vpop.f32.mrf.mxu1 }
 0xe31   :  { %v2996_v29 = vadd.f32 %v2995_v58, %v5704_v46 }
 0xe33   :  { %v3029_v28 = vmax.f32 %v2996_v29, 0.0 }
 0xe35   :  { %3902 = vmatmul.msk.f32.gmra.mxu2 %vm321_vm1, %v3029_v28 }
 0xe38   :  { %v2998_v21 = vpop.f32.mrf.mxu1 }
 0xe39   :  { %v2999_v18 = vadd.f32 %v2998_v21, %v5704_v46 }
 0xe3b   :  { %v3030_v26 = vmax.f32 %v2999_v18, 0.0 }
 0xe3d   :  { %3903 = vmatmul.msk.f32.gmra.mxu2 %vm321_vm1, %v3030_v26 }
 0xe40   :  { %v3001_v55 = vpop.f32.mrf.mxu1 }
 0xe41   :  { %v3002_v48 = vadd.f32 %v3001_v55, %v5704_v46 }
 0xe43   :  { %v3031_v22 = vmax.f32 %v3002_v48, 0.0 }
 0xe45   :  { %3904 = vmatmul.msk.f32.gmra.mxu2 %vm321_vm1, %v3031_v22 }
 0xe48   :  { %v3004_v24 = vpop.f32.mrf.mxu1 }
 0xe49   :  { %v3005_v23 = vadd.f32 %v3004_v24, %v5704_v46 }
 0xe4b   :  { %v3032_v11 = vmax.f32 %v3005_v23, 0.0 }
 0xe4d   :  { %3905 = vmatmul.msk.f32.gmra.mxu2 %vm321_vm1, %v3032_v11  ;;  %v4481_v11 = vmov 0  }
 0xe4e   :  { %3967 = vset.pattern.permute.xlu1 %v4481_v11  ;;  %3968 = vset.pattern.permute.xlu2 %v4481_v11 }
 0xe4f   :  { %3969 = vset.pattern.permute.xlu0 %v4481_v11 }
 0xe50   :  { %v3007_v34 = vpop.f32.mrf.mxu1 }
 0xe51   :  { %v3008_v45 = vadd.f32 %v3007_v34, %v5704_v46 }
 0xe53   :  { %v3033_v30 = vmax.f32 %v3008_v45, 0.0 }
 0xe55   :  { %3906 = vmatmul.msk.f32.gmra.mxu2 %vm321_vm1, %v3033_v30 }
 0xe58   :  { %v3010_v7 = vpop.f32.mrf.mxu1 }
 0xe59   :  { %v3011_v12 = vadd.f32 %v3010_v7, %v5704_v46 }
 0xe5b   :  { %v3034_v2 = vmax.f32 %v3011_v12, 0.0  ;;  %v5783_v12 = vld [vmem:[#allocation9 + $0x527] ss:$0 sm:$0xff] }
 0xe5d   :  { %3907 = vmatmul.msk.f32.gmra.mxu2 %vm321_vm1, %v3034_v2 }
 0xe60   :  { %v3013_v57 = vpop.f32.mrf.mxu1 }
 0xe61   :  { %v3014_v10 = vadd.f32 %v3013_v57, %v5704_v46 }
 0xe63   :  { %v3035_v35 = vmax.f32 %v3014_v10, 0.0 }
 0xe65   :  { %3908 = vmatmul.msk.f32.gmra.mxu2 %vm321_vm1, %v3035_v35 }
 0xe6b   :  { %v2720_v42 = vpop.permute.xlu1 %2719 }
 0xe6c   :  { %2724 = vst.msk [vmem:[#allocation3 + $0x78] sm:$0xff] %vm321_vm1, %v2720_v42 }
 0xe6d   :  { %2731 = vst.msk [vmem:[#allocation11 + $0x18] sm:$0xff] %vm321_vm1, %v2720_v42 }
 0xe73   :  { %v5751_v14 = vld [vmem:[#allocation3 + $0x78] sm:$0xff] }
 0xe79   :  { %v2718_v63 = vpop.permute.xlu0 %2717 }
 0xe7a   :  { %2723 = vst.msk [vmem:[#allocation3 + $0x70] sm:$0xff] %vm321_vm1, %v2718_v63 }
 0xe7b   :  { %2730 = vst.msk [vmem:[#allocation11 + $0x10] sm:$0xff] %vm321_vm1, %v2718_v63 }
 0xe7c   :  { %3674 = dma.vmem_to_hbm [thread:$0]  %s3667_s8, 512, %s3669_s11, [#allocation12], %s4473_s23, %s4473_s23, %s4474_s24  }
 0xe80   :  { %v3103_v15 = vpop.f32.mrf.mxu2 }
 0xe81   :  { %v5745_v0 = vld [vmem:[#allocation3 + $0x70] sm:$0xff]  ;;  %v3104_v53 = vadd.f32 %v3103_v15, %v5743_v4 }
 0xe82   :  { %3877 = vmatmul.msk.f32.gmra.mxu0 %vm321_vm1, %v5745_v0 }
 0xe83   :  { %v3151_v6 = vmax.f32 %v3104_v53, 0.0 }
 0xe85   :  { %3911 = vmatmul.msk.f32.vlgmr.msra.gmra.mxu3 %vm3167_vm12, %v3151_v6 }
 0xe88   :  { %v3106_v9 = vpop.f32.mrf.mxu2 }
 0xe89   :  { %v3107_v3 = vadd.f32 %v3106_v9, %v5743_v4 }
 0xe8a   :  { %3878 = vmatmul.msk.f32.gmra.mxu0 %vm321_vm1, %v5751_v14 }
 0xe8b   :  { %v3152_v1 = vmax.f32 %v3107_v3, 0.0 }
 0xe8d   :  { %3912 = vmatmul.msk.f32.gmra.mxu3 %vm3167_vm12, %v3152_v1 }
 0xe90   :  { %v3109_v25 = vpop.f32.mrf.mxu2 }
 0xe91   :  { %v3110_v27 = vadd.f32 %v3109_v25, %v5743_v4 }
 0xe93   :  { %v3153_v61 = vmax.f32 %v3110_v27, 0.0 }
 0xe95   :  { %3913 = vmatmul.msk.f32.gmra.mxu3 %vm3167_vm12, %v3153_v61 }
 0xe98   :  { %v3112_v60 = vpop.f32.mrf.mxu2 }
 0xe99   :  { %v3113_v62 = vadd.f32 %v3112_v60, %v5743_v4 }
 0xe9b   :  { %v3154_v31 = vmax.f32 %v3113_v62, 0.0 }
 0xe9d   :  { %3914 = vmatmul.msk.f32.gmra.mxu3 %vm3167_vm12, %v3154_v31 }
 0xea0   :  { %v3115_v36 = vpop.f32.mrf.mxu2 }
 0xea1   :  { %v3116_v50 = vadd.f32 %v3115_v36, %v5743_v4 }
 0xea3   :  { %v3155_v32 = vmax.f32 %v3116_v50, 0.0 }
 0xea5   :  { %3915 = vmatmul.msk.f32.gmra.mxu3 %vm3167_vm12, %v3155_v32 }
 0xea8   :  { %v3118_v40 = vpop.f32.mrf.mxu2 }
 0xea9   :  { %v3119_v51 = vadd.f32 %v3118_v40, %v5743_v4 }
 0xeab   :  { %v3156_v59 = vmax.f32 %v3119_v51, 0.0 }
 0xead   :  { %3916 = vmatmul.msk.f32.gmra.mxu3 %vm3167_vm12, %v3156_v59 }
 0xeb0   :  { %v3121_v44 = vpop.f32.mrf.mxu2 }
 0xeb1   :  { %v3122_v52 = vadd.f32 %v3121_v44, %v5743_v4 }
 0xeb3   :  { %v3157_v39 = vmax.f32 %v3122_v52, 0.0 }
 0xeb5   :  { %3917 = vmatmul.msk.f32.gmra.mxu3 %vm3167_vm12, %v3157_v39 }
 0xeb8   :  { %v3124_v13 = vpop.f32.mrf.mxu2 }
 0xeb9   :  { %v3125_v37 = vadd.f32 %v3124_v13, %v5743_v4 }
 0xebb   :  { %v3158_v19 = vmax.f32 %v3125_v37, 0.0 }
 0xebd   :  { %3918 = vmatmul.msk.f32.gmra.mxu3 %vm3167_vm12, %v3158_v19 }
 0xec0   :  { %v3127_v56 = vpop.f32.mrf.mxu2 }
 0xec1   :  { %v3128_v5 = vadd.f32 %v3127_v56, %v5743_v4 }
 0xec3   :  { %v3159_v41 = vmax.f32 %v3128_v5, 0.0 }
 0xec5   :  { %3919 = vmatmul.msk.f32.gmra.mxu3 %vm3167_vm12, %v3159_v41 }
 0xec8   :  { %v3130_v49 = vpop.f32.mrf.mxu2 }
 0xec9   :  { %v3131_v54 = vadd.f32 %v3130_v49, %v5743_v4 }
 0xecb   :  { %v3160_v20 = vmax.f32 %v3131_v54, 0.0 }
 0xecd   :  { %3920 = vmatmul.msk.f32.gmra.mxu3 %vm3167_vm12, %v3160_v20 }
 0xed0   :  { %v3133_v16 = vpop.f32.mrf.mxu2 }
 0xed1   :  { %v3134_v58 = vadd.f32 %v3133_v16, %v5743_v4 }
 0xed3   :  { %v3161_v29 = vmax.f32 %v3134_v58, 0.0 }
 0xed5   :  { %3921 = vmatmul.msk.f32.gmra.mxu3 %vm3167_vm12, %v3161_v29 }
 0xed8   :  { %v3136_v28 = vpop.f32.mrf.mxu2 }
 0xed9   :  { %v3137_v21 = vadd.f32 %v3136_v28, %v5743_v4 }
 0xedb   :  { %v3162_v18 = vmax.f32 %v3137_v21, 0.0 }
 0xedd   :  { %3922 = vmatmul.msk.f32.gmra.mxu3 %vm3167_vm12, %v3162_v18 }
 0xee0   :  { %v3139_v26 = vpop.f32.mrf.mxu2 }
 0xee1   :  { %v3140_v55 = vadd.f32 %v3139_v26, %v5743_v4 }
 0xee3   :  { %v3163_v48 = vmax.f32 %v3140_v55, 0.0 }
 0xee5   :  { %3923 = vmatmul.msk.f32.gmra.mxu3 %vm3167_vm12, %v3163_v48 }
 0xee8   :  { %v3142_v22 = vpop.f32.mrf.mxu2 }
 0xee9   :  { %v3143_v24 = vadd.f32 %v3142_v22, %v5743_v4 }
 0xeeb   :  { %v3164_v23 = vmax.f32 %v3143_v24, 0.0 }
 0xeed   :  { %3924 = vmatmul.msk.f32.gmra.mxu3 %vm3167_vm12, %v3164_v23 }
 0xeff   :  { %v2887_v34 = vpop.f32.mrf.mxu0 }
 0xf00   :  { %v2888_v45 = vadd.f32 %v2887_v34, %v5659_v38 }
 0xf02   :  { %v2907_v30 = vmax.f32 %v2888_v45, 0.0 }
 0xf04   :  { %3893 = vmatmul.msk.f32.gmra.mxu1 %vm321_vm1, %v2907_v30 }
 0xf07   :  { %v2890_v7 = vpop.f32.mrf.mxu0 }
 0xf08   :  { %v2891_v43 = vadd.f32 %v2890_v7, %v5659_v38  ;;  %v3233_v2 = vpop.f32.mrf.mxu3 }
 0xf09   :  { %v3234_v10 = vadd.f32 %v3233_v2, %v5783_v12 }
 0xf0a   :  { %v2908_v57 = vmax.f32 %v2891_v43, 0.0 }
 0xf0b   :  { %4162 = vtanh.f32 %v3234_v10 }
 0xf0c   :  { %3894 = vmatmul.msk.f32.gmra.mxu1 %vm321_vm1, %v2908_v57 }
 0xf10   :  { %v3236_v33 = vpop.f32.mrf.mxu3 }
 0xf11   :  { %v4163_v35 = vpop.eup %4162  ;;  %v3237_v8 = vadd.f32 %v3236_v33, %v5783_v12 }
 0xf12   :  { %v3297_v17 = vmul.f32 1.442695, %v4163_v35 }
 0xf13   :  { %4164 = vtanh.f32 %v3237_v8 }
 0xf14   :  { %4166 = vpow2.f32 %v3297_v17 }
 0xf18   :  { %v3239_v42 = vpop.f32.mrf.mxu3 }
 0xf19   :  { %v4165_v63 = vpop.eup %4164  ;;  %v3240_v15 = vadd.f32 %v3239_v42, %v5783_v12 }
 0xf1a   :  { %v4167_v53 = vpop.eup %4166  ;;  %v3299_v38 = vmul.f32 1.442695, %v4165_v63 }
 0xf1b   :  { %4168 = vtanh.f32 %v3240_v15  ;;  %3331 = vperm.xlu1 %3967, %v4167_v53  }
 0xf1c   :  { %4170 = vpow2.f32 %v3299_v38 }
 0xf20   :  { %v3242_v6 = vpop.f32.mrf.mxu3 }
 0xf21   :  { %v4169_v9 = vpop.eup %4168  ;;  %v3243_v3 = vadd.f32 %v3242_v6, %v5783_v12 }
 0xf22   :  { %v4171_v1 = vpop.eup %4170  ;;  %v3301_v25 = vmul.f32 1.442695, %v4169_v9 }
 0xf23   :  { %4172 = vtanh.f32 %v3243_v3  ;;  %3336 = vperm.xlu1 %3967, %v4171_v1  }
 0xf24   :  { %4174 = vpow2.f32 %v3301_v25 }
 0xf28   :  { %v3245_v27 = vpop.f32.mrf.mxu3 }
 0xf29   :  { %v4173_v61 = vpop.eup %4172  ;;  %v3246_v60 = vadd.f32 %v3245_v27, %v5783_v12 }
 0xf2a   :  { %v4175_v62 = vpop.eup %4174  ;;  %v3303_v31 = vmul.f32 1.442695, %v4173_v61 }
 0xf2b   :  { %4176 = vtanh.f32 %v3246_v60  ;;  %3341 = vperm.xlu2 %3968, %v4175_v62   ;;  %v3439_v36 = vadd.f32 %v4175_v62, %v4167_v53 }
 0xf2c   :  { %4178 = vpow2.f32 %v3303_v31 }
 0xf30   :  { %v3248_v50 = vpop.f32.mrf.mxu3 }
 0xf31   :  { %v4177_v32 = vpop.eup %4176  ;;  %v3249_v52 = vadd.f32 %v3248_v50, %v5783_v12 }
 0xf32   :  { %v5792_v40 = vpop.eup %4178  ;;  %v3305_v51 = vmul.f32 1.442695, %v4177_v32 }
 0xf33   :  { %v3440_v59 = vadd.f32 %v5792_v40, %v4171_v1 }
 0xf34   :  { %4180 = vpow2.f32 %v3305_v51 }
 0xf38   :  { %v3251_v44 = vpop.f32.mrf.mxu3 }
 0xf39   :  { %v3252_v39 = vadd.f32 %v3251_v44, %v5783_v12 }
 0xf3a   :  { %v4181_v13 = vpop.eup %4180 }
 0xf3b   :  { %4182 = vtanh.f32 %v3252_v39  ;;  %3351 = vperm.xlu1 %3967, %v4181_v13  }
 0xf3c   :  { %4184 = vtanh.f32 %v3249_v52 }
 0xf40   :  { %v3254_v37 = vpop.f32.mrf.mxu3 }
 0xf41   :  { %v4183_v19 = vpop.eup %4182  ;;  %v3255_v56 = vadd.f32 %v3254_v37, %v5783_v12 }
 0xf42   :  { %v3309_v5 = vmul.f32 1.442695, %v4183_v19  ;;  %v4185_v41 = vpop.eup %4184 }
 0xf43   :  { %4186 = vtanh.f32 %v3255_v56  ;;  %v3307_v49 = vmul.f32 1.442695, %v4185_v41  ;;  %v3500_v41 = vld [vmem:[#allocation9 + $0x3d0] sm:$0xff] }
 0xf44   :  { %4188 = vpow2.f32 %v3309_v5  ;;  %3539 = vmatpush.msra.mxu0 %v3500_v41 }
 0xf45   :  { %4190 = vpow2.f32 %v3307_v49 }
 0xf48   :  { %v3257_v54 = vpop.f32.mrf.mxu3 }
 0xf49   :  { %v4187_v20 = vpop.eup %4186  ;;  %v3258_v16 = vadd.f32 %v3257_v54, %v5783_v12 }
 0xf4a   :  { %v4189_v58 = vpop.eup %4188  ;;  %v3311_v29 = vmul.f32 1.442695, %v4187_v20 }
 0xf4b   :  { %4192 = vtanh.f32 %v3258_v16  ;;  %3361 = vperm.xlu2 %3968, %v4189_v58   ;;  %v3441_v28 = vadd.f32 %v4189_v58, %v4181_v13  ;;  %v5801_v18 = vpop.eup %4190  ;;  %v3499_v58 = vld [vmem:[#allocation9 + $0x3c0] sm:$0xff] }
 0xf4c   :  { %4194 = vpow2.f32 %v3311_v29  ;;  %v3498_v29 = vld [vmem:[#allocation9 + $0x3b0] sm:$0xff]  ;;  %3540 = vmatpush.msra.mxu0 %v3499_v58 }
 0xf4d   :  { %v5799_v21 = vadd.f32 %v3441_v28, %v3439_v36  ;;  %v3504_v58 = vld [vmem:[#allocation9 + $0x410] sm:$0xff] }
 0xf4e   :  { %3541 = vmatpush.msra.mxu0 %v3498_v29 }
 0xf50   :  { %v3260_v26 = vpop.f32.mrf.mxu3 }
 0xf51   :  { %v4193_v55 = vpop.eup %4192  ;;  %v3261_v34 = vadd.f32 %v3260_v26, %v5783_v12 }
 0xf52   :  { %v4195_v48 = vpop.eup %4194  ;;  %v3313_v22 = vmul.f32 1.442695, %v4193_v55  ;;  %v3497_v55 = vld [vmem:[#allocation9 + $0x3a0] sm:$0xff] }
 0xf53   :  { %v3442_v24 = vadd.f32 %v4195_v48, %v5801_v18  ;;  %3542 = vmatpush.msra.mxu0 %v3497_v55 }
 0xf54   :  { %4196 = vpow2.f32 %v3313_v22  ;;  %v3496_v22 = vld [vmem:[#allocation9 + $0x390] sm:$0xff] }
 0xf55   :  { %v5804_v23 = vadd.f32 %v3442_v24, %v3440_v59  ;;  %3543 = vmatpush.msra.mxu0 %v3496_v22 }
 0xf58   :  { %v3263_v11 = vpop.f32.mrf.mxu3 }
 0xf59   :  { %v3264_v45 = vadd.f32 %v3263_v11, %v5783_v12 }
 0xf5a   :  { %v4197_v30 = vpop.eup %4196 }
 0xf5b   :  { %4198 = vtanh.f32 %v3264_v45  ;;  %3371 = vperm.xlu0 %3969, %v4197_v30  }
 0xf5c   :  { %4200 = vtanh.f32 %v3261_v34 }
 0xf60   :  { %v3266_v7 = vpop.f32.mrf.mxu3 }
 0xf61   :  { %v4199_v43 = vpop.eup %4198  ;;  %v3267_v2 = vadd.f32 %v3266_v7, %v5783_v12  ;;  %v3495_v7 = vld [vmem:[#allocation9 + $0x380] sm:$0xff] }
 0xf62   :  { %v3317_v57 = vmul.f32 1.442695, %v4199_v43  ;;  %v4201_v10 = vpop.eup %4200  ;;  %3544 = vmatpush.msra.mxu0 %v3495_v7 }
 0xf63   :  { %4202 = vtanh.f32 %v3267_v2  ;;  %v3315_v33 = vmul.f32 1.442695, %v4201_v10  ;;  %v3493_v10 = vld [vmem:[#allocation9 + $0x360] sm:$0xff] }
 0xf64   :  { %4204 = vpow2.f32 %v3317_v57  ;;  %v3494_v57 = vld [vmem:[#allocation9 + $0x370] sm:$0xff] }
 0xf65   :  { %4206 = vpow2.f32 %v3315_v33  ;;  %3545 = vmatpush.msra.mxu0 %v3494_v57 }
 0xf67   :  { %3546 = vmatpush.msra.mxu0 %v3493_v10 }
 0xf68   :  { %v3269_v35 = vpop.f32.mrf.mxu3 }
 0xf69   :  { %v4203_v8 = vpop.eup %4202  ;;  %v3270_v17 = vadd.f32 %v3269_v35, %v5783_v12 }
 0xf6a   :  { %v4205_v42 = vpop.eup %4204  ;;  %v3319_v63 = vmul.f32 1.442695, %v4203_v8 }
 0xf6b   :  { %4208 = vtanh.f32 %v3270_v17  ;;  %3381 = vperm.xlu1 %3967, %v4205_v42   ;;  %v3443_v15 = vadd.f32 %v4205_v42, %v4197_v30  ;;  %v5810_v53 = vpop.eup %4206  ;;  %v4331_v42 = vld [vmem:[#allocation3 + $0x20] sm:$0xff] }
 0xf6c   :  { %4210 = vpow2.f32 %v3319_v63 }
 0xf70   :  { %v3272_v38 = vpop.f32.mrf.mxu3 }
 0xf71   :  { %v4209_v6 = vpop.eup %4208  ;;  %v3273_v9 = vadd.f32 %v3272_v38, %v5783_v12  ;;  %v4332_v38 = vld [vmem:[#allocation3] sm:$0xff] }
 0xf72   :  { %v5813_v3 = vpop.eup %4210  ;;  %v3321_v1 = vmul.f32 1.442695, %v4209_v6 }
 0xf73   :  { %4212 = vtanh.f32 %v3273_v9  ;;  %3366 = vperm.xlu1 %3967, %v4195_v48   ;;  %v3444_v25 = vadd.f32 %v5813_v3, %v5810_v53  ;;  %v4333_v9 = vld [vmem:[#allocation3 + $0x30] sm:$0xff] }
 0xf74   :  { %4214 = vpow2.f32 %v3321_v1  ;;  %v4334_v1 = vld [vmem:[#allocation3 + $0x50] sm:$0xff] }
 0xf79   :  { %v4213_v27 = vpop.eup %4212 }
 0xf7a   :  { %v4215_v61 = vpop.eup %4214  ;;  %v3323_v60 = vmul.f32 1.442695, %v4213_v27  ;;  %v4335_v27 = vld [vmem:[#allocation3 + $0x10] sm:$0xff] }
 0xf7b   :  { %3391 = vperm.xlu2 %3968, %v4215_v61  }
 0xf7c   :  { %4216 = vpow2.f32 %v3323_v60 }
 0xf81   :  { %v3016_v62 = vpop.f32.mrf.mxu1 }
 0xf82   :  { %v3017_v31 = vadd.f32 %v3016_v62, %v5704_v46  ;;  %v4217_v36 = vpop.eup %4216  ;;  %v4336_v62 = vld [vmem:[#allocation3 + $0x40] sm:$0xff] }
 0xf83   :  { %3396 = vperm.xlu1 %3967, %v4217_v36  }
 0xf84   :  { %v3036_v50 = vmax.f32 %v3017_v31, 0.0 }
 0xf85   :  { %v3342_v30 = vpop.permute.xlu2 %3341 }
 0xf86   :  { %3909 = vmatmul.msk.f32.gmra.mxu2 %vm321_vm1, %v3036_v50 }
 0xf89   :  { %v3019_v32 = vpop.f32.mrf.mxu1 }
 0xf8a   :  { %v3020_v51 = vadd.f32 %v3019_v32, %v5704_v46 }
 0xf8c   :  { %v3037_v59 = vmax.f32 %v3020_v51, 0.0 }
 0xf8d   :  { %v3332_v43 = vpop.permute.xlu1 %3331 }
 0xf8e   :  { %3910 = vmatmul.msk.f32.gmra.mxu2 %vm321_vm1, %v3037_v59  ;;  %v3409_v6 = vmul.f32 %v4332_v38, %v3332_v43 }
 0xfcd   :  { %v3372_v8 = vpop.permute.xlu0 %3371 }
 0xfce   :  { %v3417_v31 = vmul.f32 %v4336_v62, %v3372_v8  ;;  %v4342_v8 = vld [vmem:[#allocation3 + $0x48] sm:$0xff] }
0x1009   :  { %v3145_v44 = vpop.f32.mrf.mxu2 }
0x100a   :  { %v3146_v52 = vadd.f32 %v3145_v44, %v5743_v4 }
0x100c   :  { %v3165_v39 = vmax.f32 %v3146_v52, 0.0 }
0x100e   :  { %3925 = vmatmul.msk.f32.gmra.mxu3 %vm3167_vm12, %v3165_v39 }
0x1011   :  { %v3148_v13 = vpop.f32.mrf.mxu2 }
0x1012   :  { %v3149_v37 = vadd.f32 %v3148_v13, %v5743_v4 }
0x1014   :  { %v3166_v19 = vmax.f32 %v3149_v37, 0.0 }
0x1016   :  { %3926 = vmatmul.msk.f32.gmra.mxu3 %vm3167_vm12, %v3166_v19 }
0x1091   :  { %v3275_v56 = vpop.f32.mrf.mxu3 }
0x1092   :  { %v3276_v5 = vadd.f32 %v3275_v56, %v5783_v12 }
0x1094   :  { %4218 = vtanh.f32 %v3276_v5  ;;  %v3508_v5 = vld [vmem:[#allocation9 + $0x450] sm:$0xff] }
0x1095   :  { %3570 = vmatpush.msra.mxu1 %v3508_v5 }
0x1099   :  { %v3278_v46 = vpop.f32.mrf.mxu3 }
0x109a   :  { %v4219_v49 = vpop.eup %4218  ;;  %v3279_v54 = vadd.f32 %v3278_v46, %v5783_v12 }
0x109b   :  { %v3325_v20 = vmul.f32 1.442695, %v4219_v49 }
0x109c   :  { %4220 = vtanh.f32 %v3279_v54 }
0x109d   :  { %4222 = vpow2.f32 %v3325_v20  ;;  %v3507_v20 = vld [vmem:[#allocation9 + $0x440] sm:$0xff] }
0x109e   :  { %3571 = vmatpush.msra.mxu1 %v3507_v20 }
0x10a2   :  { %v4221_v16 = vpop.eup %4220 }
0x10a3   :  { %v4223_v4 = vpop.eup %4222  ;;  %v3327_v28 = vmul.f32 1.442695, %v4221_v16  ;;  %v3505_v16 = vld [vmem:[#allocation9 + $0x420] sm:$0xff] }
0x10a4   :  { %3401 = vperm.xlu0 %3969, %v4223_v4   ;;  %v3445_v26 = vadd.f32 %v4223_v4, %v4215_v61  ;;  %v3411_v61 = vmul.f32 %v4335_v27, %v3342_v30  ;;  %v3503_v4 = vld [vmem:[#allocation9 + $0x400] sm:$0xff]  ;;  %v4337_v30 = vld [vmem:[#allocation3 + $0x28] sm:$0xff] }
0x10a5   :  { %4224 = vpow2.f32 %v3327_v28 }
0x10a6   :  { %v3449_v48 = vadd.f32 %v3445_v26, %v3443_v15  ;;  %v3425_v59 = vadd.f32 %v3411_v61, %v3409_v6  ;;  %v3502_v26 = vld [vmem:[#allocation9 + $0x3f0] sm:$0xff] }
0x10a8   :  { %v3451_v24 = vadd.f32 %v3449_v48, %v5799_v21  ;;  %v3362_v21 = vpop.permute.xlu2 %3361 }
0x10aa   :  { %3455 = vperm.xlu2 %3968, %v3451_v24  }
0x10ab   :  { %v4225_v12 = vpop.eup %4224 }
0x10ac   :  { %v3446_v11 = vadd.f32 %v4225_v12, %v4217_v36 }
0x10ae   :  { %v3450_v34 = vadd.f32 %v3446_v11, %v3444_v25 }
0x10b0   :  { %v3452_v45 = vadd.f32 %v3450_v34, %v5804_v23  ;;  %v3392_v2 = vpop.permute.xlu2 %3391  ;;  %v5833_v23 = vpop.permute.xlu1 %3336 }
0x10b1   :  { %v3421_v50 = vmul.f32 %v3392_v2, %v5652_v47  ;;  %v4339_v2 = vld [vmem:[#allocation3 + $0x38] sm:$0xff] }
0x10b2   :  { %3346 = vperm.xlu2 %3968, %v5792_v40   ;;  %3460 = vperm.xlu0 %3969, %v3452_v45  }
0x10b8   :  { %v3352_v33 = vpop.permute.xlu1 %3351 }
0x10b9   :  { %v3413_v63 = vmul.f32 %v4331_v42, %v3352_v33 }
0x10ba   :  { %3376 = vperm.xlu2 %3968, %v5810_v53   ;;  %3356 = vperm.xlu0 %3969, %v5801_v18  }
0x10c0   :  { %v3382_v15 = vpop.permute.xlu1 %3381 }
0x10c1   :  { %v3419_v25 = vmul.f32 %v4334_v1, %v3382_v15 }
0x10c2   :  { %3406 = vperm.xlu2 %3968, %v4225_v12   ;;  %3386 = vperm.xlu0 %3969, %v5813_v3   ;;  %v3415_v3 = vmul.f32 %v4333_v9, %v3362_v21  ;;  %v4338_v21 = vld [vmem:[#allocation3 + $0x18] sm:$0xff] }
0x10c3   :  { %v3429_v52 = vadd.f32 %v3419_v25, %v3417_v31 }
0x10c4   :  { %v3427_v60 = vadd.f32 %v3415_v3, %v3413_v63 }
0x10c6   :  { %v3433_v37 = vadd.f32 %v3427_v60, %v3425_v59 }
0x10c8   :  { %v3367_v55 = vpop.permute.xlu1 %3366 }
0x10c9   :  { %v3416_v57 = vmul.f32 %v4339_v2, %v3367_v55  ;;  %v3517_v55 = vld [vmem:[#allocation9 + $0x4e0] sm:$0xff] }
0x10d0   :  { %v3397_v34 = vpop.permute.xlu1 %3396 }
0x1104   :  { %v3456_v40 = vpop.permute.xlu2 %3455 }
0x1105   :  { %4226 = vrcp.f32 %v3456_v40  ;;  %v3474_v44 = vand.u32 2147483648, %v3456_v40  ;;  %vm3468_vm0 = vweird.f32 %v3456_v40  ;;  %v3472_v39 = vand.u32 2147483647, %v3456_v40 }
0x1107   :  { %v3475_v41 = vor.u32 1.1754944e-38, %v3474_v44  ;;  %vm3473_vm15 = vcmp.eq.f32.partialorder %v3472_v39, 8.507059e+37  ;;  %v3516_v44 = vld [vmem:[#allocation9 + $0x4d0] sm:$0xff] }
0x1108   :  { %3943 = vmatpush.msrb.mxu2 %v3516_v44  ;;  %3601 = vmatpush.msrb.mxu0 %v3516_v44  ;;  %v3514_v39 = vld [vmem:[#allocation9 + $0x4b0] sm:$0xff] }
0x110b   :  { %v4227_v35 = vpop.eup %4226 }
0x110c   :  { %v3464_v18 = vmul.f32 %v4227_v35, %v3456_v40  ;;  %vm3469_vm13 = vweird.f32 %v4227_v35  ;;  %v3347_v46 = vpop.permute.xlu2 %3346  ;;  %v4340_v40 = vld [vmem:[#allocation3 + $0x8] sm:$0xff] }
0x110d   :  { %vm3470_vm14 = vmor %vm3468_vm0, %vm3469_vm13  ;;  %v3412_v43 = vmul.f32 %v4338_v21, %v3347_v46  ;;  %v3410_v33 = vmul.f32 %v4340_v40, %v5833_v23  ;;  %v3510_v46 = vld [vmem:[#allocation9 + $0x470] sm:$0xff] }
0x110e   :  { %v3465_v17 = vsub.f32 1.0, %v3464_v18 }
0x110f   :  { %v3426_v6 = vadd.f32 %v3412_v43, %v3410_v33 }
0x1110   :  { %v3466_v53 = vmul.f32 %v4227_v35, %v3465_v17 }
0x1112   :  { %v3467_v32 = vadd.f32 %v4227_v35, %v3466_v53  ;;  %v4343_v53 = vld [vmem:[#allocation3 + $0x58] sm:$0xff] }
0x1114   :  { %v3471_v56 = vsel %vm3470_vm14, %v4227_v35, %v3467_v32  ;;  %v3377_v28 = vpop.permute.xlu2 %3376  ;;  %v4341_v35 = vld [vmem:[#allocation3 + $0x68] sm:$0xff] }
0x1115   :  { %v3476_v49 = vsel %vm3473_vm15, %v3475_v41, %v3471_v56  ;;  %v3422_v18 = vmul.f32 %v4341_v35, %v3397_v34  ;;  %v3418_v17 = vmul.f32 %v4342_v8, %v3377_v28 }
0x1116   :  { %v3402_v36 = vpop.permute.xlu0 %3401 }
0x1117   :  { %v3423_v51 = vmul.f32 %v3402_v36, %v5745_v0  ;;  %v3506_v0 = vld [vmem:[#allocation9 + $0x430] sm:$0xff]  ;;  %v3501_v36 = vld [vmem:[#allocation9 + $0x3e0] sm:$0xff] }
0x1118   :  { %3572 = vmatpush.msra.mxu1 %v3506_v0 }
0x1119   :  { %v3431_v13 = vadd.f32 %v3423_v51, %v3421_v50  ;;  %v3521_v50 = vld [vmem:[#allocation9 + $0x530] ss:$0 sm:$0xff] }
0x111a   :  { %3573 = vmatpush.msra.mxu1 %v3505_v16  ;;  %v3520_v16 = vld [vmem:[#allocation9 + $0x510] sm:$0xff] }
0x111b   :  { %v3435_v19 = vadd.f32 %v3431_v13, %v3429_v52  ;;  %v3515_v52 = vld [vmem:[#allocation9 + $0x4c0] sm:$0xff]  ;;  %3951 = vmatpush.msrb.mxu3 %v3520_v16 }
0x111c   :  { %3574 = vmatpush.msra.mxu1 %v3504_v58  ;;  %v3407_v11 = vpop.permute.xlu2 %3406  ;;  %3944 = vmatpush.msrb.mxu2 %v3515_v52  ;;  %v3513_v13 = vld [vmem:[#allocation9 + $0x4a0] sm:$0xff] }
0x111d   :  { %v3437_v47 = vadd.f32 %v3435_v19, %v3433_v37  ;;  %v3424_v10 = vmul.f32 %v3407_v11, %v5751_v14  ;;  %3602 = vmatpush.msrb.mxu0 %v3515_v52  ;;  %v3512_v37 = vld [vmem:[#allocation9 + $0x490] sm:$0xff]  ;;  %v3511_v19 = vld [vmem:[#allocation9 + $0x480] sm:$0xff] }
0x111e   :  { %3575 = vmatpush.msra.mxu1 %v3503_v4  ;;  %3945 = vmatpush.msrb.mxu2 %v3514_v39  ;;  %v3519_v58 = vld [vmem:[#allocation9 + $0x500] sm:$0xff] }
0x111f   :  { %v3477_v54 = vmul.f32 %v3476_v49, %v3437_v47  ;;  %v3432_v3 = vadd.f32 %v3424_v10, %v3422_v18  ;;  %3603 = vmatpush.msrb.mxu0 %v3514_v39  ;;  %v3509_v47 = vld [vmem:[#allocation9 + $0x460] sm:$0xff]  ;;  %v3522_v49 = vld [vmem:[#allocation9 + $0x531] ss:$0 sm:$0xff]  ;;  %3952 = vmatpush.msrb.mxu3 %v3519_v58 }
0x1120   :  { %3576 = vmatpush.msra.mxu1 %v3502_v26  ;;  %3946 = vmatpush.msrb.mxu2 %v3513_v13 }
0x1121   :  { %3927 = vmatmul.msk.f32.vlgmr.msra.gmra.mxu0 %vm321_vm1, %v3477_v54 }
0x1122   :  { %3577 = vmatpush.msra.mxu1 %v3501_v36  ;;  %3604 = vmatpush.msrb.mxu0 %v3513_v13 }
0x1123   :  { %3947 = vmatpush.msrb.mxu2 %v3512_v37 }
0x1124   :  { %v3461_v29 = vpop.permute.xlu0 %3460  ;;  %3605 = vmatpush.msrb.mxu0 %v3512_v37  ;;  %3636 = vmatpush.msrb.mxu1 %v3520_v16 }
0x1125   :  { %4228 = vrcp.f32 %v3461_v29  ;;  %v3489_v9 = vand.u32 2147483648, %v3461_v29  ;;  %vm3483_vm3 = vweird.f32 %v3461_v29  ;;  %v3487_v1 = vand.u32 2147483647, %v3461_v29  ;;  %3948 = vmatpush.msrb.mxu2 %v3511_v19 }
0x1126   :  { %3606 = vmatpush.msrb.mxu0 %v3511_v19  ;;  %3637 = vmatpush.msrb.mxu1 %v3519_v58 }
0x1127   :  { %v3490_v61 = vor.u32 1.1754944e-38, %v3489_v9  ;;  %vm3488_vm5 = vcmp.eq.f32.partialorder %v3487_v1, 8.507059e+37  ;;  %3949 = vmatpush.msrb.mxu2 %v3510_v46 }
0x1128   :  { %3607 = vmatpush.msrb.mxu0 %v3510_v46 }
0x1129   :  { %3950 = vmatpush.msrb.mxu2 %v3509_v47 }
0x112a   :  { %3608 = vmatpush.msrb.mxu0 %v3509_v47 }
0x112b   :  { %v4229_v48 = vpop.eup %4228 }
0x112c   :  { %v3479_v22 = vmul.f32 %v4229_v48, %v3461_v29  ;;  %v3357_v24 = vpop.permute.xlu0 %3356  ;;  %vm3484_vm2 = vweird.f32 %v4229_v48  ;;  %v3518_v29 = vld [vmem:[#allocation9 + $0x4f0] sm:$0xff] }
0x112d   :  { %v3414_v7 = vmul.f32 %v4337_v30, %v3357_v24  ;;  %vm3485_vm4 = vmor %vm3483_vm3, %vm3484_vm2  ;;  %3953 = vmatpush.msrb.mxu3 %v3518_v29  ;;  %3638 = vmatpush.msrb.mxu1 %v3518_v29  ;;  %v3524_v30 = vld [vmem:[#allocation9 + $0x533] ss:$0 sm:$0xff] }
0x112e   :  { %v3480_v12 = vsub.f32 1.0, %v3479_v22 }
0x112f   :  { %v3428_v15 = vadd.f32 %v3416_v57, %v3414_v7  ;;  %3639 = vmatpush.msrb.mxu1 %v3517_v55  ;;  %3954 = vmatpush.msrb.mxu3 %v3517_v55 }
0x1130   :  { %v3481_v45 = vmul.f32 %v4229_v48, %v3480_v12 }
0x1131   :  { %v3434_v14 = vadd.f32 %v3428_v15, %v3426_v6 }
0x1132   :  { %v3482_v63 = vadd.f32 %v4229_v48, %v3481_v45 }
0x1134   :  { %v3387_v42 = vpop.permute.xlu0 %3386  ;;  %v3486_v23 = vsel %vm3485_vm4, %v4229_v48, %v3482_v63  ;;  %v3523_v48 = vld [vmem:[#allocation9 + $0x532] ss:$0 sm:$0xff] }
0x1135   :  { %v3420_v38 = vmul.f32 %v4343_v53, %v3387_v42  ;;  %v3491_v62 = vsel %vm3488_vm5, %v3490_v61, %v3486_v23 }
0x1137   :  { %v3430_v25 = vadd.f32 %v3420_v38, %v3418_v17 }
0x1139   :  { %v3436_v27 = vadd.f32 %v3432_v3, %v3430_v25 }
0x113b   :  { %v3438_v60 = vadd.f32 %v3436_v27, %v3434_v14 }
0x113d   :  { %v3492_v31 = vmul.f32 %v3491_v62, %v3438_v60 }
0x113f   :  { %3928 = vmatmul.msk.f32.gmra.mxu0 %vm321_vm1, %v3492_v31 }
0x119e   :  { %v3548_v32 = vpop.f32.mrf.mxu0 }
0x119f   :  { %v3549_v51 = vadd.f32 %v3548_v32, %v3521_v50 }
0x11a1   :  { %v3554_v59 = vmax.f32 %v3549_v51, 0.0 }
0x11a3   :  { %3929 = vmatmul.msk.f32.vlgmr.msra.gmra.mxu1 %vm321_vm1, %v3554_v59 }
0x11bc   :  { %v3551_v56 = vpop.f32.mrf.mxu0 }
0x11bd   :  { %v3552_v5 = vadd.f32 %v3551_v56, %v3521_v50 }
0x11bf   :  { %v3555_v41 = vmax.f32 %v3552_v5, 0.0 }
0x11c1   :  { %3930 = vmatmul.msk.f32.gmra.mxu1 %vm321_vm1, %v3555_v41 }
0x1220   :  { %v3579_v54 = vpop.f32.mrf.mxu1 }
0x1221   :  { %v3580_v20 = vadd.f32 %v3579_v54, %v3522_v49 }
0x1223   :  { %v3585_v0 = vmax.f32 %v3580_v20, 0.0 }
0x1225   :  { %3931 = vmatmul.msk.f32.vlgmr.msrb.gmra.mxu0 %vm321_vm1, %v3585_v0 }
0x123e   :  { %v3582_v4 = vpop.f32.mrf.mxu1 }
0x123f   :  { %v3583_v28 = vadd.f32 %v3582_v4, %v3522_v49 }
0x1241   :  { %v3586_v26 = vmax.f32 %v3583_v28, 0.0 }
0x1243   :  { %3932 = vmatmul.msk.f32.vlgmr.msrb.gmra.mxu2 %vm321_vm1, %v3586_v26 }
0x12a2   :  { %v3610_v22 = vpop.f32.mrf.mxu0 }
0x12a3   :  { %v3611_v24 = vadd.f32 %v3610_v22, %v3523_v48 }
0x12a5   :  { %v3616_v12 = vmax.f32 %v3611_v24, 0.0 }
0x12a7   :  { %3933 = vmatmul.msk.f32.vlgmr.msrb.gmra.mxu1 %vm3167_vm12, %v3616_v12 }
0x12c6   :  { %v3613_v11 = vpop.f32.mrf.mxu2 }
0x12c7   :  { %v3614_v34 = vadd.f32 %v3613_v11, %v3523_v48 }
0x12c9   :  { %v3617_v45 = vmax.f32 %v3614_v34, 0.0 }
0x12cb   :  { %3934 = vmatmul.msk.f32.vlgmr.msrb.gmra.mxu3 %vm3167_vm12, %v3617_v45 }
0x1324   :  { %v3641_v7 = vpop.f32.mrf.mxu1 }
0x1325   :  { %v3642_v21 = vadd.f32 %v3641_v7, %v3524_v30 }
0x1327   :  { %3647 = vst [vmem:[#allocation10] sm:$0xff] %v3642_v21 }
0x134e   :  { %v3644_v43 = vpop.f32.mrf.mxu3 }
0x134f   :  { %v3645_v2 = vadd.f32 %v3644_v43, %v3524_v30 }
0x1351   :  { %3648 = vst [vmem:[#allocation10 + $0x8] sm:$0xff] %v3645_v2 }
0x1352   :  { %3661 = dma.vmem_to_hbm [thread:$0]  %s3654_s13, 256, %s3656_s16, [#allocation6], %s4473_s23, %s4473_s23, %s4474_s24  }
0x1353   :  { %4468 = dma.done.wait [#allocation6], 256  }
0x1354   :  { %4469 = vsyncadd [#allocation6], 4294967040 }
0x1355   :  { %4470 = dma.done.wait [#allocation12], 512  }
0x1356   :  { %4471 = vsyncadd [#allocation12], 4294966784 }
0x1357   :  { %3683 = vsyncpa [#allocation5], 1 }
0x1358   :  { %3684 = vsyncpa [#allocation8], 1 }
0x1359   :  { %3685 = vsyncpa [#allocation6], 1 }
0x135a   :  { %3686 = vsyncpa [#allocation12], 1 }

</bundles_post_ra>
